<compile_context>
chip_gen: v6e
topology: v6e:2x2x1
jax: 0.10.0
libtpu: 0.0.40
codegen_flags: <defaults>
</compile_context>

<pallas_src>
import jax
import jax.numpy as jnp
from jax import lax
from jax.experimental import pallas as pl
from jax.experimental.pallas import tpu as pltpu


def _add_conv1x1_kernel(a_ref, b_ref, w_ref, o_ref):
    # Elementwise add on the (small, VMEM-resident) activations: (Cin, M), f32.
    x = a_ref[...] + b_ref[...]
    # Weight tile arrives as bf16 (halved HBM stream); upcast in-register and
    # run the MXU matmul with f32 accumulation: (tile_n, Cin) @ (Cin, M).
    w = w_ref[...].astype(jnp.float32)
    o_ref[...] = lax.dot_general(
        w,
        x,
        dimension_numbers=(((1,), (0,)), ((), ())),
        preferred_element_type=jnp.float32,
    ).astype(o_ref.dtype)


def _pick_tile_n(cout):
    """v7x (2 TensorCores/chip): 2 grid steps per core so the second
    half-weight DMA overlaps the first tile's matmul/writeback.
    v5e/v6e (1 TC): keep the 2-step grid -> lowest per-step overhead."""
    try:
        kind = jax.devices()[0].device_kind.lower()
    except Exception:
        kind = ""
    tile = 576 if "7" in kind else 1152
    while cout % tile != 0:
        tile //= 2
    return max(tile, 8)


def add_conv1x1(x_a, x_b, weight, *, weight_dtype=jnp.bfloat16, tile_n=None):
    """x_a, x_b: NCHW float32 [1, Cin, H, W]; weight: [Cout, Cin, 1, 1]."""
    N, Cin, H, W = x_a.shape
    Cout = weight.shape[0]
    assert N == 1, "kernel specialised to the module's batch size of 1"
    assert weight.shape == (Cout, Cin, 1, 1)

    if tile_n is None:
        tile_n = _pick_tile_n(Cout)
    assert Cout % tile_n == 0

    M = H * W

    # Free reshapes only (row-major NCHW with N=1 -> (Cin, M)); the weight
    # cast to bf16 is the one real wrapper op and it pays for itself by
    # halving the dominant HBM stream.
    a2d = x_a.reshape(Cin, M)
    b2d = x_b.reshape(Cin, M)
    w2d = weight.reshape(Cout, Cin).astype(weight_dtype)

    grid = (Cout // tile_n,)

    f32_bytes = jnp.dtype(x_a.dtype).itemsize
    w_bytes = jnp.dtype(weight_dtype).itemsize
    cost = pl.CostEstimate(
        flops=2 * M * Cin * Cout,
        transcendentals=0,
        bytes_accessed=(2 * Cin * M + Cout * M) * f32_bytes + Cout * Cin * w_bytes,
    )

    out2d = pl.pallas_call(
        _add_conv1x1_kernel,
        out_shape=jax.ShapeDtypeStruct((Cout, M), x_a.dtype),
        grid_spec=pltpu.PrefetchScalarGridSpec(
            num_scalar_prefetch=0,
            grid=grid,
            in_specs=[
                # Full activation blocks; block index constant across the grid
                # (index_map stays (0, 0)), so they remain VMEM-resident.
                pl.BlockSpec((Cin, M), lambda j: (0, 0)),
                pl.BlockSpec((Cin, M), lambda j: (0, 0)),
                # Weight row tile: (tile_n, Cin) bf16, streamed per grid step.
                pl.BlockSpec((tile_n, Cin), lambda j: (j, 0)),
            ],
            out_specs=pl.BlockSpec((tile_n, M), lambda j: (j, 0)),
        ),
        compiler_params=pltpu.CompilerParams(
            dimension_semantics=("parallel",),
        ),
        cost_estimate=cost,
    )(a2d, b2d, w2d)

    # Free reshape back to NCHW.
    return out2d.reshape(N, Cout, H, W)


if __name__ == "__main__":
    key = jax.random.PRNGKey(0)
    k1, k2, k3 = jax.random.split(key, 3)

    N, Cin, H, W, Cout = 1, 384, 7, 7, 2304

    x974 = jax.random.normal(k1, (N, Cin, H, W), dtype=jnp.float32)
    x959 = jax.random.normal(k2, (N, Cin, H, W), dtype=jnp.float32)
    # Conv2d(384, 2304, kernel_size=1, bias=False)-shaped weight.
    weight = (jax.random.normal(k3, (Cout, Cin, 1, 1), dtype=jnp.float32)
              * (1.0 / jnp.sqrt(Cin)))

    out = add_conv1x1(x974, x959, weight)
    out = jax.block_until_ready(out)
    assert out.shape == (N, Cout, H, W), out.shape

    xsum = x974 + x959

    # Check 1 (tight): against the kernel's own math -- bf16-rounded weight,
    # f32 activations / accumulation.
    w_bf16 = weight.reshape(Cout, Cin).astype(jnp.bfloat16).astype(jnp.float32)
    ref_bf16 = jnp.einsum("nchw,oc->nohw", xsum, w_bf16)
    assert jnp.allclose(out, ref_bf16, atol=2e-3, rtol=2e-3)

    # Check 2 (loose): against the original module's full-f32 numerics; the
    # only difference is the opt-in bf16 weight rounding (~2^-9 relative).
    ref_f32 = jnp.einsum("nchw,oc->nohw", xsum, weight.reshape(Cout, Cin))
    assert jnp.allclose(out, ref_f32, atol=5e-2, rtol=5e-2)

    print("KERNEL_OK")
</pallas_src>

<mosaic_0001>
module attributes {stable_mosaic.version = 11 : i64} {
  func.func @_add_conv1x1_kernel(%arg0: i32, %arg1: memref<384x49xf32, #tpu.memory_space<vmem>>, %arg2: memref<384x49xf32, #tpu.memory_space<vmem>>, %arg3: memref<1152x384xbf16, #tpu.memory_space<vmem>>, %arg4: memref<1152x49xf32, #tpu.memory_space<vmem>>) attributes {dimension_semantics = [#tpu.dimension_semantics<parallel>], iteration_bounds = array<i64: 2>, scalar_prefetch = 0 : i64, scratch_operands = 0 : i64, tpu.core_type = #tpu.core_type<tc>, window_params = [{pipeline_mode = #tpu.pipeline_mode<synchronous>, transform_indices = @transform_0, window_bounds = array<i64: 384, 49>}, {pipeline_mode = #tpu.pipeline_mode<synchronous>, transform_indices = @transform_1, window_bounds = array<i64: 384, 49>}, {transform_indices = @transform_2, window_bounds = array<i64: 1152, 384>}, {transform_indices = @transform_3, window_bounds = array<i64: 1152, 49>}]} {
    %c0 = arith.constant 0 : index
    %c0_0 = arith.constant 0 : index
    %0 = vector.load %arg1[%c0, %c0_0] : memref<384x49xf32, #tpu.memory_space<vmem>>, vector<384x49xf32>
    %c0_1 = arith.constant 0 : index
    %c0_2 = arith.constant 0 : index
    %1 = vector.load %arg2[%c0_1, %c0_2] : memref<384x49xf32, #tpu.memory_space<vmem>>, vector<384x49xf32>
    %2 = arith.addf %0, %1 : vector<384x49xf32>
    %c0_3 = arith.constant 0 : index
    %c0_4 = arith.constant 0 : index
    %3 = vector.load %arg3[%c0_3, %c0_4] : memref<1152x384xbf16, #tpu.memory_space<vmem>>, vector<1152x384xbf16>
    %4 = arith.extf %3 : vector<1152x384xbf16> to vector<1152x384xf32>
    %cst = arith.constant dense<0.000000e+00> : vector<1152x49xf32>
    %5 = tpu.matmul %4, %2, %cst {dimension_numbers = #tpu.dot_dimension_numbers<[1], [0], [0], [1], [0, 0, 1, 1], [], []>} : vector<1152x384xf32>, vector<384x49xf32>, vector<1152x49xf32> -> vector<1152x49xf32>
    %c0_5 = arith.constant 0 : index
    %c0_6 = arith.constant 0 : index
    %6 = vector.load %arg4[%c0_5, %c0_6] : memref<1152x49xf32, #tpu.memory_space<vmem>>, vector<1152x49xf32>
    tpu.vector_store %arg4[%c0_5, %c0_6], %5 {strides = array<i32>} : memref<1152x49xf32, #tpu.memory_space<vmem>>, vector<1152x49xf32>,
    return
  }
  func.func @transform_0(%arg0: i32) -> (i32, i32) {
    %c0_i32 = arith.constant 0 : i32
    %c0_i32_0 = arith.constant 0 : i32
    %c0_i32_1 = arith.constant 0 : i32
    return %c0_i32, %c0_i32_0 : i32, i32
  }
  func.func @transform_1(%arg0: i32) -> (i32, i32) {
    %c0_i32 = arith.constant 0 : i32
    %c0_i32_0 = arith.constant 0 : i32
    %c0_i32_1 = arith.constant 0 : i32
    return %c0_i32, %c0_i32_0 : i32, i32
  }
  func.func @transform_2(%arg0: i32) -> (i32, i32) {
    %c0_i32 = arith.constant 0 : i32
    %c0_i32_0 = arith.constant 0 : i32
    return %arg0, %c0_i32 : i32, i32
  }
  func.func @transform_3(%arg0: i32) -> (i32, i32) {
    %c0_i32 = arith.constant 0 : i32
    %c0_i32_0 = arith.constant 0 : i32
    return %arg0, %c0_i32 : i32, i32
  }
}

</mosaic_0001>

<bundles_post_ra>
// kernel: tpu_custom_call.1
= control target key start
LH: loop header
LB: loop body
LE: loop exit
PB: predicated region body
PF: predicated region fallthrough
CT: control target
= control target key end

     0   :  { %8 = vsyncpa [#allocation3], 0  ;;  %s4755_s0 = inlined_call_operand.vmem [shape: f32[384,49], index: 0, kind: input, shape index: {}]   ;;  %s4756_s1 = inlined_call_operand.vmem [shape: f32[384,49], index: 1, kind: input, shape index: {}]   ;;  %s4757_s2 = inlined_call_operand.hbm [shape: bf16[2304,384], index: 2, kind: input, shape index: {}]   ;;  %s4758_s3 = inlined_call_operand.vmem [shape: f32[2304,49], index: 3, kind: output, shape index: {}]  }
   0x1   :  { %10 = vsyncpa [#allocation3 + $0x1], 0  ;;  %s3455_s12 = smov 0   ;;  %s3457_s13 = smov 0  }
   0x2   :  { %s3459_s14 = smov 0   ;;  %s3461_s15 = smov 0  }
   0x3 LB: > { %s2840_s16 = sadd.s32 4294967295, %s3429_s15   ;;  %s3475_s17 = sadd.s32 1, %s3429_s15   ;;  %s3429_s15 = sphi %s3461_s15, %s4820_s15   ;;  %s3425_s14 = sphi %s3459_s14, %s4819_s14   ;;  %s3421_s13 = sphi %s3457_s13, %s4818_s13   ;;  %s3417_s12 = sphi %s3455_s12, %s4817_s12  }
   0x4   : > { %s62_s18 = ssub.s32 %s3429_s15, %s3475_s17  ;;  %s65_s19 = sadd.s32 1, %s3425_s14 }
   0x5   : > { %p63_p0 = scmp.eq.s32.totalorder %s62_s18, 0  ;;  %p72_p1 = scmp.ne.s32.totalorder %s3425_s14, %s3421_s13 }
   0x6   : > { %p73_p2 = scmp.eq.s32.totalorder %s3429_s15, 0  ;;  %p78_p3 = scmp.ne.s32.totalorder %s3421_s13, %s3417_s12 }
   0x7   : > { %s3485_s20 = scalar_select %p63_p0, %s3425_s14, %s65_s19  }
   0x8   : > { %p74_p4 = por %p73_p2, %p72_p1  ;;  %p79_p5 = scmp.eq.s32.totalorder %s2840_s16, 0 }
   0x9   : > { %p3330_p6 = scmp.lt.s32.totalorder %s3429_s15, 2  ;;  %s134_s22 = sand.u32 1, %s3425_s14  }
   0xa   : > { %p3490_p7 = por %p79_p5, %p78_p3  ;;  %s3321_s23 = smul.u32 1728, %s134_s22 }
   0xb   : > { %p3495_p8 = pnand %p3330_p6, %p74_p4  ;;  %s3331_s25 = smul.u32 27648, %s3429_s15 }
   0xc   : > { %s4760_s21 = scalar_select %p3490_p7, 1, 0 }
   0xd   : > { %s138_s26 = scalar_lea.vmem [#allocation2], %s3321_s23  ;;  %s3503_s30 = scalar_lea.hbm %s4757_s2, %s3331_s25 }
   0xe   : > { %s146_s27 = sshll.u32 %s138_s26, 4  ;;  %s3507_s4 = scalar_lea.sflag [#allocation3], %s134_s22  ;;  %s3505_s27 = int_to_ptr.vmem [resolvable:$true] %s146_s27 }
   0xf   : > { %s3367_s5 = scalar_lea.hbm %s3503_s30, 27648  ;;  %p3369_p10 = pneg %p3495_p8 }
  0x10   : > { %p3368_p9 = scmp.ne.s32.totalorder %s3503_s30, %s3367_s5  ;;  %s3372_s8 = scalar_lea.hbm %s4757_s2, 55296 }
  0x11   : > { %p3373_p13 = scmp.lt.s32.totalorder %s3503_s30, %s4757_s2  ;;  %p3374_p0 = scmp.lt.s32.totalorder %s3372_s8, %s3367_s5 }
  0x12   : > { %p3370_p11 = pnand %p3369_p10, %p3368_p9 }
  0x13   : > { %p3375_p1 = por %p3374_p0, %p3373_p13 }
  0x14   : > { %p3371_p12 = pneg %p3370_p11 }
  0x16   : > { %p3376_p2 = pnand %p3375_p1, %p3371_p12 }
  0x18   : > { %3379 = shalt.err (!%p3376_p2)
}
  0x19   : > { %s3380_s11 = scalar_lea.vmem %s3505_s27, 27648  ;;  %s3431_s12 = smov [#allocation2]  }
  0x1a   : > { %p3381_p3 = scmp.ne.s32.totalorder %s3505_s27, %s3380_s11  ;;  %s3385_s18 = sshll.u32 %s3431_s12, 4  ;;  %s3386_s18 = int_to_ptr.vmem [resolvable:$false] %s3385_s18 }
  0x1b   : > { %s3387_s19 = scalar_lea.vmem %s3386_s18, 55296  ;;  %p3388_p6 = scmp.lt.s32.totalorder %s3505_s27, %s3386_s18 }
  0x1c   : > { %p3383_p4 = pnand %p3381_p3, %p3369_p10  ;;  %p3389_p9 = scmp.lt.s32.totalorder %s3387_s19, %s3380_s11 }
  0x1e   : > { %p3384_p5 = pneg %p3383_p4  ;;  %p3390_p11 = por %p3389_p9, %p3388_p6 }
  0x20   : > { %p3391_p7 = pnand %p3390_p11, %p3384_p5 }
  0x22   : > { %3394 = shalt.err (!%p3391_p7)
}
  0x23   : > { %s3432_s22 = smov 192   ;;  %s3433_s23 = smov 12  }
  0x24   : > { %3329 = dma.hbm_to_vmem [thread:$0]  (!%p3495_p8), %s3503_s30, 27648, %s3505_s27, %s3507_s4, %s3432_s22, %s3432_s22, %s3433_s23  }
  0x25   : > { %p2845_p10 = scmp.ge.s32.totalorder %s3429_s15, 1  ;;  %p154_p12 = scmp.lt.s32.totalorder %s3429_s15, 3 }
  0x27   : > { %p155_p13 = pnand %p2845_p10, %p154_p12 }
  0x29   : > { %158 = sbr.rel (%p155_p13) target bundleno = 745 (0x2e9), region = 32 }
  0x2e   : > { %s160_s25 = sand.u32 1, %s3421_s13   ;;  %p4762_p7 = scmp.ne.s32.totalorder %s4760_s21, 0 }
  0x2f   : > { %s3323_s26 = smul.u32 1728, %s160_s25  ;;  %s161_s28 = scalar_lea.sflag [#allocation3], %s160_s25 }
  0x31   : > { %s3531_s29 = scalar_lea.vmem [#allocation2], %s3323_s26 }
  0x32   : > { %3412 = dma.done.wait (%p4762_p7), %s161_s28, 27648  }
  0x33   : > { %3414 = vsyncadd (%p4762_p7), %s161_s28, 4294939648  ;;  %v3434_v0 = vmov 0.0   ;;  %v209_v1 = vld [vmem:[%s4755_s0 + $0x78] sm:$0xff]  ;;  %v208_v3 = vld [vmem:[%s4755_s0 + $0x70] sm:$0xff]  ;;  %s4189_s12 = smul.u32 144, %s2840_s16  ;;  %vm2628_vm0 = vcmask 400384  }
  0x34   : > { %1058 = vmatprep.subr.mxu0 %v3434_v0  ;;  %3257 = vmatprep.subr.mxu1 %v3434_v0  ;;  %v257_v2 = vld [vmem:[%s4756_s1 + $0x78] sm:$0xff]  ;;  %v256_v5 = vld [vmem:[%s4756_s1 + $0x70] sm:$0xff]  ;;  %v207_v6 = vld [vmem:[%s4755_s0 + $0x68] sm:$0xff] }
  0x35   : > { %v305_v4 = vadd.f32 %v257_v2, %v209_v1  ;;  %v255_v7 = vld [vmem:[%s4756_s1 + $0x68] sm:$0xff]  ;;  %v304_v8 = vadd.f32 %v256_v5, %v208_v3  ;;  %v206_v9 = vld [vmem:[%s4755_s0 + $0x60] sm:$0xff]  ;;  %v205_v12 = vld [vmem:[%s4755_s0 + $0x58] sm:$0xff]  ;;  %p189_p8 = scmp.lt.s32.totalorder %s4189_s12, 287 }
  0x36   : > { %v254_v10 = vld [vmem:[%s4756_s1 + $0x60] sm:$0xff]  ;;  %v303_v11 = vadd.f32 %v255_v7, %v207_v6  ;;  %v253_v13 = vld [vmem:[%s4756_s1 + $0x58] sm:$0xff]  ;;  %v204_v15 = vld [vmem:[%s4755_s0 + $0x50] sm:$0xff] }
  0x37   : > { %1059 = vmatpush1.msra.mxu0 %v305_v4  ;;  %3289 = vmatpush1.msra.mxu1 %v305_v4  ;;  %v302_v14 = vadd.f32 %v254_v10, %v206_v9  ;;  %v252_v16 = vld [vmem:[%s4756_s1 + $0x50] sm:$0xff]  ;;  %v301_v17 = vadd.f32 %v253_v13, %v205_v12  ;;  %v203_v18 = vld [vmem:[%s4755_s0 + $0x48] sm:$0xff]  ;;  %v202_v21 = vld [vmem:[%s4755_s0 + $0x40] sm:$0xff]  ;;  %s4822_s12 = smov (!%p189_p8, %s4189_s12), 287 }
  0x38   : > { %1060 = vmatprep.subr.mxu0 %v3434_v0  ;;  %3258 = vmatprep.subr.mxu1 %v3434_v0  ;;  %v251_v19 = vld [vmem:[%s4756_s1 + $0x48] sm:$0xff]  ;;  %v300_v20 = vadd.f32 %v252_v16, %v204_v15  ;;  %v250_v22 = vld [vmem:[%s4756_s1 + $0x40] sm:$0xff]  ;;  %v201_v24 = vld [vmem:[%s4755_s0 + $0x38] sm:$0xff]  ;;  %s2846_s15 = sshll.u32 %s4822_s12, 3 }
  0x39   : > { %1061 = vmatpush1.msra.mxu0 %v304_v8  ;;  %3290 = vmatpush1.msra.mxu1 %v304_v8  ;;  %v299_v23 = vadd.f32 %v251_v19, %v203_v18  ;;  %v249_v25 = vld [vmem:[%s4756_s1 + $0x38] sm:$0xff]  ;;  %v298_v26 = vadd.f32 %v250_v22, %v202_v21  ;;  %v200_v27 = vld [vmem:[%s4755_s0 + $0x30] sm:$0xff]  ;;  %v199_v30 = vld [vmem:[%s4755_s0 + $0x28] sm:$0xff]  ;;  %s4220_s19 = scalar_lea.vmem %s4758_s3, %s2846_s15 }
  0x3a   : > { %1062 = vmatprep.subr.mxu0 %v3434_v0  ;;  %3259 = vmatprep.subr.mxu1 %v3434_v0  ;;  %v248_v28 = vld [vmem:[%s4756_s1 + $0x30] sm:$0xff]  ;;  %v297_v29 = vadd.f32 %v249_v25, %v201_v24  ;;  %v247_v31 = vld [vmem:[%s4756_s1 + $0x28] sm:$0xff]  ;;  %v198_v33 = vld [vmem:[%s4755_s0 + $0x20] sm:$0xff] }
  0x3b   : > { %1063 = vmatpush1.msra.mxu0 %v303_v11  ;;  %3291 = vmatpush1.msra.mxu1 %v303_v11  ;;  %v296_v32 = vadd.f32 %v248_v28, %v200_v27  ;;  %v246_v34 = vld [vmem:[%s4756_s1 + $0x20] sm:$0xff]  ;;  %v295_v35 = vadd.f32 %v247_v31, %v199_v30  ;;  %v197_v36 = vld [vmem:[%s4755_s0 + $0x18] sm:$0xff]  ;;  %v196_v39 = vld [vmem:[%s4755_s0 + $0x10] sm:$0xff] }
  0x3c   : > { %1064 = vmatprep.subr.mxu0 %v3434_v0  ;;  %3260 = vmatprep.subr.mxu1 %v3434_v0  ;;  %v245_v37 = vld [vmem:[%s4756_s1 + $0x18] sm:$0xff]  ;;  %v294_v38 = vadd.f32 %v246_v34, %v198_v33  ;;  %v244_v40 = vld [vmem:[%s4756_s1 + $0x10] sm:$0xff]  ;;  %v195_v42 = vld [vmem:[%s4755_s0 + $0x8] sm:$0xff] }
  0x3d   : > { %1065 = vmatpush1.msra.mxu0 %v302_v14  ;;  %3292 = vmatpush1.msra.mxu1 %v302_v14  ;;  %v293_v41 = vadd.f32 %v245_v37, %v197_v36  ;;  %v243_v43 = vld [vmem:[%s4756_s1 + $0x8] sm:$0xff]  ;;  %v292_v44 = vadd.f32 %v244_v40, %v196_v39  ;;  %v194_v45 = vld [vmem:[%s4755_s0] sm:$0xff]  ;;  %v225_v48 = vld [vmem:[%s4755_s0 + $0xf8] sm:$0xff] }
  0x3e   : > { %1066 = vmatprep.subr.mxu0 %v3434_v0  ;;  %3261 = vmatprep.subr.mxu1 %v3434_v0  ;;  %v242_v46 = vld [vmem:[%s4756_s1] sm:$0xff]  ;;  %v291_v47 = vadd.f32 %v243_v43, %v195_v42  ;;  %v273_v49 = vld [vmem:[%s4756_s1 + $0xf8] sm:$0xff]  ;;  %v224_v51 = vld [vmem:[%s4755_s0 + $0xf0] sm:$0xff] }
  0x3f   : > { %1067 = vmatpush1.msra.mxu0 %v301_v17  ;;  %3293 = vmatpush1.msra.mxu1 %v301_v17  ;;  %v290_v50 = vadd.f32 %v242_v46, %v194_v45  ;;  %v272_v52 = vld [vmem:[%s4756_s1 + $0xf0] sm:$0xff]  ;;  %v321_v53 = vadd.f32 %v273_v49, %v225_v48  ;;  %v223_v54 = vld [vmem:[%s4755_s0 + $0xe8] sm:$0xff]  ;;  %v222_v57 = vld [vmem:[%s4755_s0 + $0xe0] sm:$0xff] }
  0x40   : > { %1068 = vmatprep.subr.mxu0 %v3434_v0  ;;  %3262 = vmatprep.subr.mxu1 %v3434_v0  ;;  %v271_v55 = vld [vmem:[%s4756_s1 + $0xe8] sm:$0xff]  ;;  %v320_v56 = vadd.f32 %v272_v52, %v224_v51  ;;  %v270_v58 = vld [vmem:[%s4756_s1 + $0xe0] sm:$0xff]  ;;  %v221_v60 = vld [vmem:[%s4755_s0 + $0xd8] sm:$0xff] }
  0x41   : > { %1069 = vmatpush1.msra.mxu0 %v300_v20  ;;  %3294 = vmatpush1.msra.mxu1 %v300_v20  ;;  %v319_v59 = vadd.f32 %v271_v55, %v223_v54  ;;  %v269_v61 = vld [vmem:[%s4756_s1 + $0xd8] sm:$0xff]  ;;  %v318_v62 = vadd.f32 %v270_v58, %v222_v57  ;;  %v220_v63 = vld [vmem:[%s4755_s0 + $0xd0] sm:$0xff]  ;;  %v219_v3 = vld [vmem:[%s4755_s0 + $0xc8] sm:$0xff] }
  0x42   : > { %1070 = vmatprep.subr.mxu0 %v3434_v0  ;;  %3263 = vmatprep.subr.mxu1 %v3434_v0  ;;  %v268_v1 = vld [vmem:[%s4756_s1 + $0xd0] sm:$0xff]  ;;  %v317_v2 = vadd.f32 %v269_v61, %v221_v60  ;;  %v267_v4 = vld [vmem:[%s4756_s1 + $0xc8] sm:$0xff]  ;;  %v218_v6 = vld [vmem:[%s4755_s0 + $0xc0] sm:$0xff] }
  0x43   : > { %1071 = vmatpush1.msra.mxu0 %v299_v23  ;;  %3295 = vmatpush1.msra.mxu1 %v299_v23  ;;  %v316_v5 = vadd.f32 %v268_v1, %v220_v63  ;;  %v266_v7 = vld [vmem:[%s4756_s1 + $0xc0] sm:$0xff]  ;;  %v315_v8 = vadd.f32 %v267_v4, %v219_v3  ;;  %v217_v9 = vld [vmem:[%s4755_s0 + $0xb8] sm:$0xff]  ;;  %v216_v12 = vld [vmem:[%s4755_s0 + $0xb0] sm:$0xff] }
  0x44   : > { %1072 = vmatprep.subr.mxu0 %v3434_v0  ;;  %3264 = vmatprep.subr.mxu1 %v3434_v0  ;;  %v265_v10 = vld [vmem:[%s4756_s1 + $0xb8] sm:$0xff]  ;;  %v314_v11 = vadd.f32 %v266_v7, %v218_v6  ;;  %v264_v13 = vld [vmem:[%s4756_s1 + $0xb0] sm:$0xff]  ;;  %v215_v15 = vld [vmem:[%s4755_s0 + $0xa8] sm:$0xff] }
  0x45   : > { %1073 = vmatpush1.msra.mxu0 %v298_v26  ;;  %3296 = vmatpush1.msra.mxu1 %v298_v26  ;;  %v313_v14 = vadd.f32 %v265_v10, %v217_v9  ;;  %v263_v16 = vld [vmem:[%s4756_s1 + $0xa8] sm:$0xff]  ;;  %v312_v17 = vadd.f32 %v264_v13, %v216_v12  ;;  %v214_v18 = vld [vmem:[%s4755_s0 + $0xa0] sm:$0xff]  ;;  %v213_v21 = vld [vmem:[%s4755_s0 + $0x98] sm:$0xff] }
  0x46   : > { %1074 = vmatprep.subr.mxu0 %v3434_v0  ;;  %3265 = vmatprep.subr.mxu1 %v3434_v0  ;;  %v262_v19 = vld [vmem:[%s4756_s1 + $0xa0] sm:$0xff]  ;;  %v311_v20 = vadd.f32 %v263_v16, %v215_v15  ;;  %v261_v22 = vld [vmem:[%s4756_s1 + $0x98] sm:$0xff]  ;;  %v212_v24 = vld [vmem:[%s4755_s0 + $0x90] sm:$0xff] }
  0x47   : > { %1075 = vmatpush1.msra.mxu0 %v297_v29  ;;  %3297 = vmatpush1.msra.mxu1 %v297_v29  ;;  %v310_v23 = vadd.f32 %v262_v19, %v214_v18  ;;  %v260_v25 = vld [vmem:[%s4756_s1 + $0x90] sm:$0xff]  ;;  %v309_v26 = vadd.f32 %v261_v22, %v213_v21  ;;  %v211_v27 = vld [vmem:[%s4755_s0 + $0x88] sm:$0xff]  ;;  %v210_v30 = vld [vmem:[%s4755_s0 + $0x80] sm:$0xff] }
  0x48   : > { %1076 = vmatprep.subr.mxu0 %v3434_v0  ;;  %3266 = vmatprep.subr.mxu1 %v3434_v0  ;;  %v259_v28 = vld [vmem:[%s4756_s1 + $0x88] sm:$0xff]  ;;  %v308_v29 = vadd.f32 %v260_v25, %v212_v24  ;;  %v258_v31 = vld [vmem:[%s4756_s1 + $0x80] sm:$0xff]  ;;  %v554_v34 = vld [vmem:[%s3531_s29 + $0x510] sm:$0xff] }
  0x49   : > { %1077 = vmatpush1.msra.mxu0 %v296_v32  ;;  %3298 = vmatpush1.msra.mxu1 %v296_v32  ;;  %v307_v32 = vadd.f32 %v259_v28, %v211_v27  ;;  %v338_v33 = vld [vmem:[%s3531_s29] sm:$0xff]  ;;  %v241_v36 = vld [vmem:[%s4755_s0 + $0x178] sm:$0xff]  ;;  %v951_v40 = vunpack.c.h.bf16 %v554_v34  ;;  %v950_v43 = vunpack.c.l.bf16 %v554_v34  ;;  %v288_v45 = vld [vmem:[%s4756_s1 + $0x170] sm:$0xff] }
  0x4a   : > { %1078 = vmatprep.subr.mxu0 %v3434_v0  ;;  %3267 = vmatprep.subr.mxu1 %v3434_v0  ;;  %v289_v37 = vld [vmem:[%s4756_s1 + $0x178] sm:$0xff]  ;;  %v627_v39 = vunpack.c.h.bf16 %v338_v33  ;;  %v626_v42 = vunpack.c.l.bf16 %v338_v33  ;;  %v287_v54 = vld [vmem:[%s4756_s1 + $0x168] sm:$0xff]  ;;  %v286_v63 = vld [vmem:[%s4756_s1 + $0x160] sm:$0xff] }
  0x4b   : > { %1079 = vmatpush1.msra.mxu0 %v295_v35  ;;  %3299 = vmatpush1.msra.mxu1 %v295_v35  ;;  %v306_v35 = vadd.f32 %v258_v31, %v210_v30  ;;  %v337_v46 = vadd.f32 %v289_v37, %v241_v36  ;;  %v342_v49 = vld [vmem:[%s3531_s29 + $0x18] sm:$0xff]  ;;  %v344_v57 = vld [vmem:[%s3531_s29 + $0x24] sm:$0xff]  ;;  %v346_v3 = vld [vmem:[%s3531_s29 + $0x30] sm:$0xff] }
  0x4c   : > { %1080 = vmatprep.subr.mxu0 %v3434_v0  ;;  %3268 = vmatprep.subr.mxu1 %v3434_v0  ;;  %v633_v55 = vunpack.c.h.bf16 %v342_v49  ;;  %v560_v58 = vld [vmem:[%s3531_s29 + $0x534] sm:$0xff]  ;;  %v632_v60 = vunpack.c.l.bf16 %v342_v49  ;;  %v636_v1 = vunpack.c.h.bf16 %v344_v57  ;;  %v562_v4 = vld [vmem:[%s3531_s29 + $0x540] sm:$0xff]  ;;  %v635_v6 = vunpack.c.l.bf16 %v344_v57  ;;  %v564_v13 = vld [vmem:[%s3531_s29 + $0x54c] sm:$0xff] }
  0x4d   : > { %1081 = vmatpush1.msra.mxu0 %v294_v38  ;;  %3300 = vmatpush1.msra.mxu1 %v294_v38  ;;  %v340_v38 = vld [vmem:[%s3531_s29 + $0xc] sm:$0xff]  ;;  %v959_v7 = vunpack.c.l.bf16 %v560_v58  ;;  %v285_v9 = vld [vmem:[%s4756_s1 + $0x158] sm:$0xff]  ;;  %v639_v10 = vunpack.c.h.bf16 %v346_v3  ;;  %v638_v15 = vunpack.c.l.bf16 %v346_v3  ;;  %v962_v16 = vunpack.c.l.bf16 %v562_v4  ;;  %v568_v31 = vld [vmem:[%s3531_s29 + $0x564] sm:$0xff] }
  0x4e   : > { %1082 = vmatprep.subr.mxu0 %v3434_v0  ;;  %3269 = vmatprep.subr.mxu1 %v3434_v0  ;;  %v629_v52 = vunpack.c.l.bf16 %v340_v38  ;;  %v348_v12 = vld [vmem:[%s3531_s29 + $0x3c] sm:$0xff]  ;;  %v284_v18 = vld [vmem:[%s4756_s1 + $0x150] sm:$0xff]  ;;  %v350_v21 = vld [vmem:[%s3531_s29 + $0x48] sm:$0xff]  ;;  %v965_v25 = vunpack.c.l.bf16 %v564_v13 }
  0x4f   : > { %1083 = vmatpush1.msra.mxu0 %v293_v41  ;;  %3301 = vmatpush1.msra.mxu1 %v293_v41  ;;  %v556_v41 = vld [vmem:[%s3531_s29 + $0x51c] sm:$0xff]  ;;  %v642_v19 = vunpack.c.h.bf16 %v348_v12  ;;  %v641_v24 = vunpack.c.l.bf16 %v348_v12  ;;  %v283_v27 = vld [vmem:[%s4756_s1 + $0x148] sm:$0xff]  ;;  %v645_v28 = vunpack.c.h.bf16 %v350_v21  ;;  %v352_v30 = vld [vmem:[%s3531_s29 + $0x54] sm:$0xff]  ;;  %v644_v33 = vunpack.c.l.bf16 %v350_v21 }
  0x50   : > { %1084 = vmatprep.subr.mxu0 %v3434_v0  ;;  %3270 = vmatprep.subr.mxu1 %v3434_v0  ;;  %v954_v48 = vunpack.c.h.bf16 %v556_v41  ;;  %v566_v22 = vld [vmem:[%s3531_s29 + $0x558] sm:$0xff]  ;;  %v282_v36 = vld [vmem:[%s4756_s1 + $0x140] sm:$0xff]  ;;  %v648_v37 = vunpack.c.h.bf16 %v352_v30  ;;  %v574_v57 = vld [vmem:[%s3531_s29 + $0x588] sm:$0xff] }
  0x51   : > { %1085 = vmatpush1.msra.mxu0 %v292_v44  ;;  %3302 = vmatpush1.msra.mxu1 %v292_v44  ;;  %v240_v44 = vld [vmem:[%s4755_s0 + $0x170] sm:$0xff]  ;;  %v968_v34 = vunpack.c.l.bf16 %v566_v22  ;;  %v572_v49 = vld [vmem:[%s3531_s29 + $0x57c] sm:$0xff] }
  0x52   : > { %1086 = vmatprep.subr.mxu0 %v3434_v0  ;;  %3271 = vmatprep.subr.mxu1 %v3434_v0  ;;  %v336_v51 = vadd.f32 %v288_v45, %v240_v44  ;;  %v233_v44 = vld [vmem:[%s4755_s0 + $0x138] sm:$0xff]  ;;  %v578_v12 = vld [vmem:[%s3531_s29 + $0x5a0] sm:$0xff]  ;;  %v580_v21 = vld [vmem:[%s3531_s29 + $0x5ac] sm:$0xff] }
  0x53   : > { %1087 = vmatpush1.msra.mxu0 %v291_v47  ;;  %3303 = vmatpush1.msra.mxu1 %v291_v47  ;;  %v630_v47 = vunpack.c.h.bf16 %v340_v38  ;;  %v972_v38 = vunpack.c.h.bf16 %v568_v31  ;;  %v281_v45 = vld [vmem:[%s4756_s1 + $0x138] sm:$0xff] }
  0x54   : > { %1088 = vmatprep.subr.mxu0 %v3434_v0  ;;  %3272 = vmatprep.subr.mxu1 %v3434_v0  ;;  %v576_v3 = vld [vmem:[%s3531_s29 + $0x594] sm:$0xff] }
  0x55   : > { %1089 = vmatpush1.msra.mxu0 %v290_v50  ;;  %3304 = vmatpush1.msra.mxu1 %v290_v50  ;;  %v558_v50 = vld [vmem:[%s3531_s29 + $0x528] sm:$0xff] }
  0x56   : > { %1090 = vmatprep.subr.mxu0 %v3434_v0  ;;  %3273 = vmatprep.subr.mxu1 %v3434_v0  ;;  %v956_v61 = vunpack.c.l.bf16 %v558_v50 }
  0x57   : > { %1091 = vmatpush2.msra.mxu0 %v321_v53  ;;  %3305 = vmatpush2.msra.mxu1 %v321_v53  ;;  %v953_v53 = vunpack.c.l.bf16 %v556_v41 }
  0x58   : > { %1092 = vmatprep.subr.mxu0 %v3434_v0  ;;  %3274 = vmatprep.subr.mxu1 %v3434_v0 }
  0x59   : > { %1093 = vmatpush2.msra.mxu0 %v320_v56  ;;  %3306 = vmatpush2.msra.mxu1 %v320_v56  ;;  %v957_v56 = vunpack.c.h.bf16 %v558_v50  ;;  %v329_v50 = vadd.f32 %v281_v45, %v233_v44  ;;  %v274_v44 = vld [vmem:[%s4756_s1 + $0x100] sm:$0xff] }
  0x5a   : > { %1094 = vmatprep.subr.mxu0 %v3434_v0  ;;  %3275 = vmatprep.subr.mxu1 %v3434_v0 }
  0x5b   : > { %1095 = vmatpush2.msra.mxu0 %v319_v59  ;;  %3307 = vmatpush2.msra.mxu1 %v319_v59 }
  0x5c   : > { %1096 = vmatprep.subr.mxu0 %v3434_v0  ;;  %3276 = vmatprep.subr.mxu1 %v3434_v0 }
  0x5d   : > { %1097 = vmatpush2.msra.mxu0 %v318_v62  ;;  %3308 = vmatpush2.msra.mxu1 %v318_v62  ;;  %v238_v62 = vld [vmem:[%s4755_s0 + $0x160] sm:$0xff] }
  0x5e   : > { %1098 = vmatprep.subr.mxu0 %v3434_v0  ;;  %3277 = vmatprep.subr.mxu1 %v3434_v0 }
  0x5f   : > { %1099 = vmatpush2.msra.mxu0 %v317_v2  ;;  %3309 = vmatpush2.msra.mxu1 %v317_v2  ;;  %v960_v2 = vunpack.c.h.bf16 %v560_v58 }
  0x60   : > { %1100 = vmatprep.subr.mxu0 %v3434_v0  ;;  %3278 = vmatprep.subr.mxu1 %v3434_v0 }
  0x61   : > { %1101 = vmatpush2.msra.mxu0 %v316_v5  ;;  %3310 = vmatpush2.msra.mxu1 %v316_v5  ;;  %v334_v5 = vadd.f32 %v286_v63, %v238_v62  ;;  %v279_v62 = vld [vmem:[%s4756_s1 + $0x128] sm:$0xff] }
  0x62   : > { %1102 = vmatprep.subr.mxu0 %v3434_v0  ;;  %3279 = vmatprep.subr.mxu1 %v3434_v0 }
  0x63   : > { %1103 = vmatpush2.msra.mxu0 %v315_v8  ;;  %3311 = vmatpush2.msra.mxu1 %v315_v8  ;;  %v237_v8 = vld [vmem:[%s4755_s0 + $0x158] sm:$0xff] }
  0x64   : > { %1104 = vmatprep.subr.mxu0 %v3434_v0  ;;  %3280 = vmatprep.subr.mxu1 %v3434_v0 }
  0x65   : > { %1105 = vmatpush2.msra.mxu0 %v314_v11  ;;  %3312 = vmatpush2.msra.mxu1 %v314_v11  ;;  %v963_v11 = vunpack.c.h.bf16 %v562_v4 }
  0x66   : > { %1106 = vmatprep.subr.mxu0 %v3434_v0  ;;  %3281 = vmatprep.subr.mxu1 %v3434_v0 }
  0x67   : > { %1107 = vmatpush2.msra.mxu0 %v313_v14  ;;  %3313 = vmatpush2.msra.mxu1 %v313_v14  ;;  %v333_v14 = vadd.f32 %v285_v9, %v237_v8  ;;  %v278_v8 = vld [vmem:[%s4756_s1 + $0x120] sm:$0xff] }
  0x68   : > { %1108 = vmatprep.subr.mxu0 %v3434_v0  ;;  %3282 = vmatprep.subr.mxu1 %v3434_v0 }
  0x69   : > { %1109 = vmatpush2.msra.mxu0 %v312_v17  ;;  %3314 = vmatpush2.msra.mxu1 %v312_v17  ;;  %v236_v17 = vld [vmem:[%s4755_s0 + $0x150] sm:$0xff] }
  0x6a   : > { %1110 = vmatprep.subr.mxu0 %v3434_v0  ;;  %3283 = vmatprep.subr.mxu1 %v3434_v0 }
  0x6b   : > { %1111 = vmatpush2.msra.mxu0 %v311_v20  ;;  %3315 = vmatpush2.msra.mxu1 %v311_v20  ;;  %v966_v20 = vunpack.c.h.bf16 %v564_v13 }
  0x6c   : > { %1112 = vmatprep.subr.mxu0 %v3434_v0  ;;  %3284 = vmatprep.subr.mxu1 %v3434_v0 }
  0x6d   : > { %1113 = vmatpush2.msra.mxu0 %v310_v23  ;;  %3316 = vmatpush2.msra.mxu1 %v310_v23  ;;  %v332_v23 = vadd.f32 %v284_v18, %v236_v17  ;;  %v277_v17 = vld [vmem:[%s4756_s1 + $0x118] sm:$0xff] }
  0x6e   : > { %1114 = vmatprep.subr.mxu0 %v3434_v0  ;;  %3285 = vmatprep.subr.mxu1 %v3434_v0 }
  0x6f   : > { %1115 = vmatpush2.msra.mxu0 %v309_v26  ;;  %3317 = vmatpush2.msra.mxu1 %v309_v26  ;;  %v235_v26 = vld [vmem:[%s4755_s0 + $0x148] sm:$0xff] }
  0x70   : > { %1116 = vmatprep.subr.mxu0 %v3434_v0  ;;  %3286 = vmatprep.subr.mxu1 %v3434_v0 }
  0x71   : > { %1117 = vmatpush2.msra.mxu0 %v308_v29  ;;  %3318 = vmatpush2.msra.mxu1 %v308_v29  ;;  %v969_v29 = vunpack.c.h.bf16 %v566_v22 }
  0x72   : > { %1118 = vmatprep.subr.mxu0 %v3434_v0  ;;  %3287 = vmatprep.subr.mxu1 %v3434_v0 }
  0x73   : > { %1119 = vmatpush2.msra.mxu0 %v307_v32  ;;  %3319 = vmatpush2.msra.mxu1 %v307_v32  ;;  %v331_v32 = vadd.f32 %v283_v27, %v235_v26  ;;  %v276_v26 = vld [vmem:[%s4756_s1 + $0x110] sm:$0xff] }
  0x74   : > { %1120 = vmatprep.subr.mxu0 %v3434_v0  ;;  %3288 = vmatprep.subr.mxu1 %v3434_v0  ;;  %v239_v0 = vld [vmem:[%s4755_s0 + $0x168] sm:$0xff] }
  0x75   : > { %1121 = vmatpush2.msra.mxu0 %v306_v35  ;;  %3320 = vmatpush2.msra.mxu1 %v306_v35  ;;  %v335_v59 = vadd.f32 %v287_v54, %v239_v0  ;;  %v234_v35 = vld [vmem:[%s4755_s0 + $0x140] sm:$0xff]  ;;  %v280_v0 = vld [vmem:[%s4756_s1 + $0x130] sm:$0xff] }
  0x76   : > { %1122 = vmatprep.mubr.f32.mxu0 %v627_v39  ;;  %1662 = vmatprep.mubr.f32.mxu1 %v951_v40  ;;  %v354_v39 = vld [vmem:[%s3531_s29 + $0x60] sm:$0xff]  ;;  %v570_v40 = vld [vmem:[%s3531_s29 + $0x570] sm:$0xff]  ;;  %v330_v41 = vadd.f32 %v282_v36, %v234_v35  ;;  %v275_v35 = vld [vmem:[%s4756_s1 + $0x108] sm:$0xff] }
  0x77   : > { %1123 = vmatmul.mubr.f32.vlgmr.msra.gmra.mxu0 %v626_v42  ;;  %1663 = vmatmul.mubr.f32.vlgmr.msra.gmra.mxu1 %v950_v43  ;;  %v647_v42 = vunpack.c.l.bf16 %v352_v30  ;;  %v971_v43 = vunpack.c.l.bf16 %v568_v31  ;;  %v582_v30 = vld [vmem:[%s3531_s29 + $0x5b8] sm:$0xff] }
  0x78   : > { %3009 = vmatprep.subr.mxu1 %v337_v46  ;;  %1127 = vmatprep.mubr.f32.mxu0 %v630_v47  ;;  %v975_v47 = vunpack.c.h.bf16 %v570_v40 }
  0x79   : > { %3010 = vmatpush3.msra.mxu1 %v337_v46  ;;  %1667 = vmatprep.mubr.f32.mxu1 %v954_v48  ;;  %v651_v46 = vunpack.c.h.bf16 %v354_v39  ;;  %v356_v48 = vld [vmem:[%s3531_s29 + $0x6c] sm:$0xff] }
  0x7a   : > { %3011 = vmatprep.subr.mxu1 %v336_v51  ;;  %v654_v54 = vunpack.c.h.bf16 %v356_v48 }
  0x7b   : > { %1128 = vmatmul.mubr.f32.gmra.mxu0 %v629_v52  ;;  %1668 = vmatmul.mubr.f32.gmra.mxu1 %v953_v53  ;;  %v974_v52 = vunpack.c.l.bf16 %v570_v40  ;;  %v232_v53 = vld [vmem:[%s4755_s0 + $0x130] sm:$0xff] }
  0x7c   : > { %1132 = vmatprep.mubr.f32.mxu0 %v633_v55  ;;  %1672 = vmatprep.mubr.f32.mxu1 %v957_v56  ;;  %v978_v55 = vunpack.c.h.bf16 %v572_v49  ;;  %v358_v56 = vld [vmem:[%s3531_s29 + $0x78] sm:$0xff]  ;;  %v328_v58 = vadd.f32 %v280_v0, %v232_v53  ;;  %v372_v0 = vld [vmem:[%s3531_s29 + $0xcc] sm:$0xff] }
  0x7d   : > { %3012 = vmatpush3.msra.mxu1 %v336_v51  ;;  %v650_v51 = vunpack.c.l.bf16 %v354_v39  ;;  %v657_v63 = vunpack.c.h.bf16 %v358_v56  ;;  %v584_v39 = vld [vmem:[%s3531_s29 + $0x5c4] sm:$0xff] }
  0x7e   : > { %3013 = vmatprep.subr.mxu1 %v335_v59 }
  0x7f   : > { %1133 = vmatmul.mubr.f32.gmra.mxu0 %v632_v60  ;;  %1673 = vmatmul.mubr.f32.gmra.mxu1 %v956_v61  ;;  %v977_v60 = vunpack.c.l.bf16 %v572_v49  ;;  %v231_v61 = vld [vmem:[%s4755_s0 + $0x128] sm:$0xff] }
  0x80   : > { %1137 = vmatprep.mubr.f32.mxu0 %v636_v1  ;;  %1677 = vmatprep.mubr.f32.mxu1 %v960_v2  ;;  %v981_v1 = vunpack.c.h.bf16 %v574_v57  ;;  %v360_v2 = vld [vmem:[%s3531_s29 + $0x84] sm:$0xff]  ;;  %v327_v4 = vadd.f32 %v279_v62, %v231_v61  ;;  %v677_v61 = vunpack.c.l.bf16 %v372_v0 }
  0x81   : > { %3014 = vmatpush3.msra.mxu1 %v335_v59  ;;  %v653_v59 = vunpack.c.l.bf16 %v356_v48  ;;  %v660_v9 = vunpack.c.h.bf16 %v360_v2  ;;  %v586_v48 = vld [vmem:[%s3531_s29 + $0x5d0] sm:$0xff] }
  0x82   : > { %3015 = vmatprep.subr.mxu1 %v334_v5  ;;  %v999_v53 = vunpack.c.h.bf16 %v586_v48 }
  0x83   : > { %1138 = vmatmul.mubr.f32.gmra.mxu0 %v635_v6  ;;  %1678 = vmatmul.mubr.f32.gmra.mxu1 %v959_v7  ;;  %v980_v6 = vunpack.c.l.bf16 %v574_v57  ;;  %v230_v7 = vld [vmem:[%s4755_s0 + $0x120] sm:$0xff]  ;;  %v678_v57 = vunpack.c.h.bf16 %v372_v0 }
  0x84   : > { %1142 = vmatprep.mubr.f32.mxu0 %v639_v10  ;;  %1682 = vmatprep.mubr.f32.mxu1 %v963_v11  ;;  %v984_v10 = vunpack.c.h.bf16 %v576_v3  ;;  %v362_v11 = vld [vmem:[%s3531_s29 + $0x90] sm:$0xff]  ;;  %v326_v13 = vadd.f32 %v278_v8, %v230_v7 }
  0x85   : > { %3016 = vmatpush3.msra.mxu1 %v334_v5  ;;  %v656_v5 = vunpack.c.l.bf16 %v358_v56  ;;  %v663_v18 = vunpack.c.h.bf16 %v362_v11  ;;  %v998_v56 = vunpack.c.l.bf16 %v586_v48  ;;  %v378_v8 = vld [vmem:[%s3531_s29 + $0xf0] sm:$0xff] }
  0x86   : > { %3017 = vmatprep.subr.mxu1 %v333_v14 }
  0x87   : > { %1143 = vmatmul.mubr.f32.gmra.mxu0 %v638_v15  ;;  %1683 = vmatmul.mubr.f32.gmra.mxu1 %v962_v16  ;;  %v983_v15 = vunpack.c.l.bf16 %v576_v3  ;;  %v229_v16 = vld [vmem:[%s4755_s0 + $0x118] sm:$0xff] }
  0x88   : > { %1147 = vmatprep.mubr.f32.mxu0 %v642_v19  ;;  %1687 = vmatprep.mubr.f32.mxu1 %v966_v20  ;;  %v987_v19 = vunpack.c.h.bf16 %v578_v12  ;;  %v364_v20 = vld [vmem:[%s3531_s29 + $0x9c] sm:$0xff]  ;;  %v325_v22 = vadd.f32 %v277_v17, %v229_v16  ;;  %v592_v3 = vld [vmem:[%s3531_s29 + $0x5f4] sm:$0xff]  ;;  %v686_v16 = vunpack.c.l.bf16 %v378_v8 }
  0x89   : > { %3018 = vmatpush3.msra.mxu1 %v333_v14  ;;  %v659_v14 = vunpack.c.l.bf16 %v360_v2  ;;  %v666_v27 = vunpack.c.h.bf16 %v364_v20  ;;  %v376_v2 = vld [vmem:[%s3531_s29 + $0xe4] sm:$0xff]  ;;  %v1008_v7 = vunpack.c.h.bf16 %v592_v3 }
  0x8a   : > { %3019 = vmatprep.subr.mxu1 %v332_v23 }
  0x8b   : > { %1148 = vmatmul.mubr.f32.gmra.mxu0 %v641_v24  ;;  %1688 = vmatmul.mubr.f32.gmra.mxu1 %v965_v25  ;;  %v986_v24 = vunpack.c.l.bf16 %v578_v12  ;;  %v228_v25 = vld [vmem:[%s4755_s0 + $0x110] sm:$0xff]  ;;  %v687_v12 = vunpack.c.h.bf16 %v378_v8 }
  0x8c   : > { %1152 = vmatprep.mubr.f32.mxu0 %v645_v28  ;;  %1692 = vmatprep.mubr.f32.mxu1 %v969_v29  ;;  %v990_v28 = vunpack.c.h.bf16 %v580_v21  ;;  %v366_v29 = vld [vmem:[%s3531_s29 + $0xa8] sm:$0xff]  ;;  %v324_v31 = vadd.f32 %v276_v26, %v228_v25  ;;  %v384_v26 = vld [vmem:[%s3531_s29 + $0x114] sm:$0xff] }
  0x8d   : > { %3020 = vmatpush3.msra.mxu1 %v332_v23  ;;  %v662_v23 = vunpack.c.l.bf16 %v362_v11  ;;  %v669_v36 = vunpack.c.h.bf16 %v366_v29  ;;  %v1007_v11 = vunpack.c.l.bf16 %v592_v3 }
  0x8e   : > { %3021 = vmatprep.subr.mxu1 %v331_v32 }
  0x8f   : > { %1153 = vmatmul.mubr.f32.gmra.mxu0 %v644_v33  ;;  %1693 = vmatmul.mubr.f32.gmra.mxu1 %v968_v34  ;;  %v989_v33 = vunpack.c.l.bf16 %v580_v21  ;;  %v227_v34 = vld [vmem:[%s4755_s0 + $0x108] sm:$0xff]  ;;  %v598_v21 = vld [vmem:[%s3531_s29 + $0x618] sm:$0xff] }
  0x90   : > { %1157 = vmatprep.mubr.f32.mxu0 %v648_v37  ;;  %1697 = vmatprep.mubr.f32.mxu1 %v972_v38  ;;  %v993_v37 = vunpack.c.h.bf16 %v582_v30  ;;  %v368_v38 = vld [vmem:[%s3531_s29 + $0xb4] sm:$0xff]  ;;  %v323_v40 = vadd.f32 %v275_v35, %v227_v34  ;;  %v1017_v25 = vunpack.c.h.bf16 %v598_v21  ;;  %v695_v34 = vunpack.c.l.bf16 %v384_v26 }
  0x91   : > { %3022 = vmatpush3.msra.mxu1 %v331_v32  ;;  %v665_v32 = vunpack.c.l.bf16 %v364_v20  ;;  %v672_v45 = vunpack.c.h.bf16 %v368_v38  ;;  %v382_v20 = vld [vmem:[%s3531_s29 + $0x108] sm:$0xff] }
  0x92   : > { %3023 = vmatprep.subr.mxu1 %v330_v41 }
  0x93   : > { %1158 = vmatmul.mubr.f32.gmra.mxu0 %v647_v42  ;;  %1698 = vmatmul.mubr.f32.gmra.mxu1 %v971_v43  ;;  %v992_v42 = vunpack.c.l.bf16 %v582_v30  ;;  %v226_v43 = vld [vmem:[%s4755_s0 + $0x100] sm:$0xff]  ;;  %v696_v30 = vunpack.c.h.bf16 %v384_v26 }
  0x94   : > { %1162 = vmatprep.mubr.f32.mxu0 %v651_v46  ;;  %1702 = vmatprep.mubr.f32.mxu1 %v975_v47  ;;  %v996_v46 = vunpack.c.h.bf16 %v584_v39  ;;  %v370_v47 = vld [vmem:[%s3531_s29 + $0xc0] sm:$0xff]  ;;  %v322_v49 = vadd.f32 %v274_v44, %v226_v43  ;;  %v390_v44 = vld [vmem:[%s3531_s29 + $0x138] sm:$0xff] }
  0x95   : > { %3024 = vmatpush3.msra.mxu1 %v330_v41  ;;  %v668_v41 = vunpack.c.l.bf16 %v366_v29  ;;  %v1016_v29 = vunpack.c.l.bf16 %v598_v21  ;;  %v705_v48 = vunpack.c.h.bf16 %v390_v44 }
  0x96   : > { %3025 = vmatprep.subr.mxu1 %v329_v50 }
  0x97   : > { %1163 = vmatmul.mubr.f32.gmra.mxu0 %v650_v51  ;;  %1703 = vmatmul.mubr.f32.gmra.mxu1 %v974_v52  ;;  %v995_v51 = vunpack.c.l.bf16 %v584_v39  ;;  %v675_v52 = vunpack.c.h.bf16 %v370_v47  ;;  %v604_v39 = vld [vmem:[%s3531_s29 + $0x63c] sm:$0xff] }
  0x98   : > { %1167 = vmatprep.mubr.f32.mxu0 %v654_v54  ;;  %1707 = vmatprep.mubr.f32.mxu1 %v978_v55  ;;  %v588_v54 = vld [vmem:[%s3531_s29 + $0x5dc] sm:$0xff]  ;;  %v674_v55 = vunpack.c.l.bf16 %v370_v47  ;;  %v1026_v43 = vunpack.c.h.bf16 %v604_v39  ;;  %v1025_v47 = vunpack.c.l.bf16 %v604_v39 }
  0x99   : > { %3026 = vmatpush3.msra.mxu1 %v329_v50  ;;  %v671_v50 = vunpack.c.l.bf16 %v368_v38  ;;  %v1001_v62 = vunpack.c.l.bf16 %v588_v54  ;;  %v388_v38 = vld [vmem:[%s3531_s29 + $0x12c] sm:$0xff] }
  0x9a   : > { %3027 = vmatprep.subr.mxu1 %v328_v58 }
  0x9b   : > { %1168 = vmatmul.mubr.f32.gmra.mxu0 %v653_v59  ;;  %1708 = vmatmul.mubr.f32.gmra.mxu1 %v977_v60  ;;  %v374_v59 = vld [vmem:[%s3531_s29 + $0xd8] sm:$0xff]  ;;  %v590_v60 = vld [vmem:[%s3531_s29 + $0x5e8] sm:$0xff] }
  0x9c   : > { %1172 = vmatprep.mubr.f32.mxu0 %v657_v63  ;;  %1712 = vmatprep.mubr.f32.mxu1 %v981_v1  ;;  %v681_v63 = vunpack.c.h.bf16 %v374_v59  ;;  %v1005_v1 = vunpack.c.h.bf16 %v590_v60 }
  0x9d   : > { %3028 = vmatpush3.msra.mxu1 %v328_v58  ;;  %v1002_v58 = vunpack.c.h.bf16 %v588_v54 }
  0x9e   : > { %3029 = vmatprep.subr.mxu1 %v327_v4 }
  0x9f   : > { %1173 = vmatmul.mubr.f32.gmra.mxu0 %v656_v5  ;;  %1713 = vmatmul.mubr.f32.gmra.mxu1 %v980_v6  ;;  %v1004_v5 = vunpack.c.l.bf16 %v590_v60  ;;  %v684_v6 = vunpack.c.h.bf16 %v376_v2 }
  0xa0   : > { %1177 = vmatprep.mubr.f32.mxu0 %v660_v9  ;;  %1717 = vmatprep.mubr.f32.mxu1 %v984_v10  ;;  %v594_v9 = vld [vmem:[%s3531_s29 + $0x600] sm:$0xff]  ;;  %v683_v10 = vunpack.c.l.bf16 %v376_v2 }
  0xa1   : > { %3030 = vmatpush3.msra.mxu1 %v327_v4  ;;  %v680_v4 = vunpack.c.l.bf16 %v374_v59  ;;  %v1010_v17 = vunpack.c.l.bf16 %v594_v9 }
  0xa2   : > { %3031 = vmatprep.subr.mxu1 %v326_v13 }
  0xa3   : > { %1178 = vmatmul.mubr.f32.gmra.mxu0 %v659_v14  ;;  %1718 = vmatmul.mubr.f32.gmra.mxu1 %v983_v15  ;;  %v380_v14 = vld [vmem:[%s3531_s29 + $0xfc] sm:$0xff]  ;;  %v596_v15 = vld [vmem:[%s3531_s29 + $0x60c] sm:$0xff] }
  0xa4   : > { %1182 = vmatprep.mubr.f32.mxu0 %v663_v18  ;;  %1722 = vmatprep.mubr.f32.mxu1 %v987_v19  ;;  %v690_v18 = vunpack.c.h.bf16 %v380_v14  ;;  %v1014_v19 = vunpack.c.h.bf16 %v596_v15 }
  0xa5   : > { %3032 = vmatpush3.msra.mxu1 %v326_v13  ;;  %v1011_v13 = vunpack.c.h.bf16 %v594_v9 }
  0xa6   : > { %3033 = vmatprep.subr.mxu1 %v325_v22 }
  0xa7   : > { %1183 = vmatmul.mubr.f32.gmra.mxu0 %v662_v23  ;;  %1723 = vmatmul.mubr.f32.gmra.mxu1 %v986_v24  ;;  %v1013_v23 = vunpack.c.l.bf16 %v596_v15  ;;  %v693_v24 = vunpack.c.h.bf16 %v382_v20 }
  0xa8   : > { %1187 = vmatprep.mubr.f32.mxu0 %v666_v27  ;;  %1727 = vmatprep.mubr.f32.mxu1 %v990_v28  ;;  %v600_v27 = vld [vmem:[%s3531_s29 + $0x624] sm:$0xff]  ;;  %v692_v28 = vunpack.c.l.bf16 %v382_v20 }
  0xa9   : > { %3034 = vmatpush3.msra.mxu1 %v325_v22  ;;  %v689_v22 = vunpack.c.l.bf16 %v380_v14  ;;  %v1019_v35 = vunpack.c.l.bf16 %v600_v27 }
  0xaa   : > { %3035 = vmatprep.subr.mxu1 %v324_v31 }
  0xab   : > { %1188 = vmatmul.mubr.f32.gmra.mxu0 %v665_v32  ;;  %1728 = vmatmul.mubr.f32.gmra.mxu1 %v989_v33  ;;  %v386_v32 = vld [vmem:[%s3531_s29 + $0x120] sm:$0xff]  ;;  %v602_v33 = vld [vmem:[%s3531_s29 + $0x630] sm:$0xff] }
  0xac   : > { %1192 = vmatprep.mubr.f32.mxu0 %v669_v36  ;;  %1732 = vmatprep.mubr.f32.mxu1 %v993_v37  ;;  %v699_v36 = vunpack.c.h.bf16 %v386_v32  ;;  %v1023_v37 = vunpack.c.h.bf16 %v602_v33 }
  0xad   : > { %3036 = vmatpush3.msra.mxu1 %v324_v31  ;;  %v1020_v31 = vunpack.c.h.bf16 %v600_v27 }
  0xae   : > { %3037 = vmatprep.subr.mxu1 %v323_v40 }
  0xaf   : > { %1193 = vmatmul.mubr.f32.gmra.mxu0 %v668_v41  ;;  %1733 = vmatmul.mubr.f32.gmra.mxu1 %v992_v42  ;;  %v1022_v41 = vunpack.c.l.bf16 %v602_v33  ;;  %v702_v42 = vunpack.c.h.bf16 %v388_v38 }
  0xb0   : > { %1197 = vmatprep.mubr.f32.mxu0 %v672_v45  ;;  %1737 = vmatprep.mubr.f32.mxu1 %v996_v46  ;;  %v606_v45 = vld [vmem:[%s3531_s29 + $0x648] sm:$0xff]  ;;  %v701_v46 = vunpack.c.l.bf16 %v388_v38 }
  0xb1   : > { %3038 = vmatpush3.msra.mxu1 %v323_v40  ;;  %v698_v40 = vunpack.c.l.bf16 %v386_v32 }
  0xb2   : > { %3039 = vmatprep.subr.mxu1 %v322_v49 }
  0xb3   : > { %1198 = vmatmul.mubr.f32.gmra.mxu0 %v671_v50  ;;  %1738 = vmatmul.mubr.f32.gmra.mxu1 %v995_v51  ;;  %v392_v50 = vld [vmem:[%s3531_s29 + $0x144] sm:$0xff]  ;;  %v608_v51 = vld [vmem:[%s3531_s29 + $0x654] sm:$0xff] }
  0xb4   : > { %1202 = vmatprep.mubr.f32.mxu0 %v675_v52  ;;  %1742 = vmatprep.mubr.f32.mxu1 %v999_v53  ;;  %v704_v52 = vunpack.c.l.bf16 %v390_v44  ;;  %v1028_v53 = vunpack.c.l.bf16 %v606_v45  ;;  %v708_v0 = vunpack.c.h.bf16 %v392_v50  ;;  %v1032_v54 = vunpack.c.h.bf16 %v608_v51 }
  0xb5   : > { %3040 = vmatpush3.msra.mxu1 %v322_v49  ;;  %v1029_v49 = vunpack.c.h.bf16 %v606_v45 }
  0xb7   : > { %1203 = vmatmul.mubr.f32.gmra.mxu0 %v674_v55  ;;  %1743 = vmatmul.mubr.f32.gmra.mxu1 %v998_v56  ;;  %v394_v55 = vld [vmem:[%s3531_s29 + $0x150] sm:$0xff]  ;;  %v610_v56 = vld [vmem:[%s3531_s29 + $0x660] sm:$0xff] }
  0xb8   : > { %1207 = vmatprep.mubr.f32.mxu0 %v678_v57  ;;  %1747 = vmatprep.mubr.f32.mxu1 %v1002_v58  ;;  %v707_v57 = vunpack.c.l.bf16 %v392_v50  ;;  %v1031_v58 = vunpack.c.l.bf16 %v608_v51  ;;  %v711_v59 = vunpack.c.h.bf16 %v394_v55  ;;  %v1035_v60 = vunpack.c.h.bf16 %v610_v56 }
  0xbb   : > { %1208 = vmatmul.mubr.f32.gmra.mxu0 %v677_v61  ;;  %1748 = vmatmul.mubr.f32.gmra.mxu1 %v1001_v62  ;;  %v396_v61 = vld [vmem:[%s3531_s29 + $0x15c] sm:$0xff]  ;;  %v612_v62 = vld [vmem:[%s3531_s29 + $0x66c] sm:$0xff] }
  0xbc   : > { %1212 = vmatprep.mubr.f32.mxu0 %v681_v63  ;;  %1752 = vmatprep.mubr.f32.mxu1 %v1005_v1  ;;  %v710_v63 = vunpack.c.l.bf16 %v394_v55  ;;  %v1034_v1 = vunpack.c.l.bf16 %v610_v56  ;;  %v714_v2 = vunpack.c.h.bf16 %v396_v61  ;;  %v1038_v3 = vunpack.c.h.bf16 %v612_v62 }
  0xbf   : > { %1213 = vmatmul.mubr.f32.gmra.mxu0 %v680_v4  ;;  %1753 = vmatmul.mubr.f32.gmra.mxu1 %v1004_v5  ;;  %v398_v4 = vld [vmem:[%s3531_s29 + $0x168] sm:$0xff]  ;;  %v614_v5 = vld [vmem:[%s3531_s29 + $0x678] sm:$0xff] }
  0xc0   : > { %1217 = vmatprep.mubr.f32.mxu0 %v684_v6  ;;  %1757 = vmatprep.mubr.f32.mxu1 %v1008_v7  ;;  %v713_v6 = vunpack.c.l.bf16 %v396_v61  ;;  %v1037_v7 = vunpack.c.l.bf16 %v612_v62  ;;  %v717_v8 = vunpack.c.h.bf16 %v398_v4  ;;  %v1041_v9 = vunpack.c.h.bf16 %v614_v5 }
  0xc3   : > { %1218 = vmatmul.mubr.f32.gmra.mxu0 %v683_v10  ;;  %1758 = vmatmul.mubr.f32.gmra.mxu1 %v1007_v11  ;;  %v400_v10 = vld [vmem:[%s3531_s29 + $0x174] sm:$0xff]  ;;  %v616_v11 = vld [vmem:[%s3531_s29 + $0x684] sm:$0xff] }
  0xc4   : > { %1222 = vmatprep.mubr.f32.mxu0 %v687_v12  ;;  %1762 = vmatprep.mubr.f32.mxu1 %v1011_v13  ;;  %v716_v12 = vunpack.c.l.bf16 %v398_v4  ;;  %v1040_v13 = vunpack.c.l.bf16 %v614_v5  ;;  %v720_v14 = vunpack.c.h.bf16 %v400_v10  ;;  %v1044_v15 = vunpack.c.h.bf16 %v616_v11 }
  0xc7   : > { %1223 = vmatmul.mubr.f32.gmra.mxu0 %v686_v16  ;;  %1763 = vmatmul.mubr.f32.gmra.mxu1 %v1010_v17  ;;  %v402_v16 = vld [vmem:[%s3531_s29 + $0x180] sm:$0xff]  ;;  %v618_v17 = vld [vmem:[%s3531_s29 + $0x690] sm:$0xff] }
  0xc8   : > { %1227 = vmatprep.mubr.f32.mxu0 %v690_v18  ;;  %1767 = vmatprep.mubr.f32.mxu1 %v1014_v19  ;;  %v719_v18 = vunpack.c.l.bf16 %v400_v10  ;;  %v1043_v19 = vunpack.c.l.bf16 %v616_v11  ;;  %v723_v20 = vunpack.c.h.bf16 %v402_v16  ;;  %v1047_v21 = vunpack.c.h.bf16 %v618_v17 }
  0xcb   : > { %1228 = vmatmul.mubr.f32.gmra.mxu0 %v689_v22  ;;  %1768 = vmatmul.mubr.f32.gmra.mxu1 %v1013_v23  ;;  %v404_v22 = vld [vmem:[%s3531_s29 + $0x18c] sm:$0xff]  ;;  %v620_v23 = vld [vmem:[%s3531_s29 + $0x69c] sm:$0xff] }
  0xcc   : > { %1232 = vmatprep.mubr.f32.mxu0 %v693_v24  ;;  %1772 = vmatprep.mubr.f32.mxu1 %v1017_v25  ;;  %v722_v24 = vunpack.c.l.bf16 %v402_v16  ;;  %v1046_v25 = vunpack.c.l.bf16 %v618_v17  ;;  %v726_v26 = vunpack.c.h.bf16 %v404_v22  ;;  %v1050_v27 = vunpack.c.h.bf16 %v620_v23 }
  0xcf   : > { %1233 = vmatmul.mubr.f32.gmra.mxu0 %v692_v28  ;;  %1773 = vmatmul.mubr.f32.gmra.mxu1 %v1016_v29  ;;  %v406_v28 = vld [vmem:[%s3531_s29 + $0x198] sm:$0xff]  ;;  %v622_v29 = vld [vmem:[%s3531_s29 + $0x6a8] sm:$0xff] }
  0xd0   : > { %1237 = vmatprep.mubr.f32.mxu0 %v696_v30  ;;  %1777 = vmatprep.mubr.f32.mxu1 %v1020_v31  ;;  %v725_v30 = vunpack.c.l.bf16 %v404_v22  ;;  %v1049_v31 = vunpack.c.l.bf16 %v620_v23  ;;  %v729_v32 = vunpack.c.h.bf16 %v406_v28  ;;  %v1053_v33 = vunpack.c.h.bf16 %v622_v29 }
  0xd3   : > { %1238 = vmatmul.mubr.f32.gmra.mxu0 %v695_v34  ;;  %1778 = vmatmul.mubr.f32.gmra.mxu1 %v1019_v35  ;;  %v408_v34 = vld [vmem:[%s3531_s29 + $0x1a4] sm:$0xff]  ;;  %v624_v35 = vld [vmem:[%s3531_s29 + $0x6b4] sm:$0xff] }
  0xd4   : > { %1242 = vmatprep.mubr.f32.mxu0 %v699_v36  ;;  %1782 = vmatprep.mubr.f32.mxu1 %v1023_v37  ;;  %v728_v36 = vunpack.c.l.bf16 %v406_v28  ;;  %v1052_v37 = vunpack.c.l.bf16 %v622_v29  ;;  %v732_v38 = vunpack.c.h.bf16 %v408_v34  ;;  %v1056_v39 = vunpack.c.h.bf16 %v624_v35 }
  0xd7   : > { %1243 = vmatmul.mubr.f32.gmra.mxu0 %v698_v40  ;;  %1783 = vmatmul.mubr.f32.gmra.mxu1 %v1022_v41  ;;  %v410_v40 = vld [vmem:[%s3531_s29 + $0x1b0] sm:$0xff] }
  0xd8   : > { %1247 = vmatprep.mubr.f32.mxu0 %v702_v42  ;;  %1787 = vmatprep.mubr.f32.mxu1 %v1026_v43  ;;  %v339_v41 = vld [vmem:[%s3531_s29 + $0x8] ss:$12 sps:$4 sm:$0xff]   ;;  %v731_v42 = vunpack.c.l.bf16 %v408_v34  ;;  %v1055_v43 = vunpack.c.l.bf16 %v624_v35  ;;  %v735_v44 = vunpack.c.h.bf16 %v410_v40 }
  0xd9   : > { %v628_v45 = vunpack.c.l.bf16 %v339_v41 }
  0xdb   : > { %1248 = vmatmul.mubr.f32.gmra.mxu0 %v701_v46  ;;  %1788 = vmatmul.mubr.f32.gmra.mxu1 %v1025_v47  ;;  %v412_v46 = vld [vmem:[%s3531_s29 + $0x1bc] sm:$0xff] }
  0xdc   : > { %1252 = vmatprep.mubr.f32.mxu0 %v705_v48  ;;  %1792 = vmatprep.mubr.f32.mxu1 %v1029_v49  ;;  %v343_v47 = vld [vmem:[%s3531_s29 + $0x20] ss:$12 sps:$4 sm:$0xff]   ;;  %v734_v48 = vunpack.c.l.bf16 %v410_v40  ;;  %v631_v49 = vunpack.c.h.bf16 %v339_v41  ;;  %v738_v50 = vunpack.c.h.bf16 %v412_v46 }
  0xdd   : > { %v634_v51 = vunpack.c.l.bf16 %v343_v47 }
  0xdf   : > { %1253 = vmatmul.mubr.f32.gmra.mxu0 %v704_v52  ;;  %1793 = vmatmul.mubr.f32.gmra.mxu1 %v1028_v53  ;;  %v414_v52 = vld [vmem:[%s3531_s29 + $0x1c8] sm:$0xff]  ;;  %v347_v53 = vld [vmem:[%s3531_s29 + $0x38] ss:$12 sps:$4 sm:$0xff]  }
  0xe0   : > { %1257 = vmatprep.mubr.f32.mxu0 %v708_v0  ;;  %1797 = vmatprep.mubr.f32.mxu1 %v1032_v54  ;;  %v737_v0 = vunpack.c.l.bf16 %v412_v46  ;;  %v637_v54 = vunpack.c.h.bf16 %v343_v47  ;;  %v741_v55 = vunpack.c.h.bf16 %v414_v52  ;;  %v640_v56 = vunpack.c.l.bf16 %v347_v53 }
  0xe3   : > { %1258 = vmatmul.mubr.f32.gmra.mxu0 %v707_v57  ;;  %1798 = vmatmul.mubr.f32.gmra.mxu1 %v1031_v58  ;;  %v416_v57 = vld [vmem:[%s3531_s29 + $0x1d4] sm:$0xff]  ;;  %v351_v58 = vld [vmem:[%s3531_s29 + $0x50] ss:$12 sps:$4 sm:$0xff]  }
  0xe4   : > { %1262 = vmatprep.mubr.f32.mxu0 %v711_v59  ;;  %1802 = vmatprep.mubr.f32.mxu1 %v1035_v60  ;;  %v740_v59 = vunpack.c.l.bf16 %v414_v52  ;;  %v643_v60 = vunpack.c.h.bf16 %v347_v53  ;;  %v744_v61 = vunpack.c.h.bf16 %v416_v57  ;;  %v646_v62 = vunpack.c.l.bf16 %v351_v58 }
  0xe7   : > { %1263 = vmatmul.mubr.f32.gmra.mxu0 %v710_v63  ;;  %1803 = vmatmul.mubr.f32.gmra.mxu1 %v1034_v1  ;;  %v418_v63 = vld [vmem:[%s3531_s29 + $0x1e0] sm:$0xff]  ;;  %v355_v1 = vld [vmem:[%s3531_s29 + $0x68] ss:$12 sps:$4 sm:$0xff]  }
  0xe8   : > { %1267 = vmatprep.mubr.f32.mxu0 %v714_v2  ;;  %1807 = vmatprep.mubr.f32.mxu1 %v1038_v3  ;;  %v743_v2 = vunpack.c.l.bf16 %v416_v57  ;;  %v649_v3 = vunpack.c.h.bf16 %v351_v58  ;;  %v747_v4 = vunpack.c.h.bf16 %v418_v63  ;;  %v652_v5 = vunpack.c.l.bf16 %v355_v1 }
  0xeb   : > { %1268 = vmatmul.mubr.f32.gmra.mxu0 %v713_v6  ;;  %1808 = vmatmul.mubr.f32.gmra.mxu1 %v1037_v7  ;;  %v420_v6 = vld [vmem:[%s3531_s29 + $0x1ec] sm:$0xff] }
  0xec   : > { %1272 = vmatprep.mubr.f32.mxu0 %v717_v8  ;;  %1812 = vmatprep.mubr.f32.mxu1 %v1041_v9  ;;  %v359_v7 = vld [vmem:[%s3531_s29 + $0x80] ss:$12 sps:$4 sm:$0xff]   ;;  %v746_v8 = vunpack.c.l.bf16 %v418_v63  ;;  %v655_v9 = vunpack.c.h.bf16 %v355_v1  ;;  %v750_v10 = vunpack.c.h.bf16 %v420_v6 }
  0xed   : > { %v658_v11 = vunpack.c.l.bf16 %v359_v7 }
  0xef   : > { %1273 = vmatmul.mubr.f32.gmra.mxu0 %v716_v12  ;;  %1813 = vmatmul.mubr.f32.gmra.mxu1 %v1040_v13  ;;  %v422_v12 = vld [vmem:[%s3531_s29 + $0x1f8] sm:$0xff] }
  0xf0   : > { %1277 = vmatprep.mubr.f32.mxu0 %v720_v14  ;;  %1817 = vmatprep.mubr.f32.mxu1 %v1044_v15  ;;  %v363_v13 = vld [vmem:[%s3531_s29 + $0x98] ss:$12 sps:$4 sm:$0xff]   ;;  %v749_v14 = vunpack.c.l.bf16 %v420_v6  ;;  %v661_v15 = vunpack.c.h.bf16 %v359_v7  ;;  %v753_v16 = vunpack.c.h.bf16 %v422_v12  ;;  %v399_v7 = vld [vmem:[%s3531_s29 + $0x170] ss:$12 sps:$4 sm:$0xff]  }
  0xf1   : > { %v664_v17 = vunpack.c.l.bf16 %v363_v13  ;;  %v440_v6 = vld [vmem:[%s3531_s29 + $0x264] sm:$0xff] }
  0xf3   : > { %1278 = vmatmul.mubr.f32.gmra.mxu0 %v719_v18  ;;  %1818 = vmatmul.mubr.f32.gmra.mxu1 %v1043_v19  ;;  %v424_v18 = vld [vmem:[%s3531_s29 + $0x204] sm:$0xff]  ;;  %v367_v19 = vld [vmem:[%s3531_s29 + $0xb0] ss:$12 sps:$4 sm:$0xff]  }
  0xf4   : > { %1282 = vmatprep.mubr.f32.mxu0 %v723_v20  ;;  %1822 = vmatprep.mubr.f32.mxu1 %v1047_v21  ;;  %v752_v20 = vunpack.c.l.bf16 %v422_v12  ;;  %v667_v21 = vunpack.c.h.bf16 %v363_v13  ;;  %v756_v22 = vunpack.c.h.bf16 %v424_v18  ;;  %v670_v23 = vunpack.c.l.bf16 %v367_v19 }
  0xf5   : > { %v780_v12 = vunpack.c.h.bf16 %v440_v6  ;;  %v718_v13 = vunpack.c.l.bf16 %v399_v7 }
  0xf7   : > { %1283 = vmatmul.mubr.f32.gmra.mxu0 %v722_v24  ;;  %1823 = vmatmul.mubr.f32.gmra.mxu1 %v1046_v25  ;;  %v426_v24 = vld [vmem:[%s3531_s29 + $0x210] sm:$0xff] }
  0xf8   : > { %1287 = vmatprep.mubr.f32.mxu0 %v726_v26  ;;  %1827 = vmatprep.mubr.f32.mxu1 %v1050_v27  ;;  %v371_v25 = vld [vmem:[%s3531_s29 + $0xc8] ss:$12 sps:$4 sm:$0xff]   ;;  %v755_v26 = vunpack.c.l.bf16 %v424_v18  ;;  %v673_v27 = vunpack.c.h.bf16 %v367_v19  ;;  %v759_v28 = vunpack.c.h.bf16 %v426_v24 }
  0xf9   : > { %v676_v29 = vunpack.c.l.bf16 %v371_v25 }
  0xfb   : > { %1288 = vmatmul.mubr.f32.gmra.mxu0 %v725_v30  ;;  %1828 = vmatmul.mubr.f32.gmra.mxu1 %v1049_v31  ;;  %v428_v30 = vld [vmem:[%s3531_s29 + $0x21c] sm:$0xff] }
  0xfc   : > { %1292 = vmatprep.mubr.f32.mxu0 %v729_v32  ;;  %1832 = vmatprep.mubr.f32.mxu1 %v1053_v33  ;;  %v375_v31 = vld [vmem:[%s3531_s29 + $0xe0] ss:$12 sps:$4 sm:$0xff]   ;;  %v758_v32 = vunpack.c.l.bf16 %v426_v24  ;;  %v679_v33 = vunpack.c.h.bf16 %v371_v25  ;;  %v762_v34 = vunpack.c.h.bf16 %v428_v30 }
  0xfd   : > { %v682_v35 = vunpack.c.l.bf16 %v375_v31 }
  0xff   : > { %1293 = vmatmul.mubr.f32.gmra.mxu0 %v728_v36  ;;  %1833 = vmatmul.mubr.f32.gmra.mxu1 %v1052_v37  ;;  %v430_v36 = vld [vmem:[%s3531_s29 + $0x228] sm:$0xff]  ;;  %v379_v37 = vld [vmem:[%s3531_s29 + $0xf8] ss:$12 sps:$4 sm:$0xff]  }
 0x100   : > { %1297 = vmatprep.mubr.f32.mxu0 %v732_v38  ;;  %1837 = vmatprep.mubr.f32.mxu1 %v1056_v39  ;;  %v761_v38 = vunpack.c.l.bf16 %v428_v30  ;;  %v685_v39 = vunpack.c.h.bf16 %v375_v31  ;;  %v765_v40 = vunpack.c.h.bf16 %v430_v36  ;;  %v688_v41 = vunpack.c.l.bf16 %v379_v37 }
 0x103   : > { %1298 = vmatmul.mubr.f32.gmra.mxu0 %v731_v42  ;;  %1838 = vmatmul.mubr.f32.gmra.mxu1 %v1055_v43  ;;  %v432_v42 = vld [vmem:[%s3531_s29 + $0x234] sm:$0xff]  ;;  %v383_v43 = vld [vmem:[%s3531_s29 + $0x110] ss:$12 sps:$4 sm:$0xff]  }
 0x104   : > { %1302 = vmatprep.mubr.f32.mxu0 %v735_v44  ;;  %3041 = vmatprep.mubr.f32.mxu1 %v628_v45  ;;  %v764_v44 = vunpack.c.l.bf16 %v430_v36  ;;  %v691_v45 = vunpack.c.h.bf16 %v379_v37  ;;  %v768_v46 = vunpack.c.h.bf16 %v432_v42  ;;  %v694_v47 = vunpack.c.l.bf16 %v383_v43  ;;  %v446_v36 = vld [vmem:[%s3531_s29 + $0x288] sm:$0xff]  ;;  %v411_v37 = vld [vmem:[%s3531_s29 + $0x1b8] ss:$12 sps:$4 sm:$0xff]  }
 0x107   : > { %1303 = vmatmul.mubr.f32.gmra.mxu0 %v734_v48  ;;  %3042 = vmatmul.mubr.f32.vlgmr.msra.gmra.mxu1 %v631_v49  ;;  %v434_v48 = vld [vmem:[%s3531_s29 + $0x240] sm:$0xff]  ;;  %v387_v49 = vld [vmem:[%s3531_s29 + $0x128] ss:$12 sps:$4 sm:$0xff]  }
 0x108   : > { %1307 = vmatprep.mubr.f32.mxu0 %v738_v50  ;;  %3044 = vmatprep.mubr.f32.mxu1 %v634_v51  ;;  %v767_v50 = vunpack.c.l.bf16 %v432_v42  ;;  %v697_v51 = vunpack.c.h.bf16 %v383_v43  ;;  %v771_v52 = vunpack.c.h.bf16 %v434_v48  ;;  %v700_v53 = vunpack.c.l.bf16 %v387_v49 }
 0x109   : > { %v789_v42 = vunpack.c.h.bf16 %v446_v36  ;;  %v736_v43 = vunpack.c.l.bf16 %v411_v37 }
 0x10b   : > { %1308 = vmatmul.mubr.f32.gmra.mxu0 %v737_v0  ;;  %3045 = vmatmul.mubr.f32.gmra.mxu1 %v637_v54  ;;  %v436_v0 = vld [vmem:[%s3531_s29 + $0x24c] sm:$0xff] }
 0x10c   : > { %1312 = vmatprep.mubr.f32.mxu0 %v741_v55  ;;  %3047 = vmatprep.mubr.f32.mxu1 %v640_v56  ;;  %v391_v54 = vld [vmem:[%s3531_s29 + $0x140] ss:$12 sps:$4 sm:$0xff]   ;;  %v770_v55 = vunpack.c.l.bf16 %v434_v48  ;;  %v703_v56 = vunpack.c.h.bf16 %v387_v49  ;;  %v774_v57 = vunpack.c.h.bf16 %v436_v0  ;;  %v773_v63 = vunpack.c.l.bf16 %v436_v0 }
 0x10d   : > { %v706_v58 = vunpack.c.l.bf16 %v391_v54  ;;  %v709_v1 = vunpack.c.h.bf16 %v391_v54 }
 0x10f   : > { %1313 = vmatmul.mubr.f32.gmra.mxu0 %v740_v59  ;;  %3048 = vmatmul.mubr.f32.gmra.mxu1 %v643_v60  ;;  %v438_v59 = vld [vmem:[%s3531_s29 + $0x258] sm:$0xff] }
 0x110   : > { %1317 = vmatprep.mubr.f32.mxu0 %v744_v61  ;;  %3050 = vmatprep.mubr.f32.mxu1 %v646_v62  ;;  %v395_v60 = vld [vmem:[%s3531_s29 + $0x158] ss:$12 sps:$4 sm:$0xff]  }
 0x113   : > { %1318 = vmatmul.mubr.f32.gmra.mxu0 %v743_v2  ;;  %3051 = vmatmul.mubr.f32.gmra.mxu1 %v649_v3  ;;  %v777_v2 = vunpack.c.h.bf16 %v438_v59  ;;  %v712_v3 = vunpack.c.l.bf16 %v395_v60 }
 0x114   : > { %1322 = vmatprep.mubr.f32.mxu0 %v747_v4  ;;  %3053 = vmatprep.mubr.f32.mxu1 %v652_v5 }
 0x117   : > { %1323 = vmatmul.mubr.f32.gmra.mxu0 %v746_v8  ;;  %3054 = vmatmul.mubr.f32.gmra.mxu1 %v655_v9 }
 0x118   : > { %1327 = vmatprep.mubr.f32.mxu0 %v750_v10  ;;  %3056 = vmatprep.mubr.f32.mxu1 %v658_v11  ;;  %v776_v10 = vunpack.c.l.bf16 %v438_v59  ;;  %v715_v11 = vunpack.c.h.bf16 %v395_v60 }
 0x11b   : > { %1328 = vmatmul.mubr.f32.gmra.mxu0 %v749_v14  ;;  %3057 = vmatmul.mubr.f32.gmra.mxu1 %v661_v15 }
 0x11c   : > { %1332 = vmatprep.mubr.f32.mxu0 %v753_v16  ;;  %3059 = vmatprep.mubr.f32.mxu1 %v664_v17  ;;  %v442_v16 = vld [vmem:[%s3531_s29 + $0x270] sm:$0xff] }
 0x11d   : > { %v403_v17 = vld [vmem:[%s3531_s29 + $0x188] ss:$12 sps:$4 sm:$0xff]   ;;  %v782_v30 = vunpack.c.l.bf16 %v442_v16 }
 0x11e   : > { %v727_v31 = vunpack.c.h.bf16 %v403_v17 }
 0x11f   : > { %1333 = vmatmul.mubr.f32.gmra.mxu0 %v752_v20  ;;  %3060 = vmatmul.mubr.f32.gmra.mxu1 %v667_v21  ;;  %v779_v20 = vunpack.c.l.bf16 %v440_v6  ;;  %v721_v21 = vunpack.c.h.bf16 %v399_v7 }
 0x120   : > { %1337 = vmatprep.mubr.f32.mxu0 %v756_v22  ;;  %3062 = vmatprep.mubr.f32.mxu1 %v670_v23  ;;  %v783_v22 = vunpack.c.h.bf16 %v442_v16  ;;  %v724_v23 = vunpack.c.l.bf16 %v403_v17  ;;  %v454_v16 = vld [vmem:[%s3531_s29 + $0x2b8] sm:$0xff] }
 0x121   : > { %v427_v17 = vld [vmem:[%s3531_s29 + $0x218] ss:$12 sps:$4 sm:$0xff]  }
 0x123   : > { %1338 = vmatmul.mubr.f32.gmra.mxu0 %v755_v26  ;;  %3063 = vmatmul.mubr.f32.gmra.mxu1 %v673_v27  ;;  %v444_v26 = vld [vmem:[%s3531_s29 + $0x27c] sm:$0xff] }
 0x124   : > { %1342 = vmatprep.mubr.f32.mxu0 %v759_v28  ;;  %3065 = vmatprep.mubr.f32.mxu1 %v676_v29  ;;  %v407_v27 = vld [vmem:[%s3531_s29 + $0x1a0] ss:$12 sps:$4 sm:$0xff]  }
 0x127   : > { %1343 = vmatmul.mubr.f32.gmra.mxu0 %v758_v32  ;;  %3066 = vmatmul.mubr.f32.gmra.mxu1 %v679_v33  ;;  %v786_v32 = vunpack.c.h.bf16 %v444_v26  ;;  %v730_v33 = vunpack.c.l.bf16 %v407_v27 }
 0x128   : > { %1347 = vmatprep.mubr.f32.mxu0 %v762_v34  ;;  %3068 = vmatprep.mubr.f32.mxu1 %v682_v35 }
 0x12b   : > { %1348 = vmatmul.mubr.f32.gmra.mxu0 %v761_v38  ;;  %3069 = vmatmul.mubr.f32.gmra.mxu1 %v685_v39 }
 0x12c   : > { %1352 = vmatprep.mubr.f32.mxu0 %v765_v40  ;;  %3071 = vmatprep.mubr.f32.mxu1 %v688_v41  ;;  %v785_v40 = vunpack.c.l.bf16 %v444_v26  ;;  %v733_v41 = vunpack.c.h.bf16 %v407_v27 }
 0x12f   : > { %1353 = vmatmul.mubr.f32.gmra.mxu0 %v764_v44  ;;  %3072 = vmatmul.mubr.f32.gmra.mxu1 %v691_v45 }
 0x130   : > { %1357 = vmatprep.mubr.f32.mxu0 %v768_v46  ;;  %3074 = vmatprep.mubr.f32.mxu1 %v694_v47  ;;  %v448_v46 = vld [vmem:[%s3531_s29 + $0x294] sm:$0xff]  ;;  %v415_v47 = vld [vmem:[%s3531_s29 + $0x1d0] ss:$12 sps:$4 sm:$0xff]  }
 0x131   : > { %v791_v59 = vunpack.c.l.bf16 %v448_v46  ;;  %v745_v60 = vunpack.c.h.bf16 %v415_v47 }
 0x133   : > { %1358 = vmatmul.mubr.f32.gmra.mxu0 %v767_v50  ;;  %3075 = vmatmul.mubr.f32.gmra.mxu1 %v697_v51  ;;  %v788_v50 = vunpack.c.l.bf16 %v446_v36  ;;  %v739_v51 = vunpack.c.h.bf16 %v411_v37 }
 0x134   : > { %1362 = vmatprep.mubr.f32.mxu0 %v771_v52  ;;  %3077 = vmatprep.mubr.f32.mxu1 %v700_v53  ;;  %v792_v52 = vunpack.c.h.bf16 %v448_v46  ;;  %v742_v53 = vunpack.c.l.bf16 %v415_v47 }
 0x137   : > { %v3991_v61 = vpop.f32.mrf.mxu0  ;;  %1363 = vmatmul.mubr.f32.gmra.mxu0 %v770_v55  ;;  %v3993_v62 = vpop.f32.mrf.mxu1  ;;  %3078 = vmatmul.mubr.f32.gmra.mxu1 %v703_v56  ;;  %v450_v55 = vld [vmem:[%s3531_s29 + $0x2a0] sm:$0xff]  ;;  %v419_v56 = vld [vmem:[%s3531_s29 + $0x1e8] ss:$12 sps:$4 sm:$0xff]  }
 0x138   : > { %1367 = vmatprep.mubr.f32.mxu0 %v774_v57  ;;  %3080 = vmatprep.mubr.f32.mxu1 %v706_v58 }
 0x139   : > { %v1126_v4 = vpop.f32.mrf.mxu0  ;;  %v1666_v5 = vpop.f32.mrf.mxu1 }
 0x13a   : > { %v452_v4 = vld [vmem:[%s3531_s29 + $0x2ac] sm:$0xff] }
 0x13b   : > { %v3997_v8 = vpop.f32.mrf.mxu0  ;;  %1368 = vmatmul.mubr.f32.gmra.mxu0 %v773_v63  ;;  %v3999_v9 = vpop.f32.mrf.mxu1  ;;  %3081 = vmatmul.mubr.f32.gmra.mxu1 %v709_v1  ;;  %v795_v63 = vunpack.c.h.bf16 %v450_v55  ;;  %v748_v1 = vunpack.c.l.bf16 %v419_v56  ;;  %v423_v5 = vld [vmem:[%s3531_s29 + $0x200] ss:$12 sps:$4 sm:$0xff]  }
 0x13c   : > { %1372 = vmatprep.mubr.f32.mxu0 %v777_v2  ;;  %3083 = vmatprep.mubr.f32.mxu1 %v712_v3 }
 0x13d   : > { %v1131_v14 = vpop.f32.mrf.mxu0  ;;  %v1671_v15 = vpop.f32.mrf.mxu1 }
 0x13f   : > { %v4003_v18 = vpop.f32.mrf.mxu0  ;;  %1373 = vmatmul.mubr.f32.gmra.mxu0 %v776_v10  ;;  %v4005_v19 = vpop.f32.mrf.mxu1  ;;  %3084 = vmatmul.mubr.f32.gmra.mxu1 %v715_v11  ;;  %v794_v10 = vunpack.c.l.bf16 %v450_v55  ;;  %v751_v11 = vunpack.c.h.bf16 %v419_v56 }
 0x140   : > { %1377 = vmatprep.mubr.f32.mxu0 %v780_v12  ;;  %3086 = vmatprep.mubr.f32.mxu1 %v718_v13  ;;  %v798_v12 = vunpack.c.h.bf16 %v452_v4  ;;  %v754_v13 = vunpack.c.l.bf16 %v423_v5 }
 0x141   : > { %v1136_v24 = vpop.f32.mrf.mxu0  ;;  %v1676_v25 = vpop.f32.mrf.mxu1 }
 0x142   : > { %v801_v24 = vunpack.c.h.bf16 %v454_v16  ;;  %v760_v25 = vunpack.c.l.bf16 %v427_v17 }
 0x143   : > { %v4009_v28 = vpop.f32.mrf.mxu0  ;;  %1378 = vmatmul.mubr.f32.gmra.mxu0 %v779_v20  ;;  %v4011_v29 = vpop.f32.mrf.mxu1  ;;  %3087 = vmatmul.mubr.f32.gmra.mxu1 %v721_v21 }
 0x144   : > { %1382 = vmatprep.mubr.f32.mxu0 %v783_v22  ;;  %3089 = vmatprep.mubr.f32.mxu1 %v724_v23  ;;  %v797_v22 = vunpack.c.l.bf16 %v452_v4  ;;  %v757_v23 = vunpack.c.h.bf16 %v423_v5  ;;  %v462_v4 = vld [vmem:[%s3531_s29 + $0x2e8] sm:$0xff]  ;;  %v443_v5 = vld [vmem:[%s3531_s29 + $0x278] ss:$12 sps:$4 sm:$0xff]  }
 0x145   : > { %v1141_v34 = vpop.f32.mrf.mxu0  ;;  %v1681_v35 = vpop.f32.mrf.mxu1 }
 0x146   : > { %v800_v34 = vunpack.c.l.bf16 %v454_v16  ;;  %v763_v35 = vunpack.c.h.bf16 %v427_v17 }
 0x147   : > { %v4015_v38 = vpop.f32.mrf.mxu0  ;;  %1383 = vmatmul.mubr.f32.gmra.mxu0 %v782_v30  ;;  %v4017_v39 = vpop.f32.mrf.mxu1  ;;  %3090 = vmatmul.mubr.f32.gmra.mxu1 %v727_v31  ;;  %v456_v30 = vld [vmem:[%s3531_s29 + $0x2c4] sm:$0xff]  ;;  %v431_v31 = vld [vmem:[%s3531_s29 + $0x230] ss:$12 sps:$4 sm:$0xff]  }
 0x148   : > { %1387 = vmatprep.mubr.f32.mxu0 %v786_v32  ;;  %3092 = vmatprep.mubr.f32.mxu1 %v730_v33  ;;  %v804_v36 = vunpack.c.h.bf16 %v456_v30  ;;  %v766_v37 = vunpack.c.l.bf16 %v431_v31  ;;  %v803_v46 = vunpack.c.l.bf16 %v456_v30  ;;  %v769_v47 = vunpack.c.h.bf16 %v431_v31 }
 0x149   : > { %v1146_v44 = vpop.f32.mrf.mxu0  ;;  %v1686_v45 = vpop.f32.mrf.mxu1 }
 0x14b   : > { %v4021_v48 = vpop.f32.mrf.mxu0  ;;  %1388 = vmatmul.mubr.f32.gmra.mxu0 %v785_v40  ;;  %v4023_v49 = vpop.f32.mrf.mxu1  ;;  %3093 = vmatmul.mubr.f32.gmra.mxu1 %v733_v41 }
 0x14c   : > { %1392 = vmatprep.mubr.f32.mxu0 %v789_v42  ;;  %3095 = vmatprep.mubr.f32.mxu1 %v736_v43  ;;  %v458_v42 = vld [vmem:[%s3531_s29 + $0x2d0] sm:$0xff] }
 0x14d   : > { %v1151_v0 = vpop.f32.mrf.mxu0  ;;  %v1691_v54 = vpop.f32.mrf.mxu1  ;;  %v435_v43 = vld [vmem:[%s3531_s29 + $0x248] ss:$12 sps:$4 sm:$0xff]  }
 0x14e   : > { %v460_v0 = vld [vmem:[%s3531_s29 + $0x2dc] sm:$0xff] }
 0x14f   : > { %v4027_v57 = vpop.f32.mrf.mxu0  ;;  %1393 = vmatmul.mubr.f32.gmra.mxu0 %v788_v50  ;;  %v4029_v58 = vpop.f32.mrf.mxu1  ;;  %3096 = vmatmul.mubr.f32.gmra.mxu1 %v739_v51  ;;  %v807_v50 = vunpack.c.h.bf16 %v458_v42  ;;  %v772_v51 = vunpack.c.l.bf16 %v435_v43  ;;  %v439_v54 = vld [vmem:[%s3531_s29 + $0x260] ss:$12 sps:$4 sm:$0xff]  }
 0x150   : > { %1397 = vmatprep.mubr.f32.mxu0 %v792_v52  ;;  %3098 = vmatprep.mubr.f32.mxu1 %v742_v53 }
 0x151   : > { %v1156_v2 = vpop.f32.mrf.mxu0  ;;  %v1696_v3 = vpop.f32.mrf.mxu1 }
 0x153   : > { %v4033_v6 = vpop.f32.mrf.mxu0  ;;  %1398 = vmatmul.mubr.f32.gmra.mxu0 %v791_v59  ;;  %v4035_v7 = vpop.f32.mrf.mxu1  ;;  %3099 = vmatmul.mubr.f32.gmra.mxu1 %v745_v60  ;;  %v806_v59 = vunpack.c.l.bf16 %v458_v42  ;;  %v775_v60 = vunpack.c.h.bf16 %v435_v43 }
 0x154   : > { %1402 = vmatprep.mubr.f32.mxu0 %v795_v63  ;;  %3101 = vmatprep.mubr.f32.mxu1 %v748_v1  ;;  %v810_v63 = vunpack.c.h.bf16 %v460_v0  ;;  %v778_v1 = vunpack.c.l.bf16 %v439_v54 }
 0x155   : > { %v1161_v14 = vpop.f32.mrf.mxu0  ;;  %v1701_v15 = vpop.f32.mrf.mxu1 }
 0x156   : > { %v813_v14 = vunpack.c.h.bf16 %v462_v4  ;;  %v784_v15 = vunpack.c.l.bf16 %v443_v5 }
 0x157   : > { %v4039_v20 = vpop.f32.mrf.mxu0  ;;  %1403 = vmatmul.mubr.f32.gmra.mxu0 %v794_v10  ;;  %v4041_v21 = vpop.f32.mrf.mxu1  ;;  %3102 = vmatmul.mubr.f32.gmra.mxu1 %v751_v11 }
 0x158   : > { %4763 = vst [vmem:[#allocation5_spill] sm:$0xff] %v4041_v21  ;;  %1407 = vmatprep.mubr.f32.mxu0 %v798_v12  ;;  %3104 = vmatprep.mubr.f32.mxu1 %v754_v13  ;;  %v809_v12 = vunpack.c.l.bf16 %v460_v0  ;;  %v781_v13 = vunpack.c.h.bf16 %v439_v54 }
 0x159   : > { %v1166_v26 = vpop.f32.mrf.mxu0  ;;  %v1706_v27 = vpop.f32.mrf.mxu1 }
 0x15a   : > { %v812_v26 = vunpack.c.l.bf16 %v462_v4  ;;  %v787_v27 = vunpack.c.h.bf16 %v443_v5  ;;  %v470_v4 = vld [vmem:[%s3531_s29 + $0x318] sm:$0xff] }
 0x15b   : > { %v4045_v32 = vpop.f32.mrf.mxu0  ;;  %1408 = vmatmul.mubr.f32.gmra.mxu0 %v797_v22  ;;  %v4047_v33 = vpop.f32.mrf.mxu1  ;;  %3105 = vmatmul.mubr.f32.gmra.mxu1 %v757_v23  ;;  %v464_v22 = vld [vmem:[%s3531_s29 + $0x2f4] sm:$0xff]  ;;  %v447_v23 = vld [vmem:[%s3531_s29 + $0x290] ss:$12 sps:$4 sm:$0xff]  }
 0x15c   : > { %1412 = vmatprep.mubr.f32.mxu0 %v801_v24  ;;  %3107 = vmatprep.mubr.f32.mxu1 %v760_v25  ;;  %v816_v30 = vunpack.c.h.bf16 %v464_v22  ;;  %v790_v31 = vunpack.c.l.bf16 %v447_v23  ;;  %v815_v42 = vunpack.c.l.bf16 %v464_v22  ;;  %v793_v43 = vunpack.c.h.bf16 %v447_v23  ;;  %v459_v5 = vld [vmem:[%s3531_s29 + $0x2d8] ss:$12 sps:$4 sm:$0xff]  }
 0x15d   : > { %v1171_v40 = vpop.f32.mrf.mxu0  ;;  %v1711_v41 = vpop.f32.mrf.mxu1 }
 0x15f   : > { %v4051_v44 = vpop.f32.mrf.mxu0  ;;  %1413 = vmatmul.mubr.f32.gmra.mxu0 %v800_v34  ;;  %v4053_v45 = vpop.f32.mrf.mxu1  ;;  %3108 = vmatmul.mubr.f32.gmra.mxu1 %v763_v35 }
 0x160   : > { %4764 = vst [vmem:[#allocation6_spill] sm:$0xff] %v4053_v45  ;;  %1417 = vmatprep.mubr.f32.mxu0 %v804_v36  ;;  %3110 = vmatprep.mubr.f32.mxu1 %v766_v37  ;;  %v466_v36 = vld [vmem:[%s3531_s29 + $0x300] sm:$0xff]  ;;  %v451_v37 = vld [vmem:[%s3531_s29 + $0x2a8] ss:$12 sps:$4 sm:$0xff]  }
 0x161   : > { %v1176_v52 = vpop.f32.mrf.mxu0  ;;  %v1716_v53 = vpop.f32.mrf.mxu1 }
 0x162   : > { %v468_v52 = vld [vmem:[%s3531_s29 + $0x30c] sm:$0xff] }
 0x163   : > { %v4057_v55 = vpop.f32.mrf.mxu0  ;;  %1418 = vmatmul.mubr.f32.gmra.mxu0 %v803_v46  ;;  %v4059_v56 = vpop.f32.mrf.mxu1  ;;  %3111 = vmatmul.mubr.f32.gmra.mxu1 %v769_v47  ;;  %v819_v46 = vunpack.c.h.bf16 %v466_v36  ;;  %v796_v47 = vunpack.c.l.bf16 %v451_v37  ;;  %v455_v53 = vld [vmem:[%s3531_s29 + $0x2c0] ss:$12 sps:$4 sm:$0xff]  }
 0x164   : > { %4765 = vst [vmem:[#allocation7_spill] sm:$0xff] %v4059_v56  ;;  %1422 = vmatprep.mubr.f32.mxu0 %v807_v50  ;;  %3113 = vmatprep.mubr.f32.mxu1 %v772_v51 }
 0x165   : > { %v1181_v2 = vpop.f32.mrf.mxu0  ;;  %v1721_v3 = vpop.f32.mrf.mxu1 }
 0x167   : > { %v4063_v10 = vpop.f32.mrf.mxu0  ;;  %1423 = vmatmul.mubr.f32.gmra.mxu0 %v806_v59  ;;  %v4065_v11 = vpop.f32.mrf.mxu1  ;;  %3114 = vmatmul.mubr.f32.gmra.mxu1 %v775_v60  ;;  %v818_v59 = vunpack.c.l.bf16 %v466_v36  ;;  %v799_v60 = vunpack.c.h.bf16 %v451_v37 }
 0x168   : > { %4766 = vst [vmem:[#allocation8_spill] sm:$0xff] %v4065_v11  ;;  %1427 = vmatprep.mubr.f32.mxu0 %v810_v63  ;;  %3116 = vmatprep.mubr.f32.mxu1 %v778_v1  ;;  %v822_v63 = vunpack.c.h.bf16 %v468_v52  ;;  %v802_v1 = vunpack.c.l.bf16 %v455_v53  ;;  %v531_v11 = vld [vmem:[%s3531_s29 + $0x488] ss:$12 sps:$4 sm:$0xff]  }
 0x169   : > { %v1186_v16 = vpop.f32.mrf.mxu0  ;;  %v1726_v17 = vpop.f32.mrf.mxu1 }
 0x16a   : > { %v825_v16 = vunpack.c.h.bf16 %v470_v4  ;;  %v808_v17 = vunpack.c.l.bf16 %v459_v5 }
 0x16b   : > { %v4069_v24 = vpop.f32.mrf.mxu0  ;;  %1428 = vmatmul.mubr.f32.gmra.mxu0 %v809_v12  ;;  %v4071_v25 = vpop.f32.mrf.mxu1  ;;  %3117 = vmatmul.mubr.f32.gmra.mxu1 %v781_v13 }
 0x16c   : > { %4767 = vst [vmem:[#allocation9_spill] sm:$0xff] %v4071_v25  ;;  %1432 = vmatprep.mubr.f32.mxu0 %v813_v14  ;;  %3119 = vmatprep.mubr.f32.mxu1 %v784_v15  ;;  %v821_v14 = vunpack.c.l.bf16 %v468_v52  ;;  %v805_v15 = vunpack.c.h.bf16 %v455_v53 }
 0x16d   : > { %v1191_v34 = vpop.f32.mrf.mxu0  ;;  %v1731_v35 = vpop.f32.mrf.mxu1 }
 0x16e   : > { %v824_v34 = vunpack.c.l.bf16 %v470_v4  ;;  %v811_v35 = vunpack.c.h.bf16 %v459_v5 }
 0x16f   : > { %v4075_v40 = vpop.f32.mrf.mxu0  ;;  %1433 = vmatmul.mubr.f32.gmra.mxu0 %v812_v26  ;;  %v4077_v41 = vpop.f32.mrf.mxu1  ;;  %3120 = vmatmul.mubr.f32.gmra.mxu1 %v787_v27  ;;  %v472_v26 = vld [vmem:[%s3531_s29 + $0x324] sm:$0xff]  ;;  %v463_v27 = vld [vmem:[%s3531_s29 + $0x2f0] ss:$12 sps:$4 sm:$0xff]  }
 0x170   : > { %4768 = vst [vmem:[#allocation10_spill] sm:$0xff] %v4077_v41  ;;  %1437 = vmatprep.mubr.f32.mxu0 %v816_v30  ;;  %3122 = vmatprep.mubr.f32.mxu1 %v790_v31  ;;  %v828_v36 = vunpack.c.h.bf16 %v472_v26  ;;  %v814_v37 = vunpack.c.l.bf16 %v463_v27  ;;  %v827_v52 = vunpack.c.l.bf16 %v472_v26  ;;  %v817_v53 = vunpack.c.h.bf16 %v463_v27  ;;  %v478_v26 = vld [vmem:[%s3531_s29 + $0x348] sm:$0xff]  ;;  %v475_v27 = vld [vmem:[%s3531_s29 + $0x338] ss:$12 sps:$4 sm:$0xff]  }
 0x171   : > { %v1196_v50 = vpop.f32.mrf.mxu0  ;;  %v1736_v51 = vpop.f32.mrf.mxu1 }
 0x173   : > { %v4081_v0 = vpop.f32.mrf.mxu0  ;;  %1438 = vmatmul.mubr.f32.gmra.mxu0 %v815_v42  ;;  %v4083_v54 = vpop.f32.mrf.mxu1  ;;  %3123 = vmatmul.mubr.f32.gmra.mxu1 %v793_v43 }
 0x174   : > { %4769 = vst [vmem:[#allocation11_spill] sm:$0xff] %v4083_v54  ;;  %1442 = vmatprep.mubr.f32.mxu0 %v819_v46  ;;  %3125 = vmatprep.mubr.f32.mxu1 %v796_v47  ;;  %v474_v46 = vld [vmem:[%s3531_s29 + $0x330] sm:$0xff] }
 0x175   : > { %v1201_v2 = vpop.f32.mrf.mxu0  ;;  %v1741_v3 = vpop.f32.mrf.mxu1  ;;  %v467_v47 = vld [vmem:[%s3531_s29 + $0x308] ss:$12 sps:$4 sm:$0xff]  }
 0x176   : > { %v476_v2 = vld [vmem:[%s3531_s29 + $0x33c] sm:$0xff] }
 0x177   : > { %v4087_v12 = vpop.f32.mrf.mxu0  ;;  %1443 = vmatmul.mubr.f32.gmra.mxu0 %v818_v59  ;;  %v4089_v13 = vpop.f32.mrf.mxu1  ;;  %3126 = vmatmul.mubr.f32.gmra.mxu1 %v799_v60  ;;  %v831_v59 = vunpack.c.h.bf16 %v474_v46  ;;  %v820_v60 = vunpack.c.l.bf16 %v467_v47  ;;  %v471_v3 = vld [vmem:[%s3531_s29 + $0x320] ss:$12 sps:$4 sm:$0xff]  }
 0x178   : > { %4770 = vst [vmem:[#allocation12_spill] sm:$0xff] %v4089_v13  ;;  %1447 = vmatprep.mubr.f32.mxu0 %v822_v63  ;;  %3128 = vmatprep.mubr.f32.mxu1 %v802_v1 }
 0x179   : > { %v1206_v22 = vpop.f32.mrf.mxu0  ;;  %v1746_v23 = vpop.f32.mrf.mxu1 }
 0x17b   : > { %v4093_v30 = vpop.f32.mrf.mxu0  ;;  %1448 = vmatmul.mubr.f32.gmra.mxu0 %v821_v14  ;;  %v4095_v31 = vpop.f32.mrf.mxu1  ;;  %3129 = vmatmul.mubr.f32.gmra.mxu1 %v805_v15  ;;  %v830_v14 = vunpack.c.l.bf16 %v474_v46  ;;  %v823_v15 = vunpack.c.h.bf16 %v467_v47 }
 0x17c   : > { %4771 = vst [vmem:[#allocation13_spill] sm:$0xff] %v4095_v31  ;;  %1452 = vmatprep.mubr.f32.mxu0 %v825_v16  ;;  %3131 = vmatprep.mubr.f32.mxu1 %v808_v17  ;;  %v834_v16 = vunpack.c.h.bf16 %v476_v2  ;;  %v826_v17 = vunpack.c.l.bf16 %v471_v3 }
 0x17d   : > { %v1211_v42 = vpop.f32.mrf.mxu0  ;;  %v1751_v43 = vpop.f32.mrf.mxu1 }
 0x17e   : > { %v837_v42 = vunpack.c.h.bf16 %v478_v26  ;;  %v832_v43 = vunpack.c.l.bf16 %v475_v27 }
 0x17f   : > { %v4099_v50 = vpop.f32.mrf.mxu0  ;;  %1453 = vmatmul.mubr.f32.gmra.mxu0 %v824_v34  ;;  %v4101_v51 = vpop.f32.mrf.mxu1  ;;  %3132 = vmatmul.mubr.f32.gmra.mxu1 %v811_v35 }
 0x180   : > { %4772 = vst [vmem:[#allocation14_spill] sm:$0xff] %v4101_v51  ;;  %1457 = vmatprep.mubr.f32.mxu0 %v828_v36  ;;  %3134 = vmatprep.mubr.f32.mxu1 %v814_v37  ;;  %v833_v36 = vunpack.c.l.bf16 %v476_v2  ;;  %v829_v37 = vunpack.c.h.bf16 %v471_v3 }
 0x181   : > { %v1216_v63 = vpop.f32.mrf.mxu0  ;;  %v1756_v1 = vpop.f32.mrf.mxu1 }
 0x182   : > { %v836_v63 = vunpack.c.l.bf16 %v478_v26  ;;  %v835_v1 = vunpack.c.h.bf16 %v475_v27 }
 0x183   : > { %v4105_v4 = vpop.f32.mrf.mxu0  ;;  %1458 = vmatmul.mubr.f32.gmra.mxu0 %v827_v52  ;;  %v4107_v5 = vpop.f32.mrf.mxu1  ;;  %3135 = vmatmul.mubr.f32.gmra.mxu1 %v817_v53  ;;  %v480_v52 = vld [vmem:[%s3531_s29 + $0x354] sm:$0xff]  ;;  %v479_v53 = vld [vmem:[%s3531_s29 + $0x350] ss:$12 sps:$4 sm:$0xff]  }
 0x184   : > { %4773 = vst [vmem:[#allocation15_spill] sm:$0xff] %v4107_v5  ;;  %1462 = vmatprep.mubr.f32.mxu0 %v831_v59  ;;  %3137 = vmatprep.mubr.f32.mxu1 %v820_v60  ;;  %v840_v2 = vunpack.c.h.bf16 %v480_v52  ;;  %v838_v3 = vunpack.c.l.bf16 %v479_v53 }
 0x185   : > { %v1221_v22 = vpop.f32.mrf.mxu0  ;;  %v1761_v23 = vpop.f32.mrf.mxu1 }
 0x187   : > { %v4111_v34 = vpop.f32.mrf.mxu0  ;;  %1463 = vmatmul.mubr.f32.gmra.mxu0 %v830_v14  ;;  %v4113_v35 = vpop.f32.mrf.mxu1  ;;  %3138 = vmatmul.mubr.f32.gmra.mxu1 %v823_v15 }
 0x188   : > { %4774 = vst [vmem:[#allocation16_spill] sm:$0xff] %v4113_v35  ;;  %1467 = vmatprep.mubr.f32.mxu0 %v834_v16  ;;  %3140 = vmatprep.mubr.f32.mxu1 %v826_v17  ;;  %v482_v16 = vld [vmem:[%s3531_s29 + $0x360] sm:$0xff]  ;;  %v483_v17 = vld [vmem:[%s3531_s29 + $0x368] ss:$12 sps:$4 sm:$0xff]  }
 0x189   : > { %v1226_v46 = vpop.f32.mrf.mxu0  ;;  %v1766_v47 = vpop.f32.mrf.mxu1  ;;  %v843_v26 = vunpack.c.h.bf16 %v482_v16  ;;  %v844_v27 = vunpack.c.l.bf16 %v483_v17 }
 0x18a   : > { %v484_v46 = vld [vmem:[%s3531_s29 + $0x36c] sm:$0xff] }
 0x18b   : > { %v4117_v59 = vpop.f32.mrf.mxu0  ;;  %1468 = vmatmul.mubr.f32.gmra.mxu0 %v833_v36  ;;  %v4119_v60 = vpop.f32.mrf.mxu1  ;;  %3141 = vmatmul.mubr.f32.gmra.mxu1 %v829_v37  ;;  %v839_v36 = vunpack.c.l.bf16 %v480_v52  ;;  %v841_v37 = vunpack.c.h.bf16 %v479_v53  ;;  %v487_v47 = vld [vmem:[%s3531_s29 + $0x380] ss:$12 sps:$4 sm:$0xff]   ;;  %v846_v52 = vunpack.c.h.bf16 %v484_v46 }
 0x18c   : > { %4775 = vst [vmem:[#allocation17_spill] sm:$0xff] %v4119_v60  ;;  %1472 = vmatprep.mubr.f32.mxu0 %v837_v42  ;;  %3143 = vmatprep.mubr.f32.mxu1 %v832_v43  ;;  %v850_v53 = vunpack.c.l.bf16 %v487_v47 }
 0x18d   : > { %v1231_v14 = vpop.f32.mrf.mxu0  ;;  %v1771_v15 = vpop.f32.mrf.mxu1 }
 0x18f   : > { %v4123_v22 = vpop.f32.mrf.mxu0  ;;  %1473 = vmatmul.mubr.f32.gmra.mxu0 %v836_v63  ;;  %v4125_v23 = vpop.f32.mrf.mxu1  ;;  %3144 = vmatmul.mubr.f32.gmra.mxu1 %v835_v1  ;;  %v842_v63 = vunpack.c.l.bf16 %v482_v16  ;;  %v847_v1 = vunpack.c.h.bf16 %v483_v17 }
 0x190   : > { %4776 = vst [vmem:[#allocation18_spill] sm:$0xff] %v4125_v23  ;;  %1477 = vmatprep.mubr.f32.mxu0 %v840_v2  ;;  %3146 = vmatprep.mubr.f32.mxu1 %v838_v3 }
 0x191   : > { %v1236_v42 = vpop.f32.mrf.mxu0  ;;  %v1776_v43 = vpop.f32.mrf.mxu1 }
 0x192   : > { %v486_v42 = vld [vmem:[%s3531_s29 + $0x378] sm:$0xff] }
 0x193   : > { %v4129_v14 = vpop.f32.mrf.mxu0  ;;  %1478 = vmatmul.mubr.f32.gmra.mxu0 %v839_v36  ;;  %v4131_v15 = vpop.f32.mrf.mxu1  ;;  %3147 = vmatmul.mubr.f32.gmra.mxu1 %v841_v37  ;;  %v491_v43 = vld [vmem:[%s3531_s29 + $0x398] ss:$12 sps:$4 sm:$0xff]   ;;  %v845_v36 = vunpack.c.l.bf16 %v484_v46  ;;  %v853_v37 = vunpack.c.h.bf16 %v487_v47  ;;  %v849_v16 = vunpack.c.h.bf16 %v486_v42 }
 0x194   : > { %4777 = vst [vmem:[#allocation19_spill] sm:$0xff] %v4131_v15  ;;  %1482 = vmatprep.mubr.f32.mxu0 %v843_v26  ;;  %3149 = vmatprep.mubr.f32.mxu1 %v844_v27  ;;  %v856_v17 = vunpack.c.l.bf16 %v491_v43 }
 0x195   : > { %v1241_v2 = vpop.f32.mrf.mxu0  ;;  %v1781_v3 = vpop.f32.mrf.mxu1 }
 0x196   : > { %v488_v2 = vld [vmem:[%s3531_s29 + $0x384] sm:$0xff]  ;;  %v495_v3 = vld [vmem:[%s3531_s29 + $0x3b0] ss:$12 sps:$4 sm:$0xff]  }
 0x197   : > { %v4135_v23 = vpop.f32.mrf.mxu0  ;;  %1483 = vmatmul.mubr.f32.gmra.mxu0 %v842_v63  ;;  %v4137_v35 = vpop.f32.mrf.mxu1  ;;  %3150 = vmatmul.mubr.f32.gmra.mxu1 %v847_v1  ;;  %v848_v63 = vunpack.c.l.bf16 %v486_v42  ;;  %v859_v1 = vunpack.c.h.bf16 %v491_v43  ;;  %v852_v46 = vunpack.c.h.bf16 %v488_v2  ;;  %v862_v47 = vunpack.c.l.bf16 %v495_v3 }
 0x198   : > { %4778 = vst [vmem:[#allocation20_spill] sm:$0xff] %v4137_v35  ;;  %1487 = vmatprep.mubr.f32.mxu0 %v846_v52  ;;  %3152 = vmatprep.mubr.f32.mxu1 %v850_v53 }
 0x199   : > { %v1246_v26 = vpop.f32.mrf.mxu0  ;;  %v1786_v27 = vpop.f32.mrf.mxu1 }
 0x19a   : > { %v490_v26 = vld [vmem:[%s3531_s29 + $0x390] sm:$0xff] }
 0x19b   : > { %v4141_v15 = vpop.f32.mrf.mxu0  ;;  %1488 = vmatmul.mubr.f32.gmra.mxu0 %v845_v36  ;;  %v4143_v60 = vpop.f32.mrf.mxu1  ;;  %3153 = vmatmul.mubr.f32.gmra.mxu1 %v853_v37  ;;  %v499_v27 = vld [vmem:[%s3531_s29 + $0x3c8] ss:$12 sps:$4 sm:$0xff]   ;;  %v851_v36 = vunpack.c.l.bf16 %v488_v2  ;;  %v865_v37 = vunpack.c.h.bf16 %v495_v3  ;;  %v855_v42 = vunpack.c.h.bf16 %v490_v26 }
 0x19c   : > { %4779 = vst [vmem:[#allocation21_spill] sm:$0xff] %v4143_v60  ;;  %1492 = vmatprep.mubr.f32.mxu0 %v849_v16  ;;  %3155 = vmatprep.mubr.f32.mxu1 %v856_v17  ;;  %v868_v43 = vunpack.c.l.bf16 %v499_v27 }
 0x19d   : > { %v1251_v52 = vpop.f32.mrf.mxu0  ;;  %v1791_v53 = vpop.f32.mrf.mxu1 }
 0x19e   : > { %v492_v52 = vld [vmem:[%s3531_s29 + $0x39c] sm:$0xff] }
 0x19f   : > { %v4147_v35 = vpop.f32.mrf.mxu0  ;;  %1493 = vmatmul.mubr.f32.gmra.mxu0 %v848_v63  ;;  %v4149_v51 = vpop.f32.mrf.mxu1  ;;  %3156 = vmatmul.mubr.f32.gmra.mxu1 %v859_v1  ;;  %v503_v53 = vld [vmem:[%s3531_s29 + $0x3e0] ss:$12 sps:$4 sm:$0xff]   ;;  %v854_v63 = vunpack.c.l.bf16 %v490_v26  ;;  %v871_v1 = vunpack.c.h.bf16 %v499_v27  ;;  %v858_v2 = vunpack.c.h.bf16 %v492_v52 }
 0x1a0   : > { %4780 = vst [vmem:[#allocation22_spill] sm:$0xff] %v4149_v51  ;;  %1497 = vmatprep.mubr.f32.mxu0 %v852_v46  ;;  %3158 = vmatprep.mubr.f32.mxu1 %v862_v47  ;;  %v874_v3 = vunpack.c.l.bf16 %v503_v53 }
 0x1a1   : > { %v1256_v16 = vpop.f32.mrf.mxu0  ;;  %v1796_v17 = vpop.f32.mrf.mxu1 }
 0x1a2   : > { %v494_v16 = vld [vmem:[%s3531_s29 + $0x3a8] sm:$0xff]  ;;  %v507_v17 = vld [vmem:[%s3531_s29 + $0x3f8] ss:$12 sps:$4 sm:$0xff]  }
 0x1a3   : > { %v4153_v60 = vpop.f32.mrf.mxu0  ;;  %1498 = vmatmul.mubr.f32.gmra.mxu0 %v851_v36  ;;  %v4155_v5 = vpop.f32.mrf.mxu1  ;;  %3159 = vmatmul.mubr.f32.gmra.mxu1 %v865_v37  ;;  %v857_v36 = vunpack.c.l.bf16 %v492_v52  ;;  %v877_v37 = vunpack.c.h.bf16 %v503_v53  ;;  %v861_v26 = vunpack.c.h.bf16 %v494_v16  ;;  %v880_v27 = vunpack.c.l.bf16 %v507_v17 }
 0x1a4   : > { %4781 = vst [vmem:[#allocation23_spill] sm:$0xff] %v4155_v5  ;;  %1502 = vmatprep.mubr.f32.mxu0 %v855_v42  ;;  %3161 = vmatprep.mubr.f32.mxu1 %v868_v43 }
 0x1a5   : > { %v1261_v46 = vpop.f32.mrf.mxu0  ;;  %v1801_v47 = vpop.f32.mrf.mxu1 }
 0x1a6   : > { %v496_v46 = vld [vmem:[%s3531_s29 + $0x3b4] sm:$0xff]  ;;  %v511_v47 = vld [vmem:[%s3531_s29 + $0x410] ss:$12 sps:$4 sm:$0xff]  }
 0x1a7   : > { %v4159_v51 = vpop.f32.mrf.mxu0  ;;  %1503 = vmatmul.mubr.f32.gmra.mxu0 %v854_v63  ;;  %v4161_v13 = vpop.f32.mrf.mxu1  ;;  %3162 = vmatmul.mubr.f32.gmra.mxu1 %v871_v1  ;;  %v860_v63 = vunpack.c.l.bf16 %v494_v16  ;;  %v883_v1 = vunpack.c.h.bf16 %v507_v17  ;;  %v864_v52 = vunpack.c.h.bf16 %v496_v46  ;;  %v886_v53 = vunpack.c.l.bf16 %v511_v47 }
 0x1a8   : > { %4782 = vst [vmem:[#allocation24_spill] sm:$0xff] %v4161_v13  ;;  %1507 = vmatprep.mubr.f32.mxu0 %v858_v2  ;;  %3164 = vmatprep.mubr.f32.mxu1 %v874_v3 }
 0x1a9   : > { %v1266_v42 = vpop.f32.mrf.mxu0  ;;  %v1806_v43 = vpop.f32.mrf.mxu1 }
 0x1aa   : > { %v498_v42 = vld [vmem:[%s3531_s29 + $0x3c0] sm:$0xff]  ;;  %v515_v43 = vld [vmem:[%s3531_s29 + $0x428] ss:$12 sps:$4 sm:$0xff]  }
 0x1ab   : > { %v4165_v5 = vpop.f32.mrf.mxu0  ;;  %1508 = vmatmul.mubr.f32.gmra.mxu0 %v857_v36  ;;  %v4167_v31 = vpop.f32.mrf.mxu1  ;;  %3165 = vmatmul.mubr.f32.gmra.mxu1 %v877_v37  ;;  %v863_v36 = vunpack.c.l.bf16 %v496_v46  ;;  %v889_v37 = vunpack.c.h.bf16 %v511_v47  ;;  %v867_v16 = vunpack.c.h.bf16 %v498_v42  ;;  %v892_v17 = vunpack.c.l.bf16 %v515_v43 }
 0x1ac   : > { %4783 = vst [vmem:[#allocation25_spill] sm:$0xff] %v4167_v31  ;;  %1512 = vmatprep.mubr.f32.mxu0 %v861_v26  ;;  %3167 = vmatprep.mubr.f32.mxu1 %v880_v27 }
 0x1ad   : > { %v1271_v2 = vpop.f32.mrf.mxu0  ;;  %v1811_v3 = vpop.f32.mrf.mxu1 }
 0x1ae   : > { %v500_v2 = vld [vmem:[%s3531_s29 + $0x3cc] sm:$0xff] }
 0x1af   : > { %v4171_v13 = vpop.f32.mrf.mxu0  ;;  %1513 = vmatmul.mubr.f32.gmra.mxu0 %v860_v63  ;;  %v4173_v41 = vpop.f32.mrf.mxu1  ;;  %3168 = vmatmul.mubr.f32.gmra.mxu1 %v883_v1  ;;  %v519_v3 = vld [vmem:[%s3531_s29 + $0x440] ss:$12 sps:$4 sm:$0xff]   ;;  %v866_v63 = vunpack.c.l.bf16 %v498_v42  ;;  %v895_v1 = vunpack.c.h.bf16 %v515_v43  ;;  %v870_v46 = vunpack.c.h.bf16 %v500_v2 }
 0x1b0   : > { %4784 = vst [vmem:[#allocation26_spill] sm:$0xff] %v4173_v41  ;;  %1517 = vmatprep.mubr.f32.mxu0 %v864_v52  ;;  %3170 = vmatprep.mubr.f32.mxu1 %v886_v53  ;;  %v898_v47 = vunpack.c.l.bf16 %v519_v3  ;;  %v901_v42 = vunpack.c.h.bf16 %v519_v3 }
 0x1b1   : > { %v1276_v26 = vpop.f32.mrf.mxu0  ;;  %v1816_v27 = vpop.f32.mrf.mxu1 }
 0x1b2   : > { %v502_v26 = vld [vmem:[%s3531_s29 + $0x3d8] sm:$0xff] }
 0x1b3   : > { %v4177_v31 = vpop.f32.mrf.mxu0  ;;  %1518 = vmatmul.mubr.f32.gmra.mxu0 %v863_v36  ;;  %v4179_v54 = vpop.f32.mrf.mxu1  ;;  %3171 = vmatmul.mubr.f32.gmra.mxu1 %v889_v37  ;;  %v523_v27 = vld [vmem:[%s3531_s29 + $0x458] ss:$12 sps:$4 sm:$0xff]   ;;  %v869_v37 = vunpack.c.l.bf16 %v500_v2  ;;  %v873_v43 = vunpack.c.h.bf16 %v502_v26  ;;  %v872_v2 = vunpack.c.l.bf16 %v502_v26 }
 0x1b4   : > { %4785 = vst [vmem:[#allocation27_spill] sm:$0xff] %v4179_v54  ;;  %1522 = vmatprep.mubr.f32.mxu0 %v867_v16  ;;  %3173 = vmatprep.mubr.f32.mxu1 %v892_v17  ;;  %v904_v16 = vunpack.c.l.bf16 %v523_v27  ;;  %v527_v54 = vld [vmem:[%s3531_s29 + $0x470] ss:$12 sps:$4 sm:$0xff]   ;;  %v907_v3 = vunpack.c.h.bf16 %v523_v27 }
 0x1b5   : > { %v1281_v52 = vpop.f32.mrf.mxu0  ;;  %v1821_v53 = vpop.f32.mrf.mxu1  ;;  %v913_v27 = vunpack.c.h.bf16 %v527_v54 }
 0x1b6   : > { %v504_v53 = vld [vmem:[%s3531_s29 + $0x3e4] sm:$0xff] }
 0x1b7   : > { %v4183_v41 = vpop.f32.mrf.mxu0  ;;  %1523 = vmatmul.mubr.f32.gmra.mxu0 %v866_v63  ;;  %v4185_v36 = vpop.f32.mrf.mxu1  ;;  %3174 = vmatmul.mubr.f32.gmra.mxu1 %v895_v1  ;;  %v875_v26 = vunpack.c.l.bf16 %v504_v53 }
 0x1b8   : > { %4786 = vst [vmem:[#allocation28_spill] sm:$0xff] %v4185_v36  ;;  %1527 = vmatprep.mubr.f32.mxu0 %v870_v46  ;;  %3176 = vmatprep.mubr.f32.mxu1 %v898_v47  ;;  %v876_v46 = vunpack.c.h.bf16 %v504_v53  ;;  %v910_v47 = vunpack.c.l.bf16 %v527_v54  ;;  %v506_v36 = vld [vmem:[%s3531_s29 + $0x3f0] sm:$0xff]  ;;  %v919_v54 = vunpack.c.h.bf16 %v531_v11 }
 0x1b9   : > { %v1286_v17 = vpop.f32.mrf.mxu0  ;;  %v1826_v52 = vpop.f32.mrf.mxu1  ;;  %v878_v53 = vunpack.c.l.bf16 %v506_v36 }
 0x1bb   : > { %v4193_v63 = vpop.f32.mrf.mxu0  ;;  %1528 = vmatmul.mubr.f32.gmra.mxu0 %v869_v37  ;;  %v4195_v1 = vpop.f32.mrf.mxu1  ;;  %3177 = vmatmul.mubr.f32.gmra.mxu1 %v901_v42  ;;  %v879_v42 = vunpack.c.h.bf16 %v506_v36 }
 0x1bc   : > { %4787 = vst [vmem:[#allocation29_spill] sm:$0xff] %v4195_v1  ;;  %1532 = vmatprep.mubr.f32.mxu0 %v873_v43  ;;  %3179 = vmatprep.mubr.f32.mxu1 %v904_v16  ;;  %v916_v43 = vunpack.c.l.bf16 %v531_v11  ;;  %v535_v1 = vld [vmem:[%s3531_s29 + $0x4a0] ss:$12 sps:$4 sm:$0xff]  }
 0x1bd   : > { %v1291_v17 = vpop.f32.mrf.mxu0  ;;  %v1831_v52 = vpop.f32.mrf.mxu1 }
 0x1be   : > { %v508_v52 = vld [vmem:[%s3531_s29 + $0x3fc] sm:$0xff] }
 0x1bf   : > { %v4200_v25 = vpop.f32.mrf.mxu0  ;;  %1533 = vmatmul.mubr.f32.gmra.mxu0 %v872_v2  ;;  %v4202_v37 = vpop.f32.mrf.mxu1  ;;  %3180 = vmatmul.mubr.f32.gmra.mxu1 %v907_v3  ;;  %v882_v3 = vunpack.c.h.bf16 %v508_v52  ;;  %v881_v36 = vunpack.c.l.bf16 %v508_v52 }
 0x1c0   : > { %4788 = vst [vmem:[#allocation30_spill] sm:$0xff] %v4202_v37  ;;  %1537 = vmatprep.mubr.f32.mxu0 %v876_v46  ;;  %3182 = vmatprep.mubr.f32.mxu1 %v910_v47  ;;  %v922_v46 = vunpack.c.l.bf16 %v535_v1  ;;  %v539_v37 = vld [vmem:[%s3531_s29 + $0x4b8] ss:$12 sps:$4 sm:$0xff]  }
 0x1c1   : > { %v1296_v16 = vpop.f32.mrf.mxu0  ;;  %v1836_v17 = vpop.f32.mrf.mxu1  ;;  %v931_v52 = vunpack.c.h.bf16 %v539_v37 }
 0x1c2   : > { %v510_v17 = vld [vmem:[%s3531_s29 + $0x408] sm:$0xff] }
 0x1c3   : > { %v4209_v45 = vpop.f32.mrf.mxu0  ;;  %1538 = vmatmul.mubr.f32.gmra.mxu0 %v875_v26  ;;  %v4211_v2 = vpop.f32.mrf.mxu1  ;;  %3183 = vmatmul.mubr.f32.gmra.mxu1 %v913_v27  ;;  %v925_v26 = vunpack.c.h.bf16 %v535_v1  ;;  %v884_v1 = vunpack.c.l.bf16 %v510_v17 }
 0x1c4   : > { %4789 = vst [vmem:[#allocation31_spill] sm:$0xff] %v4211_v2  ;;  %1542 = vmatprep.mubr.f32.mxu0 %v879_v42  ;;  %3185 = vmatprep.mubr.f32.mxu1 %v916_v43  ;;  %v885_v42 = vunpack.c.h.bf16 %v510_v17  ;;  %v928_v43 = vunpack.c.l.bf16 %v539_v37  ;;  %v543_v2 = vld [vmem:[%s3531_s29 + $0x4d0] ss:$12 sps:$4 sm:$0xff]  }
 0x1c5   : > { %v1301_v47 = vpop.f32.mrf.mxu0  ;;  %v1841_v16 = vpop.f32.mrf.mxu1  ;;  %v937_v17 = vunpack.c.h.bf16 %v543_v2 }
 0x1c6   : > { %v512_v16 = vld [vmem:[%s3531_s29 + $0x414] sm:$0xff] }
 0x1c7   : > { %v4215_v56 = vpop.f32.mrf.mxu0  ;;  %1543 = vmatmul.mubr.f32.gmra.mxu0 %v878_v53  ;;  %v3043_v11 = vpop.f32.mrf.mxu1  ;;  %3186 = vmatmul.mubr.f32.gmra.mxu1 %v919_v54 }
 0x1c8   : > { %v1915_v27 = vadd.f32 %v3043_v11, %v3997_v8  ;;  %1547 = vmatprep.mubr.f32.mxu0 %v882_v3  ;;  %3188 = vmatprep.mubr.f32.mxu1 %v922_v46  ;;  %v888_v46 = vunpack.c.h.bf16 %v512_v16  ;;  %v934_v11 = vunpack.c.l.bf16 %v543_v2 }
 0x1c9   : > { %v1306_v47 = vpop.f32.mrf.mxu0  ;;  %v1909_v53 = vpop.f32.mrf.mxu1 }
 0x1ca   : > { %2630 = vst.msk [vmem:[%s4220_s19 + $0x8] sm:$0xff] %vm2628_vm0, %v1915_v27  ;;  %v1910_v21 = vadd.f32 %v1909_v53, %v3991_v61  ;;  %v514_v47 = vld [vmem:[%s3531_s29 + $0x420] sm:$0xff]  ;;  %v547_v53 = vld [vmem:[%s3531_s29 + $0x4e8] ss:$12 sps:$4 sm:$0xff]  }
 0x1cb   : > { %v4228_v54 = vpop.f32.mrf.mxu0  ;;  %1548 = vmatmul.mubr.f32.gmra.mxu0 %v881_v36  ;;  %v3046_v8 = vpop.f32.mrf.mxu1  ;;  %3189 = vmatmul.mubr.f32.gmra.mxu1 %v925_v26 }
 0x1cc   : > { %2629 = vst.msk [vmem:[%s4220_s19] sm:$0xff] %vm2628_vm0, %v1910_v21  ;;  %v1925_v3 = vadd.f32 %v3046_v8, %v4009_v28  ;;  %1552 = vmatprep.mubr.f32.mxu0 %v885_v42  ;;  %3191 = vmatprep.mubr.f32.mxu1 %v928_v43  ;;  %v887_v21 = vunpack.c.l.bf16 %v512_v16  ;;  %v891_v42 = vunpack.c.h.bf16 %v514_v47  ;;  %v940_v43 = vunpack.c.l.bf16 %v547_v53 }
 0x1cd   : > { %v1311_v27 = vpop.f32.mrf.mxu0  ;;  %v1919_v61 = vpop.f32.mrf.mxu1  ;;  %v890_v16 = vunpack.c.l.bf16 %v514_v47 }
 0x1ce   : > { %2632 = vst.msk [vmem:[%s4220_s19 + $0x18] sm:$0xff] %vm2628_vm0, %v1925_v3  ;;  %v1920_v36 = vadd.f32 %v1919_v61, %v4003_v18  ;;  %v516_v3 = vld [vmem:[%s3531_s29 + $0x42c] sm:$0xff] }
 0x1cf   : > { %v4238_v37 = vpop.f32.mrf.mxu0  ;;  %1553 = vmatmul.mubr.f32.gmra.mxu0 %v884_v1  ;;  %v3049_v28 = vpop.f32.mrf.mxu1  ;;  %3192 = vmatmul.mubr.f32.gmra.mxu1 %v931_v52  ;;  %v551_v27 = vld [vmem:[%s3531_s29 + $0x500] ss:$12 sps:$4 sm:$0xff]   ;;  %v943_v52 = vunpack.c.h.bf16 %v547_v53  ;;  %v893_v53 = vunpack.c.l.bf16 %v516_v3 }
 0x1d0   : > { %2631 = vst.msk [vmem:[%s4220_s19 + $0x10] sm:$0xff] %vm2628_vm0, %v1920_v36  ;;  %v1935_v26 = vadd.f32 %v3049_v28, %v4021_v48  ;;  %1557 = vmatprep.mubr.f32.mxu0 %v888_v46  ;;  %3194 = vmatprep.mubr.f32.mxu1 %v934_v11  ;;  %v894_v11 = vunpack.c.h.bf16 %v516_v3  ;;  %v946_v61 = vunpack.c.l.bf16 %v551_v27  ;;  %v518_v28 = vld [vmem:[%s3531_s29 + $0x438] sm:$0xff] }
 0x1d1   : > { %v1316_v8 = vpop.f32.mrf.mxu0  ;;  %v1929_v18 = vpop.f32.mrf.mxu1 }
 0x1d2   : > { %2634 = vst.msk [vmem:[%s4220_s19 + $0x28] sm:$0xff] %vm2628_vm0, %v1935_v26  ;;  %v1930_v1 = vadd.f32 %v1929_v18, %v4015_v38  ;;  %v555_v26 = vld [vmem:[%s3531_s29 + $0x518] ss:$12 sps:$4 sm:$0xff]  }
 0x1d3   : > { %v4248_v2 = vpop.f32.mrf.mxu0  ;;  %1558 = vmatmul.mubr.f32.gmra.mxu0 %v887_v21  ;;  %v3052_v48 = vpop.f32.mrf.mxu1  ;;  %3195 = vmatmul.mubr.f32.gmra.mxu1 %v937_v17  ;;  %v949_v17 = vunpack.c.h.bf16 %v551_v27  ;;  %v952_v8 = vunpack.c.l.bf16 %v555_v26  ;;  %v896_v27 = vunpack.c.l.bf16 %v518_v28 }
 0x1d4   : > { %2633 = vst.msk [vmem:[%s4220_s19 + $0x20] sm:$0xff] %vm2628_vm0, %v1930_v1  ;;  %v1945_v46 = vadd.f32 %v3052_v48, %v4033_v6  ;;  %1562 = vmatprep.mubr.f32.mxu0 %v891_v42  ;;  %3197 = vmatprep.mubr.f32.mxu1 %v940_v43  ;;  %v897_v43 = vunpack.c.h.bf16 %v518_v28  ;;  %v520_v1 = vld [vmem:[%s3531_s29 + $0x444] sm:$0xff]  ;;  %v559_v48 = vld [vmem:[%s3531_s29 + $0x530] ss:$12 sps:$4 sm:$0xff]  }
 0x1d5   : > { %v1321_v36 = vpop.f32.mrf.mxu0  ;;  %v1939_v38 = vpop.f32.mrf.mxu1 }
 0x1d6   : > { %2636 = vst.msk [vmem:[%s4220_s19 + $0x38] sm:$0xff] %vm2628_vm0, %v1945_v46  ;;  %v1940_v21 = vadd.f32 %v1939_v38, %v4027_v57  ;;  %v522_v38 = vld [vmem:[%s3531_s29 + $0x450] sm:$0xff] }
 0x1d7   : > { %v4258_v47 = vpop.f32.mrf.mxu0  ;;  %1563 = vmatmul.mubr.f32.gmra.mxu0 %v890_v16  ;;  %v3055_v6 = vpop.f32.mrf.mxu1  ;;  %3198 = vmatmul.mubr.f32.gmra.mxu1 %v943_v52  ;;  %v955_v52 = vunpack.c.h.bf16 %v555_v26  ;;  %v899_v26 = vunpack.c.l.bf16 %v520_v1 }
 0x1d8   : > { %2635 = vst.msk [vmem:[%s4220_s19 + $0x30] sm:$0xff] %vm2628_vm0, %v1940_v21  ;;  %v1955_v42 = vadd.f32 %v3055_v6, %v4045_v32  ;;  %1567 = vmatprep.mubr.f32.mxu0 %v894_v11  ;;  %3200 = vmatprep.mubr.f32.mxu1 %v946_v61  ;;  %v900_v11 = vunpack.c.h.bf16 %v520_v1  ;;  %v958_v61 = vunpack.c.l.bf16 %v559_v48  ;;  %v563_v21 = vld [vmem:[%s3531_s29 + $0x548] ss:$12 sps:$4 sm:$0xff]  }
 0x1d9   : > { %v1326_v18 = vpop.f32.mrf.mxu0  ;;  %v1949_v57 = vpop.f32.mrf.mxu1 }
 0x1da   : > { %2638 = vst.msk [vmem:[%s4220_s19 + $0x48] sm:$0xff] %vm2628_vm0, %v1955_v42  ;;  %v1950_v16 = vadd.f32 %v1949_v57, %v4039_v20  ;;  %v903_v42 = vunpack.c.h.bf16 %v522_v38  ;;  %v524_v18 = vld [vmem:[%s3531_s29 + $0x45c] sm:$0xff] }
 0x1db   : > { %v4268_v3 = vpop.f32.mrf.mxu0  ;;  %1568 = vmatmul.mubr.f32.gmra.mxu0 %v893_v53  ;;  %v3058_v32 = vpop.f32.mrf.mxu1  ;;  %3201 = vmatmul.mubr.f32.gmra.mxu1 %v949_v17  ;;  %v961_v53 = vunpack.c.h.bf16 %v559_v48  ;;  %v567_v57 = vld [vmem:[%s3531_s29 + $0x560] ss:$12 sps:$4 sm:$0xff]   ;;  %v902_v48 = vunpack.c.l.bf16 %v522_v38 }
 0x1dc   : > { %2637 = vst.msk [vmem:[%s4220_s19 + $0x40] sm:$0xff] %vm2628_vm0, %v1950_v16  ;;  %v1965_v46 = vadd.f32 %v3058_v32, %v4057_v55  ;;  %1572 = vmatprep.mubr.f32.mxu0 %v897_v43  ;;  %3203 = vmatprep.mubr.f32.mxu1 %v952_v8  ;;  %v964_v43 = vunpack.c.l.bf16 %v563_v21  ;;  %v967_v32 = vunpack.c.h.bf16 %v563_v21  ;;  %v905_v21 = vunpack.c.l.bf16 %v524_v18 }
 0x1dd   : > { %v1331_v36 = vpop.f32.mrf.mxu0  ;;  %v1959_v20 = vpop.f32.mrf.mxu1 }
 0x1de   : > { %2640 = vst.msk [vmem:[%s4220_s19 + $0x58] sm:$0xff] %vm2628_vm0, %v1965_v46  ;;  %v1960_v6 = vadd.f32 %v1959_v20, %v4051_v44  ;;  %v970_v46 = vunpack.c.l.bf16 %v567_v57  ;;  %v571_v36 = vld [vmem:[%s3531_s29 + $0x578] ss:$12 sps:$4 sm:$0xff]  }
 0x1df   : > { %v4278_v28 = vpop.f32.mrf.mxu0  ;;  %1573 = vmatmul.mubr.f32.gmra.mxu0 %v896_v27  ;;  %v3061_v55 = vpop.f32.mrf.mxu1  ;;  %3204 = vmatmul.mubr.f32.gmra.mxu1 %v955_v52  ;;  %v906_v52 = vunpack.c.h.bf16 %v524_v18 }
 0x1e0   : > { %2639 = vst.msk [vmem:[%s4220_s19 + $0x50] sm:$0xff] %vm2628_vm0, %v1960_v6  ;;  %v1975_v17 = vadd.f32 %v3061_v55, %v4069_v24  ;;  %1577 = vmatprep.mubr.f32.mxu0 %v900_v11  ;;  %3206 = vmatprep.mubr.f32.mxu1 %v958_v61  ;;  %v526_v61 = vld [vmem:[%s3531_s29 + $0x468] sm:$0xff]  ;;  %v973_v6 = vunpack.c.h.bf16 %v567_v57  ;;  %v979_v57 = vunpack.c.h.bf16 %v571_v36 }
 0x1e1   : > { %v1336_v8 = vpop.f32.mrf.mxu0  ;;  %v1969_v44 = vpop.f32.mrf.mxu1  ;;  %v908_v18 = vunpack.c.l.bf16 %v526_v61 }
 0x1e2   : > { %2642 = vst.msk [vmem:[%s4220_s19 + $0x68] sm:$0xff] %vm2628_vm0, %v1975_v17  ;;  %v1970_v16 = vadd.f32 %v1969_v44, %v4063_v10 }
 0x1e3   : > { %v4288_v1 = vpop.f32.mrf.mxu0  ;;  %1578 = vmatmul.mubr.f32.gmra.mxu0 %v899_v26  ;;  %v3064_v24 = vpop.f32.mrf.mxu1  ;;  %3207 = vmatmul.mubr.f32.gmra.mxu1 %v961_v53  ;;  %v909_v26 = vunpack.c.h.bf16 %v526_v61  ;;  %v976_v53 = vunpack.c.l.bf16 %v571_v36 }
 0x1e4   : > { %2641 = vst.msk [vmem:[%s4220_s19 + $0x60] sm:$0xff] %vm2628_vm0, %v1970_v16  ;;  %v1985_v27 = vadd.f32 %v3064_v24, %v4081_v0  ;;  %1582 = vmatprep.mubr.f32.mxu0 %v903_v42  ;;  %3209 = vmatprep.mubr.f32.mxu1 %v964_v43  ;;  %v528_v42 = vld [vmem:[%s3531_s29 + $0x474] sm:$0xff]  ;;  %v575_v43 = vld [vmem:[%s3531_s29 + $0x590] ss:$12 sps:$4 sm:$0xff]  }
 0x1e5   : > { %v1341_v11 = vpop.f32.mrf.mxu0  ;;  %v1979_v10 = vpop.f32.mrf.mxu1  ;;  %v912_v24 = vunpack.c.h.bf16 %v528_v42  ;;  %v985_v61 = vunpack.c.h.bf16 %v575_v43 }
 0x1e6   : > { %2644 = vst.msk [vmem:[%s4220_s19 + $0x78] sm:$0xff] %vm2628_vm0, %v1985_v27  ;;  %v1980_v20 = vadd.f32 %v1979_v10, %v4075_v40  ;;  %v530_v27 = vld [vmem:[%s3531_s29 + $0x480] sm:$0xff]  ;;  %v911_v10 = vunpack.c.l.bf16 %v528_v42 }
 0x1e7   : > { %v4298_v38 = vpop.f32.mrf.mxu0  ;;  %1583 = vmatmul.mubr.f32.gmra.mxu0 %v902_v48  ;;  %v3067_v0 = vpop.f32.mrf.mxu1  ;;  %3210 = vmatmul.mubr.f32.gmra.mxu1 %v967_v32  ;;  %v982_v48 = vunpack.c.l.bf16 %v575_v43 }
 0x1e8   : > { %2643 = vst.msk [vmem:[%s4220_s19 + $0x70] sm:$0xff] %vm2628_vm0, %v1980_v20  ;;  %v1995_v55 = vadd.f32 %v3067_v0, %v4093_v30  ;;  %1587 = vmatprep.mubr.f32.mxu0 %v906_v52  ;;  %3212 = vmatprep.mubr.f32.mxu1 %v970_v46  ;;  %v579_v52 = vld [vmem:[%s3531_s29 + $0x5a8] ss:$12 sps:$4 sm:$0xff]   ;;  %v915_v20 = vunpack.c.h.bf16 %v530_v27 }
 0x1e9   : > { %v1346_v17 = vpop.f32.mrf.mxu0  ;;  %v1989_v40 = vpop.f32.mrf.mxu1  ;;  %v988_v0 = vunpack.c.l.bf16 %v579_v52 }
 0x1ea   : > { %2646 = vst.msk [vmem:[%s4220_s19 + $0x88] sm:$0xff] %vm2628_vm0, %v1995_v55  ;;  %v1990_v8 = vadd.f32 %v1989_v40, %v4087_v12  ;;  %v583_v55 = vld [vmem:[%s3531_s29 + $0x5c0] ss:$12 sps:$4 sm:$0xff]   ;;  %v914_v17 = vunpack.c.l.bf16 %v530_v27  ;;  %v991_v40 = vunpack.c.h.bf16 %v579_v52 }
 0x1eb   : > { %v4308_v44 = vpop.f32.mrf.mxu0  ;;  %1588 = vmatmul.mubr.f32.gmra.mxu0 %v905_v21  ;;  %v3070_v30 = vpop.f32.mrf.mxu1  ;;  %3213 = vmatmul.mubr.f32.gmra.mxu1 %v973_v6  ;;  %v532_v6 = vld [vmem:[%s3531_s29 + $0x48c] sm:$0xff] }
 0x1ec   : > { %2645 = vst.msk [vmem:[%s4220_s19 + $0x80] sm:$0xff] %vm2628_vm0, %v1990_v8  ;;  %v2005_v16 = vadd.f32 %v3070_v30, %v4105_v4  ;;  %1592 = vmatprep.mubr.f32.mxu0 %v909_v26  ;;  %3215 = vmatprep.mubr.f32.mxu1 %v976_v53  ;;  %v918_v43 = vunpack.c.h.bf16 %v532_v6  ;;  %v994_v8 = vunpack.c.l.bf16 %v583_v55 }
 0x1ed   : > { %v1351_v32 = vpop.f32.mrf.mxu0  ;;  %v1999_v12 = vpop.f32.mrf.mxu1 }
 0x1ee   : > { %2648 = vst.msk [vmem:[%s4220_s19 + $0x98] sm:$0xff] %vm2628_vm0, %v2005_v16  ;;  %v2000_v46 = vadd.f32 %v1999_v12, %v4099_v50  ;;  %v997_v32 = vunpack.c.h.bf16 %v583_v55 }
 0x1ef   : > { %v4318_v11 = vpop.f32.mrf.mxu0  ;;  %1593 = vmatmul.mubr.f32.gmra.mxu0 %v908_v18  ;;  %v3073_v4 = vpop.f32.mrf.mxu1  ;;  %3216 = vmatmul.mubr.f32.gmra.mxu1 %v979_v57  ;;  %v534_v18 = vld [vmem:[%s3531_s29 + $0x498] sm:$0xff] }
 0x1f0   : > { %2647 = vst.msk [vmem:[%s4220_s19 + $0x90] sm:$0xff] %vm2628_vm0, %v2000_v46  ;;  %v2015_v36 = vadd.f32 %v3073_v4, %v4117_v59  ;;  %1597 = vmatprep.mubr.f32.mxu0 %v912_v24  ;;  %3218 = vmatprep.mubr.f32.mxu1 %v982_v48  ;;  %v587_v57 = vld [vmem:[%s3531_s29 + $0x5d8] ss:$12 sps:$4 sm:$0xff]   ;;  %v917_v48 = vunpack.c.l.bf16 %v532_v6  ;;  %v921_v27 = vunpack.c.h.bf16 %v534_v18 }
 0x1f1   : > { %v1356_v21 = vpop.f32.mrf.mxu0  ;;  %v2009_v50 = vpop.f32.mrf.mxu1  ;;  %v1000_v52 = vunpack.c.l.bf16 %v587_v57  ;;  %v536_v4 = vld [vmem:[%s3531_s29 + $0x4a4] sm:$0xff] }
 0x1f2   : > { %2650 = vst.msk [vmem:[%s4220_s19 + $0xa8] sm:$0xff] %vm2628_vm0, %v2015_v36  ;;  %v2010_v26 = vadd.f32 %v2009_v50, %v4111_v34  ;;  %v924_v50 = vunpack.c.h.bf16 %v536_v4 }
 0x1f3   : > { %v4328_v53 = vpop.f32.mrf.mxu0  ;;  %1598 = vmatmul.mubr.f32.gmra.mxu0 %v911_v10  ;;  %v3076_v59 = vpop.f32.mrf.mxu1  ;;  %3219 = vmatmul.mubr.f32.gmra.mxu1 %v985_v61  ;;  %v591_v10 = vld [vmem:[%s3531_s29 + $0x5f0] ss:$12 sps:$4 sm:$0xff]  }
 0x1f4   : > { %2649 = vst.msk [vmem:[%s4220_s19 + $0xa0] sm:$0xff] %vm2628_vm0, %v2010_v26  ;;  %v2025_v42 = vadd.f32 %v3076_v59, %v4129_v14  ;;  %1602 = vmatprep.mubr.f32.mxu0 %v915_v20  ;;  %3221 = vmatprep.mubr.f32.mxu1 %v988_v0  ;;  %v920_v20 = vunpack.c.l.bf16 %v534_v18  ;;  %v1003_v0 = vunpack.c.h.bf16 %v587_v57  ;;  %v1006_v6 = vunpack.c.l.bf16 %v591_v10  ;;  %v538_v26 = vld [vmem:[%s3531_s29 + $0x4b0] sm:$0xff]  ;;  %v540_v57 = vld [vmem:[%s3531_s29 + $0x4bc] sm:$0xff] }
 0x1f5   : > { %v1361_v30 = vpop.f32.mrf.mxu0  ;;  %v2019_v34 = vpop.f32.mrf.mxu1  ;;  %v595_v59 = vld [vmem:[%s3531_s29 + $0x608] ss:$12 sps:$4 sm:$0xff]  }
 0x1f6   : > { %2652 = vst.msk [vmem:[%s4220_s19 + $0xb8] sm:$0xff] %vm2628_vm0, %v2025_v42  ;;  %v2020_v16 = vadd.f32 %v2019_v34, %v4123_v22  ;;  %v923_v42 = vunpack.c.l.bf16 %v536_v4  ;;  %v927_v30 = vunpack.c.h.bf16 %v538_v26  ;;  %v1012_v34 = vunpack.c.l.bf16 %v595_v59  ;;  %v542_v4 = vld [vmem:[%s3531_s29 + $0x4c8] sm:$0xff] }
 0x1f7   : > { %v4338_v24 = vpop.f32.mrf.mxu0  ;;  %1603 = vmatmul.mubr.f32.gmra.mxu0 %v914_v17  ;;  %v3079_v14 = vpop.f32.mrf.mxu1  ;;  %3222 = vmatmul.mubr.f32.gmra.mxu1 %v991_v40 }
 0x1f8   : > { %2651 = vst.msk [vmem:[%s4220_s19 + $0xb0] sm:$0xff] %vm2628_vm0, %v2020_v16  ;;  %v2035_v12 = vadd.f32 %v3079_v14, %v4141_v15  ;;  %1607 = vmatprep.mubr.f32.mxu0 %v918_v43  ;;  %3224 = vmatprep.mubr.f32.mxu1 %v994_v8  ;;  %v1009_v43 = vunpack.c.h.bf16 %v591_v10  ;;  %v599_v16 = vld [vmem:[%s3531_s29 + $0x620] ss:$12 sps:$4 sm:$0xff]   ;;  %v603_v10 = vld [vmem:[%s3531_s29 + $0x638] ss:$12 sps:$4 sm:$0xff]  }
 0x1f9   : > { %v1366_v46 = vpop.f32.mrf.mxu0  ;;  %v2029_v22 = vpop.f32.mrf.mxu1 }
 0x1fa   : > { %2654 = vst.msk [vmem:[%s4220_s19 + $0xc8] sm:$0xff] %vm2628_vm0, %v2035_v12  ;;  %v2030_v61 = vadd.f32 %v2029_v22, %v4135_v23  ;;  %v1015_v12 = vunpack.c.h.bf16 %v595_v59  ;;  %v1018_v46 = vunpack.c.l.bf16 %v599_v16 }
 0x1fb   : > { %v4348_v36 = vpop.f32.mrf.mxu0  ;;  %1608 = vmatmul.mubr.f32.gmra.mxu0 %v917_v48  ;;  %v3082_v15 = vpop.f32.mrf.mxu1  ;;  %3225 = vmatmul.mubr.f32.gmra.mxu1 %v997_v32  ;;  %v926_v32 = vunpack.c.l.bf16 %v538_v26  ;;  %v607_v26 = vld [vmem:[%s3531_s29 + $0x650] ss:$12 sps:$4 sm:$0xff]  }
 0x1fc   : > { %2653 = vst.msk [vmem:[%s4220_s19 + $0xc0] sm:$0xff] %vm2628_vm0, %v2030_v61  ;;  %v2045_v21 = vadd.f32 %v3082_v15, %v4153_v60  ;;  %1612 = vmatprep.mubr.f32.mxu0 %v921_v27  ;;  %3227 = vmatprep.mubr.f32.mxu1 %v1000_v52  ;;  %v930_v52 = vunpack.c.h.bf16 %v540_v57 }
 0x1fd   : > { %v1371_v55 = vpop.f32.mrf.mxu0  ;;  %v2039_v23 = vpop.f32.mrf.mxu1 }
 0x1fe   : > { %2656 = vst.msk [vmem:[%s4220_s19 + $0xd8] sm:$0xff] %vm2628_vm0, %v2045_v21  ;;  %v2040_v17 = vadd.f32 %v2039_v23, %v4147_v35  ;;  %v544_v23 = vld [vmem:[%s3531_s29 + $0x4d4] sm:$0xff] }
 0x1ff   : > { %v4358_v40 = vpop.f32.mrf.mxu0  ;;  %1613 = vmatmul.mubr.f32.gmra.mxu0 %v920_v20  ;;  %v3085_v60 = vpop.f32.mrf.mxu1  ;;  %3228 = vmatmul.mubr.f32.gmra.mxu1 %v1003_v0  ;;  %v929_v20 = vunpack.c.l.bf16 %v540_v57  ;;  %v1021_v0 = vunpack.c.h.bf16 %v599_v16 }
 0x200   : > { %2655 = vst.msk [vmem:[%s4220_s19 + $0xd0] sm:$0xff] %vm2628_vm0, %v2040_v17  ;;  %v2055_v8 = vadd.f32 %v3085_v60, %v4165_v5  ;;  %1617 = vmatprep.mubr.f32.mxu0 %v924_v50  ;;  %3230 = vmatprep.mubr.f32.mxu1 %v1006_v6  ;;  %v933_v50 = vunpack.c.h.bf16 %v542_v4  ;;  %v1024_v6 = vunpack.c.l.bf16 %v603_v10  ;;  %v932_v60 = vunpack.c.l.bf16 %v542_v4 }
 0x201   : > { %v1376_v18 = vpop.f32.mrf.mxu0  ;;  %v2049_v35 = vpop.f32.mrf.mxu1 }
 0x202   : > { %2658 = vst.msk [vmem:[%s4220_s19 + $0xe8] sm:$0xff] %vm2628_vm0, %v2055_v8  ;;  %v2050_v14 = vadd.f32 %v2049_v35, %v4159_v51  ;;  %v936_v8 = vunpack.c.h.bf16 %v544_v23  ;;  %v546_v18 = vld [vmem:[%s3531_s29 + $0x4e0] sm:$0xff]  ;;  %v611_v35 = vld [vmem:[%s3531_s29 + $0x668] ss:$12 sps:$4 sm:$0xff]  }
 0x203   : > { %v4368_v48 = vpop.f32.mrf.mxu0  ;;  %1618 = vmatmul.mubr.f32.gmra.mxu0 %v923_v42  ;;  %v3088_v5 = vpop.f32.mrf.mxu1  ;;  %3231 = vmatmul.mubr.f32.gmra.mxu1 %v1009_v43  ;;  %v1027_v42 = vunpack.c.h.bf16 %v603_v10  ;;  %v938_v10 = vunpack.c.l.bf16 %v546_v18 }
 0x204   : > { %2657 = vst.msk [vmem:[%s4220_s19 + $0xe0] sm:$0xff] %vm2628_vm0, %v2050_v14  ;;  %v2065_v27 = vadd.f32 %v3088_v5, %v4177_v31  ;;  %1622 = vmatprep.mubr.f32.mxu0 %v927_v30  ;;  %3233 = vmatprep.mubr.f32.mxu1 %v1012_v34  ;;  %v1030_v30 = vunpack.c.l.bf16 %v607_v26  ;;  %v935_v14 = vunpack.c.l.bf16 %v544_v23  ;;  %v1033_v5 = vunpack.c.h.bf16 %v607_v26 }
 0x205   : > { %v1381_v22 = vpop.f32.mrf.mxu0  ;;  %v2059_v51 = vpop.f32.mrf.mxu1 }
 0x206   : > { %2660 = vst.msk [vmem:[%s4220_s19 + $0xf8] sm:$0xff] %vm2628_vm0, %v2065_v27  ;;  %v2060_v61 = vadd.f32 %v2059_v51, %v4171_v13  ;;  %v1036_v27 = vunpack.c.l.bf16 %v611_v35  ;;  %v615_v22 = vld [vmem:[%s3531_s29 + $0x680] ss:$12 sps:$4 sm:$0xff]  }
 0x207   : > { %v4378_v15 = vpop.f32.mrf.mxu0  ;;  %1623 = vmatmul.mubr.f32.gmra.mxu0 %v926_v32  ;;  %v3091_v31 = vpop.f32.mrf.mxu1  ;;  %3234 = vmatmul.mubr.f32.gmra.mxu1 %v1015_v12  ;;  %v939_v12 = vunpack.c.h.bf16 %v546_v18  ;;  %v1045_v26 = vunpack.c.h.bf16 %v615_v22 }
 0x208   : > { %2659 = vst.msk [vmem:[%s4220_s19 + $0xf0] sm:$0xff] %vm2628_vm0, %v2060_v61  ;;  %v2075_v21 = vadd.f32 %v3091_v31, %v4193_v63  ;;  %1627 = vmatprep.mubr.f32.mxu0 %v930_v52  ;;  %3236 = vmatprep.mubr.f32.mxu1 %v1018_v46  ;;  %v548_v46 = vld [vmem:[%s3531_s29 + $0x4ec] sm:$0xff]  ;;  %v1039_v61 = vunpack.c.h.bf16 %v611_v35 }
 0x209   : > { %v1386_v55 = vpop.f32.mrf.mxu0  ;;  %v2069_v13 = vpop.f32.mrf.mxu1  ;;  %v941_v23 = vunpack.c.l.bf16 %v548_v46 }
 0x20a   : > { %2662 = vst.msk [vmem:[%s4220_s19 + $0x108] sm:$0xff] %vm2628_vm0, %v2075_v21  ;;  %v2070_v59 = vadd.f32 %v2069_v13, %v4183_v41 }
 0x20b   : > { %v4388_v17 = vpop.f32.mrf.mxu0  ;;  %1628 = vmatmul.mubr.f32.gmra.mxu0 %v929_v20  ;;  %v3094_v63 = vpop.f32.mrf.mxu1  ;;  %3237 = vmatmul.mubr.f32.gmra.mxu1 %v1021_v0  ;;  %v942_v20 = vunpack.c.h.bf16 %v548_v46  ;;  %v1042_v0 = vunpack.c.l.bf16 %v615_v22 }
 0x20c   : > { %2661 = vst.msk [vmem:[%s4220_s19 + $0x100] sm:$0xff] %vm2628_vm0, %v2070_v59  ;;  %v2085_v43 = vadd.f32 %v3094_v63, %v4209_v45  ;;  %1632 = vmatprep.mubr.f32.mxu0 %v933_v50  ;;  %3239 = vmatprep.mubr.f32.mxu1 %v1024_v6  ;;  %v550_v50 = vld [vmem:[%s3531_s29 + $0x4f8] sm:$0xff] }
 0x20d   : > { %v1391_v34 = vpop.f32.mrf.mxu0  ;;  %v2079_v41 = vpop.f32.mrf.mxu1  ;;  %v619_v6 = vld [vmem:[%s3531_s29 + $0x698] ss:$12 sps:$4 sm:$0xff]   ;;  %v945_v63 = vunpack.c.h.bf16 %v550_v50 }
 0x20e   : > { %2664 = vst.msk [vmem:[%s4220_s19 + $0x118] sm:$0xff] %vm2628_vm0, %v2085_v43  ;;  %v2080_v57 = vadd.f32 %v2079_v41, %v4200_v25  ;;  %v552_v43 = vld [vmem:[%s3531_s29 + $0x504] sm:$0xff]  ;;  %v1051_v18 = vunpack.c.h.bf16 %v619_v6 }
 0x20f   : > { %v4398_v16 = vpop.f32.mrf.mxu0  ;;  %1633 = vmatmul.mubr.f32.gmra.mxu0 %v932_v60  ;;  %v3097_v45 = vpop.f32.mrf.mxu1  ;;  %3240 = vmatmul.mubr.f32.gmra.mxu1 %v1027_v42  ;;  %v1048_v60 = vunpack.c.l.bf16 %v619_v6 }
 0x210   : > { %2663 = vst.msk [vmem:[%s4220_s19 + $0x110] sm:$0xff] %vm2628_vm0, %v2080_v57  ;;  %v2095_v32 = vadd.f32 %v3097_v45, %v4228_v54  ;;  %1637 = vmatprep.mubr.f32.mxu0 %v936_v8  ;;  %3242 = vmatprep.mubr.f32.mxu1 %v1030_v30  ;;  %v623_v8 = vld [vmem:[%s3531_s29 + $0x6b0] ss:$12 sps:$4 sm:$0xff]   ;;  %v948_v57 = vunpack.c.h.bf16 %v552_v43 }
 0x211   : > { %v1396_v52 = vpop.f32.mrf.mxu0  ;;  %v2089_v25 = vpop.f32.mrf.mxu1  ;;  %v1054_v45 = vunpack.c.l.bf16 %v623_v8 }
 0x212   : > { %2666 = vst.msk [vmem:[%s4220_s19 + $0x128] sm:$0xff] %vm2628_vm0, %v2095_v32  ;;  %v2090_v51 = vadd.f32 %v2089_v25, %v4215_v56  ;;  %v1057_v52 = vunpack.c.h.bf16 %v623_v8 }
 0x213   : > { %v4408_v4 = vpop.f32.mrf.mxu0  ;;  %1638 = vmatmul.mubr.f32.gmra.mxu0 %v935_v14  ;;  %v3100_v54 = vpop.f32.mrf.mxu1  ;;  %3243 = vmatmul.mubr.f32.gmra.mxu1 %v1033_v5 }
 0x214   : > { %2665 = vst.msk [vmem:[%s4220_s19 + $0x120] sm:$0xff] %vm2628_vm0, %v2090_v51  ;;  %v2105_v31 = vadd.f32 %v3100_v54, %v4248_v2  ;;  %1642 = vmatprep.mubr.f32.mxu0 %v939_v12  ;;  %3245 = vmatprep.mubr.f32.mxu1 %v1036_v27  ;;  %v947_v27 = vunpack.c.l.bf16 %v552_v43 }
 0x215   : > { %v1401_v21 = vpop.f32.mrf.mxu0  ;;  %v2099_v56 = vpop.f32.mrf.mxu1 }
 0x216   : > { %2668 = vst.msk [vmem:[%s4220_s19 + $0x138] sm:$0xff] %vm2628_vm0, %v2105_v31  ;;  %v2100_v55 = vadd.f32 %v2099_v56, %v4238_v37 }
 0x217   : > { %v4418_v13 = vpop.f32.mrf.mxu0  ;;  %1643 = vmatmul.mubr.f32.gmra.mxu0 %v938_v10  ;;  %v3103_v2 = vpop.f32.mrf.mxu1  ;;  %3246 = vmatmul.mubr.f32.gmra.mxu1 %v1039_v61 }
 0x218   : > { %2667 = vst.msk [vmem:[%s4220_s19 + $0x130] sm:$0xff] %vm2628_vm0, %v2100_v55  ;;  %v2115_v59 = vadd.f32 %v3103_v2, %v4268_v3  ;;  %1647 = vmatprep.mubr.f32.mxu0 %v942_v20  ;;  %3248 = vmatprep.mubr.f32.mxu1 %v1042_v0  ;;  %v944_v3 = vunpack.c.l.bf16 %v550_v50 }
 0x219   : > { %v1406_v42 = vpop.f32.mrf.mxu0  ;;  %v2109_v37 = vpop.f32.mrf.mxu1 }
 0x21a   : > { %2670 = vst.msk [vmem:[%s4220_s19 + $0x148] sm:$0xff] %vm2628_vm0, %v2115_v59  ;;  %v2110_v30 = vadd.f32 %v2109_v37, %v4258_v47 }
 0x21b   : > { %v4428_v34 = vpop.f32.mrf.mxu0  ;;  %1648 = vmatmul.mubr.f32.gmra.mxu0 %v941_v23  ;;  %v3106_v41 = vpop.f32.mrf.mxu1  ;;  %3249 = vmatmul.mubr.f32.gmra.mxu1 %v1045_v26 }
 0x21c   : > { %2669 = vst.msk [vmem:[%s4220_s19 + $0x140] sm:$0xff] %vm2628_vm0, %v2110_v30  ;;  %v2125_v35 = vadd.f32 %v3106_v41, %v4288_v1  ;;  %1652 = vmatprep.mubr.f32.mxu0 %v945_v63  ;;  %3251 = vmatprep.mubr.f32.mxu1 %v1048_v60 }
 0x21d   : > { %v1411_v14 = vpop.f32.mrf.mxu0  ;;  %v2119_v5 = vpop.f32.mrf.mxu1 }
 0x21e   : > { %2672 = vst.msk [vmem:[%s4220_s19 + $0x158] sm:$0xff] %vm2628_vm0, %v2125_v35  ;;  %v2120_v47 = vadd.f32 %v2119_v5, %v4278_v28 }
 0x21f   : > { %v4436_v32 = vpop.f32.mrf.mxu0  ;;  %1653 = vmatmul.mubr.f32.gmra.mxu0 %v944_v3  ;;  %v3109_v12 = vpop.f32.mrf.mxu1  ;;  %3252 = vmatmul.mubr.f32.gmra.mxu1 %v1051_v18 }
 0x220   : > { %2671 = vst.msk [vmem:[%s4220_s19 + $0x150] sm:$0xff] %vm2628_vm0, %v2120_v47  ;;  %v2135_v1 = vadd.f32 %v3109_v12, %v4308_v44  ;;  %1657 = vmatprep.mubr.f32.mxu0 %v948_v57  ;;  %3254 = vmatprep.mubr.f32.mxu1 %v1054_v45 }
 0x221   : > { %v1416_v25 = vpop.f32.mrf.mxu0  ;;  %v2129_v46 = vpop.f32.mrf.mxu1 }
 0x222   : > { %2674 = vst.msk [vmem:[%s4220_s19 + $0x168] sm:$0xff] %vm2628_vm0, %v2135_v1  ;;  %v2130_v28 = vadd.f32 %v2129_v46, %v4298_v38 }
 0x223   : > { %v1419_v22 = vpop.f32.mrf.mxu0  ;;  %1658 = vmatmul.mubr.f32.gmra.mxu0 %v947_v27  ;;  %v3112_v51 = vpop.f32.mrf.mxu1  ;;  %3255 = vmatmul.mubr.f32.gmra.mxu1 %v1057_v52 }
 0x224   : > { %2673 = vst.msk [vmem:[%s4220_s19 + $0x160] sm:$0xff] %vm2628_vm0, %v2130_v28  ;;  %v2145_v54 = vadd.f32 %v3112_v51, %v4328_v53 }
 0x225   : > { %v1421_v44 = vpop.f32.mrf.mxu0  ;;  %v2139_v10 = vpop.f32.mrf.mxu1 }
 0x226   : > { %2676 = vst.msk [vmem:[%s4220_s19 + $0x178] sm:$0xff] %vm2628_vm0, %v2145_v54  ;;  %v2140_v61 = vadd.f32 %v2139_v10, %v4318_v11 }
 0x227   : > { %v1424_v31 = vpop.f32.mrf.mxu0  ;;  %v3115_v20 = vpop.f32.mrf.mxu1 }
 0x228   : > { %2675 = vst.msk [vmem:[%s4220_s19 + $0x170] sm:$0xff] %vm2628_vm0, %v2140_v61  ;;  %v2155_v38 = vadd.f32 %v3115_v20, %v4348_v36 }
 0x229   : > { %v1426_v0 = vpop.f32.mrf.mxu0  ;;  %v2149_v21 = vpop.f32.mrf.mxu1 }
 0x22a   : > { %2678 = vst.msk [vmem:[%s4220_s19 + $0x188] sm:$0xff] %vm2628_vm0, %v2155_v38  ;;  %v2150_v53 = vadd.f32 %v2149_v21, %v4338_v24 }
 0x22b   : > { %v1429_v56 = vpop.f32.mrf.mxu0  ;;  %v3118_v50 = vpop.f32.mrf.mxu1 }
 0x22c   : > { %2677 = vst.msk [vmem:[%s4220_s19 + $0x180] sm:$0xff] %vm2628_vm0, %v2150_v53  ;;  %v2165_v11 = vadd.f32 %v3118_v50, %v4368_v48 }
 0x22d   : > { %v1431_v6 = vpop.f32.mrf.mxu0  ;;  %v2159_v55 = vpop.f32.mrf.mxu1 }
 0x22e   : > { %2680 = vst.msk [vmem:[%s4220_s19 + $0x198] sm:$0xff] %vm2628_vm0, %v2165_v11  ;;  %v2160_v36 = vadd.f32 %v2159_v55, %v4358_v40 }
 0x22f   : > { %v1434_v2 = vpop.f32.mrf.mxu0  ;;  %v3121_v23 = vpop.f32.mrf.mxu1 }
 0x230   : > { %2679 = vst.msk [vmem:[%s4220_s19 + $0x190] sm:$0xff] %vm2628_vm0, %v2160_v36  ;;  %v2175_v24 = vadd.f32 %v3121_v23, %v4388_v17 }
 0x231   : > { %v1436_v26 = vpop.f32.mrf.mxu0  ;;  %v2169_v59 = vpop.f32.mrf.mxu1 }
 0x232   : > { %2682 = vst.msk [vmem:[%s4220_s19 + $0x1a8] sm:$0xff] %vm2628_vm0, %v2175_v24  ;;  %v2170_v48 = vadd.f32 %v2169_v59, %v4378_v15 }
 0x233   : > { %v1439_v63 = vpop.f32.mrf.mxu0  ;;  %v3124_v60 = vpop.f32.mrf.mxu1 }
 0x234   : > { %2681 = vst.msk [vmem:[%s4220_s19 + $0x1a0] sm:$0xff] %vm2628_vm0, %v2170_v48  ;;  %v2185_v40 = vadd.f32 %v3124_v60, %v4408_v4 }
 0x235   : > { %v1441_v42 = vpop.f32.mrf.mxu0  ;;  %v2179_v37 = vpop.f32.mrf.mxu1 }
 0x236   : > { %2684 = vst.msk [vmem:[%s4220_s19 + $0x1b8] sm:$0xff] %vm2628_vm0, %v2185_v40  ;;  %v2180_v17 = vadd.f32 %v2179_v37, %v4398_v16 }
 0x237   : > { %v1444_v43 = vpop.f32.mrf.mxu0  ;;  %v3127_v8 = vpop.f32.mrf.mxu1 }
 0x238   : > { %2683 = vst.msk [vmem:[%s4220_s19 + $0x1b0] sm:$0xff] %vm2628_vm0, %v2180_v17  ;;  %v2195_v15 = vadd.f32 %v3127_v8, %v4428_v34 }
 0x239   : > { %v1446_v30 = vpop.f32.mrf.mxu0  ;;  %v2189_v41 = vpop.f32.mrf.mxu1 }
 0x23a   : > { %2686 = vst.msk [vmem:[%s4220_s19 + $0x1c8] sm:$0xff] %vm2628_vm0, %v2195_v15  ;;  %v2190_v4 = vadd.f32 %v2189_v41, %v4418_v13 }
 0x23b   : > { %v1449_v3 = vpop.f32.mrf.mxu0  ;;  %v3130_v18 = vpop.f32.mrf.mxu1 }
 0x23c   : > { %2685 = vst.msk [vmem:[%s4220_s19 + $0x1c0] sm:$0xff] %vm2628_vm0, %v2190_v4  ;;  %v2205_v16 = vadd.f32 %v3130_v18, %v1419_v22 }
 0x23d   : > { %v1451_v35 = vpop.f32.mrf.mxu0  ;;  %v2199_v57 = vpop.f32.mrf.mxu1 }
 0x23e   : > { %2688 = vst.msk [vmem:[%s4220_s19 + $0x1d8] sm:$0xff] %vm2628_vm0, %v2205_v16  ;;  %v2200_v34 = vadd.f32 %v2199_v57, %v4436_v32 }
 0x23f   : > { %v1454_v45 = vpop.f32.mrf.mxu0  ;;  %v3133_v14 = vpop.f32.mrf.mxu1 }
 0x240   : > { %2687 = vst.msk [vmem:[%s4220_s19 + $0x1d0] sm:$0xff] %vm2628_vm0, %v2200_v34  ;;  %v2215_v5 = vadd.f32 %v3133_v14, %v1429_v56 }
 0x241   : > { %v1456_v13 = vpop.f32.mrf.mxu0  ;;  %v2209_v47 = vpop.f32.mrf.mxu1 }
 0x242   : > { %2690 = vst.msk [vmem:[%s4220_s19 + $0x1e8] sm:$0xff] %vm2628_vm0, %v2215_v5  ;;  %v2210_v12 = vadd.f32 %v2209_v47, %v1424_v31 }
 0x243   : > { %v1459_v27 = vpop.f32.mrf.mxu0  ;;  %v3136_v52 = vpop.f32.mrf.mxu1 }
 0x244   : > { %2689 = vst.msk [vmem:[%s4220_s19 + $0x1e0] sm:$0xff] %vm2628_vm0, %v2210_v12  ;;  %v2225_v1 = vadd.f32 %v3136_v52, %v1439_v63 }
 0x245   : > { %v1461_v25 = vpop.f32.mrf.mxu0  ;;  %v2219_v32 = vpop.f32.mrf.mxu1 }
 0x246   : > { %2692 = vst.msk [vmem:[%s4220_s19 + $0x1f8] sm:$0xff] %vm2628_vm0, %v2225_v1  ;;  %v2220_v46 = vadd.f32 %v2219_v32, %v1434_v2 }
 0x247   : > { %v1464_v28 = vpop.f32.mrf.mxu0  ;;  %v3139_v22 = vpop.f32.mrf.mxu1 }
 0x248   : > { %2691 = vst.msk [vmem:[%s4220_s19 + $0x1f0] sm:$0xff] %vm2628_vm0, %v2220_v46  ;;  %v2235_v51 = vadd.f32 %v3139_v22, %v1449_v3 }
 0x249   : > { %v1466_v54 = vpop.f32.mrf.mxu0  ;;  %v2229_v44 = vpop.f32.mrf.mxu1 }
 0x24a   : > { %2694 = vst.msk [vmem:[%s4220_s19 + $0x208] sm:$0xff] %vm2628_vm0, %v2235_v51  ;;  %v2230_v10 = vadd.f32 %v2229_v44, %v1444_v43 }
 0x24b   : > { %v1469_v61 = vpop.f32.mrf.mxu0  ;;  %v3142_v31 = vpop.f32.mrf.mxu1 }
 0x24c   : > { %2693 = vst.msk [vmem:[%s4220_s19 + $0x200] sm:$0xff] %vm2628_vm0, %v2230_v10  ;;  %v2245_v20 = vadd.f32 %v3142_v31, %v1459_v27 }
 0x24d   : > { %v1471_v38 = vpop.f32.mrf.mxu0  ;;  %v2239_v0 = vpop.f32.mrf.mxu1 }
 0x24e   : > { %2696 = vst.msk [vmem:[%s4220_s19 + $0x218] sm:$0xff] %vm2628_vm0, %v2245_v20  ;;  %v2240_v21 = vadd.f32 %v2239_v0, %v1454_v45 }
 0x24f   : > { %v1474_v53 = vpop.f32.mrf.mxu0  ;;  %v3145_v56 = vpop.f32.mrf.mxu1 }
 0x250   : > { %2695 = vst.msk [vmem:[%s4220_s19 + $0x210] sm:$0xff] %vm2628_vm0, %v2240_v21  ;;  %v2255_v50 = vadd.f32 %v3145_v56, %v1469_v61 }
 0x251   : > { %v1476_v11 = vpop.f32.mrf.mxu0  ;;  %v2249_v6 = vpop.f32.mrf.mxu1 }
 0x252   : > { %2698 = vst.msk [vmem:[%s4220_s19 + $0x228] sm:$0xff] %vm2628_vm0, %v2255_v50  ;;  %v2250_v55 = vadd.f32 %v2249_v6, %v1464_v28 }
 0x253   : > { %v1479_v36 = vpop.f32.mrf.mxu0  ;;  %v3148_v2 = vpop.f32.mrf.mxu1 }
 0x254   : > { %2697 = vst.msk [vmem:[%s4220_s19 + $0x220] sm:$0xff] %vm2628_vm0, %v2250_v55  ;;  %v2265_v23 = vadd.f32 %v3148_v2, %v1479_v36 }
 0x255   : > { %v1481_v24 = vpop.f32.mrf.mxu0  ;;  %v2259_v26 = vpop.f32.mrf.mxu1 }
 0x256   : > { %2700 = vst.msk [vmem:[%s4220_s19 + $0x238] sm:$0xff] %vm2628_vm0, %v2265_v23  ;;  %v2260_v59 = vadd.f32 %v2259_v26, %v1474_v53 }
 0x257   : > { %v1484_v48 = vpop.f32.mrf.mxu0  ;;  %v3151_v63 = vpop.f32.mrf.mxu1 }
 0x258   : > { %2699 = vst.msk [vmem:[%s4220_s19 + $0x230] sm:$0xff] %vm2628_vm0, %v2260_v59 }
 0x259   : > { %v1486_v60 = vpop.f32.mrf.mxu0  ;;  %v2269_v40 = vpop.f32.mrf.mxu1 }
 0x25a   : > { %v2270_v42 = vadd.f32 %v2269_v40, %v1484_v48 }
 0x25b   : > { %v1489_v37 = vpop.f32.mrf.mxu0  ;;  %v3154_v17 = vpop.f32.mrf.mxu1 }
 0x25c   : > { %2701 = vst.msk [vmem:[%s4220_s19 + $0x240] sm:$0xff] %vm2628_vm0, %v2270_v42  ;;  %v2275_v43 = vadd.f32 %v3151_v63, %v1489_v37 }
 0x25d   : > { %v1491_v8 = vpop.f32.mrf.mxu0  ;;  %v2279_v15 = vpop.f32.mrf.mxu1 }
 0x25e   : > { %2702 = vst.msk [vmem:[%s4220_s19 + $0x248] sm:$0xff] %vm2628_vm0, %v2275_v43 }
 0x25f   : > { %v1494_v30 = vpop.f32.mrf.mxu0  ;;  %v3157_v41 = vpop.f32.mrf.mxu1 }
 0x260   : > { %v2280_v4 = vadd.f32 %v2279_v15, %v1494_v30 }
 0x261   : > { %v1496_v3 = vpop.f32.mrf.mxu0  ;;  %v2289_v18 = vpop.f32.mrf.mxu1 }
 0x262   : > { %2703 = vst.msk [vmem:[%s4220_s19 + $0x250] sm:$0xff] %vm2628_vm0, %v2280_v4 }
 0x263   : > { %v1499_v16 = vpop.f32.mrf.mxu0  ;;  %v3160_v35 = vpop.f32.mrf.mxu1 }
 0x264   : > { %v2285_v57 = vadd.f32 %v3154_v17, %v1499_v16 }
 0x265   : > { %v1501_v34 = vpop.f32.mrf.mxu0  ;;  %v2299_v45 = vpop.f32.mrf.mxu1 }
 0x266   : > { %2704 = vst.msk [vmem:[%s4220_s19 + $0x258] sm:$0xff] %vm2628_vm0, %v2285_v57 }
 0x267   : > { %v1504_v14 = vpop.f32.mrf.mxu0  ;;  %v3163_v5 = vpop.f32.mrf.mxu1 }
 0x268   : > { %v2290_v13 = vadd.f32 %v2289_v18, %v1504_v14 }
 0x269   : > { %v1506_v47 = vpop.f32.mrf.mxu0  ;;  %v2309_v12 = vpop.f32.mrf.mxu1 }
 0x26a   : > { %2705 = vst.msk [vmem:[%s4220_s19 + $0x260] sm:$0xff] %vm2628_vm0, %v2290_v13 }
 0x26b   : > { %v1509_v27 = vpop.f32.mrf.mxu0  ;;  %v3166_v52 = vpop.f32.mrf.mxu1 }
 0x26c   : > { %v2295_v1 = vadd.f32 %v3157_v41, %v1509_v27 }
 0x26d   : > { %v1511_v25 = vpop.f32.mrf.mxu0  ;;  %v2319_v32 = vpop.f32.mrf.mxu1 }
 0x26e   : > { %2706 = vst.msk [vmem:[%s4220_s19 + $0x268] sm:$0xff] %vm2628_vm0, %v2295_v1 }
 0x26f   : > { %v1514_v46 = vpop.f32.mrf.mxu0  ;;  %v3169_v28 = vpop.f32.mrf.mxu1 }
 0x270   : > { %v2300_v22 = vadd.f32 %v2299_v45, %v1514_v46 }
 0x271   : > { %v1516_v51 = vpop.f32.mrf.mxu0  ;;  %v2329_v54 = vpop.f32.mrf.mxu1 }
 0x272   : > { %2707 = vst.msk [vmem:[%s4220_s19 + $0x270] sm:$0xff] %vm2628_vm0, %v2300_v22 }
 0x273   : > { %v1519_v44 = vpop.f32.mrf.mxu0  ;;  %v3172_v10 = vpop.f32.mrf.mxu1 }
 0x274   : > { %v2305_v61 = vadd.f32 %v3160_v35, %v1519_v44 }
 0x275   : > { %v1521_v31 = vpop.f32.mrf.mxu0  ;;  %v2339_v20 = vpop.f32.mrf.mxu1 }
 0x276   : > { %2708 = vst.msk [vmem:[%s4220_s19 + $0x278] sm:$0xff] %vm2628_vm0, %v2305_v61 }
 0x277   : > { %v1524_v38 = vpop.f32.mrf.mxu0  ;;  %v3175_v0 = vpop.f32.mrf.mxu1 }
 0x278   : > { %v2310_v21 = vadd.f32 %v2309_v12, %v1524_v38 }
 0x279   : > { %v1526_v53 = vpop.f32.mrf.mxu0  ;;  %v2349_v56 = vpop.f32.mrf.mxu1 }
 0x27a   : > { %2709 = vst.msk [vmem:[%s4220_s19 + $0x280] sm:$0xff] %vm2628_vm0, %v2310_v21 }
 0x27b   : > { %v1529_v50 = vpop.f32.mrf.mxu0  ;;  %v4529_v11 = vpop.f32.mrf.mxu1 }
 0x27c   : > { %v2315_v6 = vadd.f32 %v3163_v5, %v1529_v50 }
 0x27d   : > { %v1531_v55 = vpop.f32.mrf.mxu0  ;;  %v2359_v36 = vpop.f32.mrf.mxu1 }
 0x27e   : > { %2710 = vst.msk [vmem:[%s4220_s19 + $0x288] sm:$0xff] %vm2628_vm0, %v2315_v6 }
 0x27f   : > { %v1534_v2 = vpop.f32.mrf.mxu0  ;;  %v4533_v23 = vpop.f32.mrf.mxu1 }
 0x280   : > { %v2320_v24 = vadd.f32 %v2319_v32, %v1534_v2 }
 0x281   : > { %v1536_v26 = vpop.f32.mrf.mxu0  ;;  %v4535_v59 = vpop.f32.mrf.mxu1 }
 0x282   : > { %2711 = vst.msk [vmem:[%s4220_s19 + $0x290] sm:$0xff] %vm2628_vm0, %v2320_v24 }
 0x283   : > { %v1539_v48 = vpop.f32.mrf.mxu0  ;;  %v4539_v63 = vpop.f32.mrf.mxu1 }
 0x284   : > { %v2325_v60 = vadd.f32 %v3166_v52, %v1539_v48 }
 0x285   : > { %v1541_v40 = vpop.f32.mrf.mxu0  ;;  %v4541_v42 = vpop.f32.mrf.mxu1 }
 0x286   : > { %2712 = vst.msk [vmem:[%s4220_s19 + $0x298] sm:$0xff] %vm2628_vm0, %v2325_v60 }
 0x287   : > { %v1544_v37 = vpop.f32.mrf.mxu0  ;;  %v4545_v17 = vpop.f32.mrf.mxu1 }
 0x288   : > { %v2330_v43 = vadd.f32 %v2329_v54, %v1544_v37 }
 0x289   : > { %v1546_v8 = vpop.f32.mrf.mxu0  ;;  %v4547_v15 = vpop.f32.mrf.mxu1 }
 0x28a   : > { %2713 = vst.msk [vmem:[%s4220_s19 + $0x2a0] sm:$0xff] %vm2628_vm0, %v2330_v43 }
 0x28b   : > { %v1549_v30 = vpop.f32.mrf.mxu0  ;;  %v4551_v41 = vpop.f32.mrf.mxu1 }
 0x28c   : > { %v2335_v4 = vadd.f32 %v3169_v28, %v1549_v30 }
 0x28d   : > { %v1551_v3 = vpop.f32.mrf.mxu0  ;;  %v4553_v18 = vpop.f32.mrf.mxu1 }
 0x28e   : > { %2714 = vst.msk [vmem:[%s4220_s19 + $0x2a8] sm:$0xff] %vm2628_vm0, %v2335_v4  ;;  %v4790_v4 = vld [vmem:[#allocation5_spill] sm:$0xff] }
 0x28f   : > { %v1554_v16 = vpop.f32.mrf.mxu0  ;;  %v4557_v35 = vpop.f32.mrf.mxu1 }
 0x290   : > { %v2340_v57 = vadd.f32 %v2339_v20, %v1554_v16 }
 0x291   : > { %v1556_v34 = vpop.f32.mrf.mxu0  ;;  %v4559_v45 = vpop.f32.mrf.mxu1 }
 0x292   : > { %2715 = vst.msk [vmem:[%s4220_s19 + $0x2b0] sm:$0xff] %vm2628_vm0, %v2340_v57 }
 0x293   : > { %v1559_v14 = vpop.f32.mrf.mxu0  ;;  %v4563_v5 = vpop.f32.mrf.mxu1 }
 0x294   : > { %v2345_v13 = vadd.f32 %v3172_v10, %v1559_v14 }
 0x295   : > { %v1561_v47 = vpop.f32.mrf.mxu0  ;;  %v4565_v12 = vpop.f32.mrf.mxu1 }
 0x296   : > { %2716 = vst.msk [vmem:[%s4220_s19 + $0x2b8] sm:$0xff] %vm2628_vm0, %v2345_v13  ;;  %v4792_v13 = vld [vmem:[#allocation6_spill] sm:$0xff] }
 0x297   : > { %v1564_v27 = vpop.f32.mrf.mxu0  ;;  %v4569_v52 = vpop.f32.mrf.mxu1 }
 0x298   : > { %v2350_v1 = vadd.f32 %v2349_v56, %v1564_v27 }
 0x299   : > { %v1566_v25 = vpop.f32.mrf.mxu0  ;;  %v4571_v32 = vpop.f32.mrf.mxu1 }
 0x29a   : > { %2717 = vst.msk [vmem:[%s4220_s19 + $0x2c0] sm:$0xff] %vm2628_vm0, %v2350_v1 }
 0x29b   : > { %v1569_v46 = vpop.f32.mrf.mxu0  ;;  %v4575_v28 = vpop.f32.mrf.mxu1 }
 0x29c   : > { %v2355_v22 = vadd.f32 %v3175_v0, %v1569_v46 }
 0x29d   : > { %v1571_v51 = vpop.f32.mrf.mxu0  ;;  %v4577_v54 = vpop.f32.mrf.mxu1 }
 0x29e   : > { %2718 = vst.msk [vmem:[%s4220_s19 + $0x2c8] sm:$0xff] %vm2628_vm0, %v2355_v22 }
 0x29f   : > { %v1574_v44 = vpop.f32.mrf.mxu0  ;;  %v3205_v10 = vpop.f32.mrf.mxu1 }
 0x2a0   : > { %v2360_v61 = vadd.f32 %v2359_v36, %v1574_v44  ;;  %v2455_v31 = vadd.f32 %v3205_v10, %v3999_v9  ;;  %v4794_v44 = vld [vmem:[#allocation8_spill] sm:$0xff] }
 0x2a1   : > { %v1576_v20 = vpop.f32.mrf.mxu0  ;;  %v2449_v38 = vpop.f32.mrf.mxu1 }
 0x2a2   : > { %2719 = vst.msk [vmem:[%s4220_s19 + $0x2d0] sm:$0xff] %vm2628_vm0, %v2360_v61  ;;  %2738 = vst.msk [vmem:[%s4220_s19 + $0x368] sm:$0xff] %vm2628_vm0, %v2455_v31  ;;  %v2450_v0 = vadd.f32 %v2449_v38, %v3993_v62 }
 0x2a3   : > { %v1579_v21 = vpop.f32.mrf.mxu0  ;;  %v3208_v53 = vpop.f32.mrf.mxu1 }
 0x2a4   : > { %2737 = vst.msk [vmem:[%s4220_s19 + $0x360] sm:$0xff] %vm2628_vm0, %v2450_v0  ;;  %v2365_v56 = vadd.f32 %v4529_v11, %v1579_v21  ;;  %v2465_v50 = vadd.f32 %v3208_v53, %v4011_v29  ;;  %v4796_v53 = vld [vmem:[#allocation10_spill] sm:$0xff] }
 0x2a5   : > { %v1581_v9 = vpop.f32.mrf.mxu0  ;;  %v2459_v6 = vpop.f32.mrf.mxu1 }
 0x2a6   : > { %2720 = vst.msk [vmem:[%s4220_s19 + $0x2d8] sm:$0xff] %vm2628_vm0, %v2365_v56  ;;  %2740 = vst.msk [vmem:[%s4220_s19 + $0x378] sm:$0xff] %vm2628_vm0, %v2465_v50  ;;  %v2460_v55 = vadd.f32 %v2459_v6, %v4005_v19 }
 0x2a7   : > { %v1584_v62 = vpop.f32.mrf.mxu0  ;;  %v3211_v36 = vpop.f32.mrf.mxu1 }
 0x2a8   : > { %2739 = vst.msk [vmem:[%s4220_s19 + $0x370] sm:$0xff] %vm2628_vm0, %v2460_v55  ;;  %v2370_v2 = vadd.f32 %v4535_v59, %v1584_v62  ;;  %v2475_v11 = vadd.f32 %v3211_v36, %v4023_v49 }
 0x2a9   : > { %v1586_v29 = vpop.f32.mrf.mxu0  ;;  %v2469_v24 = vpop.f32.mrf.mxu1 }
 0x2aa   : > { %2721 = vst.msk [vmem:[%s4220_s19 + $0x2e0] sm:$0xff] %vm2628_vm0, %v2370_v2  ;;  %2742 = vst.msk [vmem:[%s4220_s19 + $0x388] sm:$0xff] %vm2628_vm0, %v2475_v11  ;;  %v2470_v26 = vadd.f32 %v2469_v24, %v4017_v39  ;;  %v4798_v2 = vld [vmem:[#allocation12_spill] sm:$0xff] }
 0x2ab   : > { %v1589_v19 = vpop.f32.mrf.mxu0  ;;  %v3214_v48 = vpop.f32.mrf.mxu1 }
 0x2ac   : > { %2741 = vst.msk [vmem:[%s4220_s19 + $0x380] sm:$0xff] %vm2628_vm0, %v2470_v26  ;;  %v2375_v60 = vadd.f32 %v4533_v23, %v1589_v19  ;;  %v2485_v59 = vadd.f32 %v3214_v48, %v4035_v7 }
 0x2ad   : > { %v1591_v49 = vpop.f32.mrf.mxu0  ;;  %v2479_v40 = vpop.f32.mrf.mxu1 }
 0x2ae   : > { %2722 = vst.msk [vmem:[%s4220_s19 + $0x2e8] sm:$0xff] %vm2628_vm0, %v2375_v60  ;;  %2744 = vst.msk [vmem:[%s4220_s19 + $0x398] sm:$0xff] %vm2628_vm0, %v2485_v59  ;;  %v2480_v37 = vadd.f32 %v2479_v40, %v4029_v58  ;;  %v4800_v59 = vld [vmem:[#allocation14_spill] sm:$0xff] }
 0x2af   : > { %v1594_v39 = vpop.f32.mrf.mxu0  ;;  %v3217_v43 = vpop.f32.mrf.mxu1 }
 0x2b0   : > { %2743 = vst.msk [vmem:[%s4220_s19 + $0x390] sm:$0xff] %vm2628_vm0, %v2480_v37  ;;  %v2380_v8 = vadd.f32 %v4541_v42, %v1594_v39  ;;  %v2495_v23 = vadd.f32 %v3217_v43, %v4047_v33  ;;  %v4791_v42 = vld [vmem:[#allocation7_spill] sm:$0xff] }
 0x2b1   : > { %v1596_v7 = vpop.f32.mrf.mxu0  ;;  %v2489_v30 = vpop.f32.mrf.mxu1 }
 0x2b2   : > { %2723 = vst.msk [vmem:[%s4220_s19 + $0x2f0] sm:$0xff] %vm2628_vm0, %v2380_v8  ;;  %2746 = vst.msk [vmem:[%s4220_s19 + $0x3a8] sm:$0xff] %vm2628_vm0, %v2495_v23  ;;  %v2490_v3 = vadd.f32 %v2489_v30, %v4790_v4  ;;  %v4802_v7 = vld [vmem:[#allocation16_spill] sm:$0xff] }
 0x2b3   : > { %v1599_v58 = vpop.f32.mrf.mxu0  ;;  %v3220_v16 = vpop.f32.mrf.mxu1 }
 0x2b4   : > { %2745 = vst.msk [vmem:[%s4220_s19 + $0x3a0] sm:$0xff] %vm2628_vm0, %v2490_v3  ;;  %v2385_v57 = vadd.f32 %v4539_v63, %v1599_v58  ;;  %v2505_v34 = vadd.f32 %v3220_v16, %v4791_v42  ;;  %v4793_v63 = vld [vmem:[#allocation9_spill] sm:$0xff] }
 0x2b5   : > { %v1601_v33 = vpop.f32.mrf.mxu0  ;;  %v2499_v14 = vpop.f32.mrf.mxu1 }
 0x2b6   : > { %2724 = vst.msk [vmem:[%s4220_s19 + $0x2f8] sm:$0xff] %vm2628_vm0, %v2385_v57  ;;  %2748 = vst.msk [vmem:[%s4220_s19 + $0x3b8] sm:$0xff] %vm2628_vm0, %v2505_v34  ;;  %v2500_v47 = vadd.f32 %v2499_v14, %v4792_v13  ;;  %v4804_v34 = vld [vmem:[#allocation18_spill] sm:$0xff] }
 0x2b7   : > { %v1604_v27 = vpop.f32.mrf.mxu0  ;;  %v3223_v1 = vpop.f32.mrf.mxu1 }
 0x2b8   : > { %2747 = vst.msk [vmem:[%s4220_s19 + $0x3b0] sm:$0xff] %vm2628_vm0, %v2500_v47  ;;  %v2390_v25 = vadd.f32 %v4547_v15, %v1604_v27  ;;  %v2515_v46 = vadd.f32 %v3223_v1, %v4793_v63  ;;  %v4795_v15 = vld [vmem:[#allocation11_spill] sm:$0xff]  ;;  %v4806_v63 = vld [vmem:[#allocation20_spill] sm:$0xff] }
 0x2b9   : > { %v1606_v22 = vpop.f32.mrf.mxu0  ;;  %v2509_v51 = vpop.f32.mrf.mxu1 }
 0x2ba   : > { %2725 = vst.msk [vmem:[%s4220_s19 + $0x300] sm:$0xff] %vm2628_vm0, %v2390_v25  ;;  %2750 = vst.msk [vmem:[%s4220_s19 + $0x3c8] sm:$0xff] %vm2628_vm0, %v2515_v46  ;;  %v2510_v10 = vadd.f32 %v2509_v51, %v4794_v44 }
 0x2bb   : > { %v1609_v61 = vpop.f32.mrf.mxu0  ;;  %v3226_v31 = vpop.f32.mrf.mxu1 }
 0x2bc   : > { %2749 = vst.msk [vmem:[%s4220_s19 + $0x3c0] sm:$0xff] %vm2628_vm0, %v2510_v10  ;;  %v2395_v20 = vadd.f32 %v4545_v17, %v1609_v61  ;;  %v2525_v38 = vadd.f32 %v3226_v31, %v4795_v15  ;;  %v4797_v17 = vld [vmem:[#allocation13_spill] sm:$0xff] }
 0x2bd   : > { %v1611_v0 = vpop.f32.mrf.mxu0  ;;  %v2519_v21 = vpop.f32.mrf.mxu1 }
 0x2be   : > { %2726 = vst.msk [vmem:[%s4220_s19 + $0x308] sm:$0xff] %vm2628_vm0, %v2395_v20  ;;  %2752 = vst.msk [vmem:[%s4220_s19 + $0x3d8] sm:$0xff] %vm2628_vm0, %v2525_v38  ;;  %v2520_v56 = vadd.f32 %v2519_v21, %v4796_v53  ;;  %v4808_v20 = vld [vmem:[#allocation22_spill] sm:$0xff] }
 0x2bf   : > { %v1614_v50 = vpop.f32.mrf.mxu0  ;;  %v3229_v9 = vpop.f32.mrf.mxu1 }
 0x2c0   : > { %2751 = vst.msk [vmem:[%s4220_s19 + $0x3d0] sm:$0xff] %vm2628_vm0, %v2520_v56  ;;  %v2400_v6 = vadd.f32 %v4553_v18, %v1614_v50  ;;  %v2535_v55 = vadd.f32 %v3229_v9, %v4797_v17  ;;  %v4799_v18 = vld [vmem:[#allocation15_spill] sm:$0xff]  ;;  %v4810_v9 = vld [vmem:[#allocation24_spill] sm:$0xff] }
 0x2c1   : > { %v1616_v62 = vpop.f32.mrf.mxu0  ;;  %v2529_v36 = vpop.f32.mrf.mxu1 }
 0x2c2   : > { %2727 = vst.msk [vmem:[%s4220_s19 + $0x310] sm:$0xff] %vm2628_vm0, %v2400_v6  ;;  %2754 = vst.msk [vmem:[%s4220_s19 + $0x3e8] sm:$0xff] %vm2628_vm0, %v2535_v55  ;;  %v2530_v11 = vadd.f32 %v2529_v36, %v4798_v2 }
 0x2c3   : > { %v1619_v29 = vpop.f32.mrf.mxu0  ;;  %v3232_v24 = vpop.f32.mrf.mxu1 }
 0x2c4   : > { %2753 = vst.msk [vmem:[%s4220_s19 + $0x3e0] sm:$0xff] %vm2628_vm0, %v2530_v11  ;;  %v2405_v26 = vadd.f32 %v4551_v41, %v1619_v29  ;;  %v2545_v19 = vadd.f32 %v3232_v24, %v4799_v18  ;;  %v4801_v41 = vld [vmem:[#allocation17_spill] sm:$0xff]  ;;  %v4812_v29 = vld [vmem:[#allocation26_spill] sm:$0xff] }
 0x2c5   : > { %v1621_v48 = vpop.f32.mrf.mxu0  ;;  %v2539_v60 = vpop.f32.mrf.mxu1 }
 0x2c6   : > { %2728 = vst.msk [vmem:[%s4220_s19 + $0x318] sm:$0xff] %vm2628_vm0, %v2405_v26  ;;  %2756 = vst.msk [vmem:[%s4220_s19 + $0x3f8] sm:$0xff] %vm2628_vm0, %v2545_v19  ;;  %v2540_v49 = vadd.f32 %v2539_v60, %v4800_v59 }
 0x2c7   : > { %v1624_v40 = vpop.f32.mrf.mxu0  ;;  %v3235_v37 = vpop.f32.mrf.mxu1 }
 0x2c8   : > { %2755 = vst.msk [vmem:[%s4220_s19 + $0x3f0] sm:$0xff] %vm2628_vm0, %v2540_v49  ;;  %v2410_v39 = vadd.f32 %v4559_v45, %v1624_v40  ;;  %v2555_v43 = vadd.f32 %v3235_v37, %v4801_v41  ;;  %v4803_v45 = vld [vmem:[#allocation19_spill] sm:$0xff]  ;;  %v4814_v49 = vld [vmem:[#allocation28_spill] sm:$0xff] }
 0x2c9   : > { %v1626_v8 = vpop.f32.mrf.mxu0  ;;  %v2549_v23 = vpop.f32.mrf.mxu1 }
 0x2ca   : > { %2729 = vst.msk [vmem:[%s4220_s19 + $0x320] sm:$0xff] %vm2628_vm0, %v2410_v39  ;;  %2758 = vst.msk [vmem:[%s4220_s19 + $0x408] sm:$0xff] %vm2628_vm0, %v2555_v43  ;;  %v2550_v30 = vadd.f32 %v2549_v23, %v4802_v7  ;;  %v4815_v43 = vld [vmem:[#allocation31_spill] sm:$0xff]  ;;  %v4816_v7 = vld [vmem:[#allocation30_spill] sm:$0xff] }
 0x2cb   : > { %v1629_v4 = vpop.f32.mrf.mxu0  ;;  %v3238_v3 = vpop.f32.mrf.mxu1 }
 0x2cc   : > { %2757 = vst.msk [vmem:[%s4220_s19 + $0x400] sm:$0xff] %vm2628_vm0, %v2550_v30  ;;  %v2415_v58 = vadd.f32 %v4557_v35, %v1629_v4  ;;  %v2565_v16 = vadd.f32 %v3238_v3, %v4803_v45  ;;  %v4805_v35 = vld [vmem:[#allocation21_spill] sm:$0xff] }
 0x2cd   : > { %v1631_v57 = vpop.f32.mrf.mxu0  ;;  %v2559_v42 = vpop.f32.mrf.mxu1 }
 0x2ce   : > { %2730 = vst.msk [vmem:[%s4220_s19 + $0x328] sm:$0xff] %vm2628_vm0, %v2415_v58  ;;  %2760 = vst.msk [vmem:[%s4220_s19 + $0x418] sm:$0xff] %vm2628_vm0, %v2565_v16  ;;  %v2560_v33 = vadd.f32 %v2559_v42, %v4804_v34 }
 0x2cf   : > { %v1634_v14 = vpop.f32.mrf.mxu0  ;;  %v3241_v13 = vpop.f32.mrf.mxu1 }
 0x2d0   : > { %2759 = vst.msk [vmem:[%s4220_s19 + $0x410] sm:$0xff] %vm2628_vm0, %v2560_v33  ;;  %v2420_v47 = vadd.f32 %v4565_v12, %v1634_v14  ;;  %v2575_v27 = vadd.f32 %v3241_v13, %v4805_v35  ;;  %v4807_v12 = vld [vmem:[#allocation23_spill] sm:$0xff] }
 0x2d1   : > { %v1636_v1 = vpop.f32.mrf.mxu0  ;;  %v2569_v25 = vpop.f32.mrf.mxu1 }
 0x2d2   : > { %2731 = vst.msk [vmem:[%s4220_s19 + $0x330] sm:$0xff] %vm2628_vm0, %v2420_v47  ;;  %2762 = vst.msk [vmem:[%s4220_s19 + $0x428] sm:$0xff] %vm2628_vm0, %v2575_v27  ;;  %v2570_v46 = vadd.f32 %v2569_v25, %v4806_v63 }
 0x2d3   : > { %v1639_v22 = vpop.f32.mrf.mxu0  ;;  %v3244_v51 = vpop.f32.mrf.mxu1 }
 0x2d4   : > { %2761 = vst.msk [vmem:[%s4220_s19 + $0x420] sm:$0xff] %vm2628_vm0, %v2570_v46  ;;  %v2425_v44 = vadd.f32 %v4563_v5, %v1639_v22  ;;  %v2585_v10 = vadd.f32 %v3244_v51, %v4807_v12  ;;  %v4809_v5 = vld [vmem:[#allocation25_spill] sm:$0xff] }
 0x2d5   : > { %v1641_v61 = vpop.f32.mrf.mxu0  ;;  %v2579_v31 = vpop.f32.mrf.mxu1 }
 0x2d6   : > { %2732 = vst.msk [vmem:[%s4220_s19 + $0x338] sm:$0xff] %vm2628_vm0, %v2425_v44  ;;  %2764 = vst.msk [vmem:[%s4220_s19 + $0x438] sm:$0xff] %vm2628_vm0, %v2585_v10  ;;  %v2580_v15 = vadd.f32 %v2579_v31, %v4808_v20 }
 0x2d7   : > { %v1644_v38 = vpop.f32.mrf.mxu0  ;;  %v3247_v0 = vpop.f32.mrf.mxu1 }
 0x2d8   : > { %2763 = vst.msk [vmem:[%s4220_s19 + $0x430] sm:$0xff] %vm2628_vm0, %v2580_v15  ;;  %v2430_v21 = vadd.f32 %v4571_v32, %v1644_v38  ;;  %v2595_v53 = vadd.f32 %v3247_v0, %v4809_v5  ;;  %v4811_v32 = vld [vmem:[#allocation27_spill] sm:$0xff] }
 0x2d9   : > { %v1646_v56 = vpop.f32.mrf.mxu0  ;;  %v2589_v50 = vpop.f32.mrf.mxu1 }
 0x2da   : > { %2733 = vst.msk [vmem:[%s4220_s19 + $0x340] sm:$0xff] %vm2628_vm0, %v2430_v21  ;;  %2766 = vst.msk [vmem:[%s4220_s19 + $0x448] sm:$0xff] %vm2628_vm0, %v2595_v53  ;;  %v2590_v6 = vadd.f32 %v2589_v50, %v4810_v9 }
 0x2db   : > { %v1649_v17 = vpop.f32.mrf.mxu0  ;;  %v3250_v55 = vpop.f32.mrf.mxu1 }
 0x2dc   : > { %2765 = vst.msk [vmem:[%s4220_s19 + $0x440] sm:$0xff] %vm2628_vm0, %v2590_v6  ;;  %v2435_v62 = vadd.f32 %v4569_v52, %v1649_v17  ;;  %v2605_v36 = vadd.f32 %v3250_v55, %v4811_v32  ;;  %v4813_v52 = vld [vmem:[#allocation29_spill] sm:$0xff] }
 0x2dd   : > { %v1651_v2 = vpop.f32.mrf.mxu0  ;;  %v2599_v11 = vpop.f32.mrf.mxu1 }
 0x2de   : > { %2734 = vst.msk [vmem:[%s4220_s19 + $0x348] sm:$0xff] %vm2628_vm0, %v2435_v62  ;;  %2768 = vst.msk [vmem:[%s4220_s19 + $0x458] sm:$0xff] %vm2628_vm0, %v2605_v36  ;;  %v2600_v24 = vadd.f32 %v2599_v11, %v4812_v29 }
 0x2df   : > { %v1654_v26 = vpop.f32.mrf.mxu0  ;;  %v3253_v18 = vpop.f32.mrf.mxu1 }
 0x2e0   : > { %2767 = vst.msk [vmem:[%s4220_s19 + $0x450] sm:$0xff] %vm2628_vm0, %v2600_v24  ;;  %v2440_v19 = vadd.f32 %v4577_v54, %v1654_v26  ;;  %v2615_v48 = vadd.f32 %v3253_v18, %v4813_v52 }
 0x2e1   : > { %v1656_v60 = vpop.f32.mrf.mxu0  ;;  %v2609_v59 = vpop.f32.mrf.mxu1 }
 0x2e2   : > { %2735 = vst.msk [vmem:[%s4220_s19 + $0x350] sm:$0xff] %vm2628_vm0, %v2440_v19  ;;  %2770 = vst.msk [vmem:[%s4220_s19 + $0x468] sm:$0xff] %vm2628_vm0, %v2615_v48  ;;  %v2610_v40 = vadd.f32 %v2609_v59, %v4814_v49 }
 0x2e3   : > { %v1659_v37 = vpop.f32.mrf.mxu0  ;;  %v3256_v39 = vpop.f32.mrf.mxu1 }
 0x2e4   : > { %2769 = vst.msk [vmem:[%s4220_s19 + $0x460] sm:$0xff] %vm2628_vm0, %v2610_v40  ;;  %v2445_v41 = vadd.f32 %v4575_v28, %v1659_v37  ;;  %v2625_v8 = vadd.f32 %v3256_v39, %v4815_v43 }
 0x2e5   : > { %v2619_v54 = vpop.f32.mrf.mxu1  ;;  %v1661_v23 = vpop.f32.mrf.mxu0 }
 0x2e6   : > { %2736 = vst.msk [vmem:[%s4220_s19 + $0x358] sm:$0xff] %vm2628_vm0, %v2445_v41  ;;  %2772 = vst.msk [vmem:[%s4220_s19 + $0x478] sm:$0xff] %vm2628_vm0, %v2625_v8  ;;  %v2620_v30 = vadd.f32 %v2619_v54, %v4816_v7 }
 0x2e8   : > { %2771 = vst.msk [vmem:[%s4220_s19 + $0x470] sm:$0xff] %vm2628_vm0, %v2620_v30 }
 0x2e9 PF: > { %p13_p0 = scmp.ge.s32.totalorder %s3475_s17, 4   ;;  %s4817_s12 = smov %s3421_s13 }
 0x2ea   : > { %s4818_s13 = smov %s3425_s14  ;;  %s4819_s14 = smov %s3485_s20 }
 0x2eb   : > { %s4820_s15 = smov %s3475_s17  ;;  %15 = sbr.rel (!%p13_p0) target bundleno = 3 (0x3), region = 72 }
 0x2f0   :  { %2795 = vsyncpa [#allocation3], 1 }
 0x2f1   :  { %2797 = vsyncpa [#allocation3 + $0x1], 1 }

</bundles_post_ra>
